<compile_context>
chip_gen: v7x
topology: tpu7x:2x2x1
jax: 0.10.0
libtpu: 0.0.40
codegen_flags: <defaults>
</compile_context>

<pallas_src>
import functools

import jax
import jax.numpy as jnp
from jax.experimental import pallas as pl
from jax.experimental.pallas import tpu as pltpu


# ----------------------------------------------------------------------------
# Fused kernel: full (T x num_layers) GCGRU recurrence, whole batch at once.
# ----------------------------------------------------------------------------
def _gcgru_fused_kernel(A_ref, x_ref,
                        w0x_ref, w0h_ref, w0c_ref, b0_ref,
                        w1x_ref, w1h_ref, w1c_ref, b1_ref,
                        hid_ref, series_ref,
                        px0_ref,
                        *, seq_len, rows, hidden_dim):
    T, BN, H = seq_len, rows, hidden_dim
    f32, bf16 = jnp.float32, jnp.bfloat16

    A = A_ref[...]                       # (BN, BN) bf16, block-diag over batch
    w0h = w0h_ref[...]                   # (H, 2H) bf16  [wrh | wuh]
    w0c = w0c_ref[...]                   # (H, H)  bf16
    w1x = w1x_ref[...]                   # (H, 3H) bf16  [wrx | wux | wcx]
    w1h = w1h_ref[...]                   # (H, 2H) bf16
    w1c = w1c_ref[...]                   # (H, H)  bf16
    b0 = b0_ref[...]                     # (1, 3H) f32   [br | bu | bc]
    b1 = b1_ref[...]                     # (1, 3H) f32

    # ---- Layer-0 input projections (h-independent), hoisted out of the
    # recurrence: one wide shared-weight matmul for all T steps, then T
    # independent A-matmuls.  Results (+bias) staged in a VMEM slab so they
    # are not held as live SSA values across the unrolled recurrence.
    y0 = jnp.dot(x_ref[...], w0x_ref[...],
                 preferred_element_type=f32).astype(bf16)          # (T*BN, 3H)
    for t in range(T):
        px0_ref[pl.ds(t * BN, BN), :] = (
            jnp.dot(A, y0[t * BN:(t + 1) * BN, :],
                    preferred_element_type=f32) + b0)

    def gru_step(px, h, wh, wc):
        # px: (BN, 3H) f32 with bias already folded in.
        ph = jnp.dot(jnp.dot(A, h.astype(bf16),
                             preferred_element_type=f32).astype(bf16),
                     wh, preferred_element_type=f32)                # (BN, 2H)
        s = jax.nn.sigmoid(px[:, :2 * H] + ph)                      # one EUP issue
        r, u = s[:, :H], s[:, H:]
        arh = jnp.dot(jnp.dot(A, (r * h).astype(bf16),
                              preferred_element_type=f32).astype(bf16),
                      wc, preferred_element_type=f32)               # (BN, H)
        c = jnp.tanh(px[:, 2 * H:] + arh)
        return u * h + (1.0 - u) * c

    def proj1(h0_out):
        # Layer-1 input projection for one timestep (independent of h1 chain).
        return jnp.dot(A, jnp.dot(h0_out.astype(bf16), w1x,
                                  preferred_element_type=f32).astype(bf16),
                       preferred_element_type=f32) + b1             # (BN, 3H)

    h0 = jnp.zeros((BN, H), f32)
    h1 = jnp.zeros((BN, H), f32)

    # ---- Wavefront over layers: iteration t computes layer-0 step t and
    # layer-1 step t-1; the two chains are mutually independent so their
    # serial matmul/activation latencies interleave on the MXU/EUP.
    h0 = gru_step(px0_ref[pl.ds(0, BN), :], h0, w0h, w0c)           # layer-0, t=0
    px1 = proj1(h0)
    for t in range(1, T):
        h0_next = gru_step(px0_ref[pl.ds(t * BN, BN), :], h0, w0h, w0c)
        h1 = gru_step(px1, h1, w1h, w1c)                            # layer-1, t-1
        series_ref[t - 1, :, :] = h1
        px1 = proj1(h0_next)
        h0 = h0_next
    h1 = gru_step(px1, h1, w1h, w1c)                                # layer-1, T-1
    series_ref[T - 1, :, :] = h1

    hid_ref[0] = h0
    hid_ref[1] = h1


# ----------------------------------------------------------------------------
# Wrapper: weight packing + a single pallas_call for the whole forward pass.
# ----------------------------------------------------------------------------
def gcgru_model_forward(inputs, norm_adj, params_layers, output_series=False):
    B, T, N, F = inputs.shape
    H = params_layers[0]["wrh"].shape[0]
    num_layers = len(params_layers)
    assert num_layers == 2, "GCGRUModel spec uses exactly 2 stacked cells"
    BN = B * N

    # Concatenate per-gate weights/biases (r|u|c order); weights go to bf16
    # (single-pass MXU operands), biases stay f32.
    def pack(p):
        wx = jnp.concatenate([p["wrx"], p["wux"], p["wcx"]], axis=1)   # (in, 3H)
        wh = jnp.concatenate([p["wrh"], p["wuh"]], axis=1)             # (H, 2H)
        wc = p["wch"]                                                  # (H, H)
        b = jnp.concatenate([p["br"], p["bu"], p["bc"]], axis=1)       # (1, 3H)
        return (wx.astype(jnp.bfloat16), wh.astype(jnp.bfloat16),
                wc.astype(jnp.bfloat16), b.astype(jnp.float32))

    w0x, w0h, w0c, b0 = pack(params_layers[0])
    w1x, w1h, w1c, b1 = pack(params_layers[1])

    # Block-diagonal adjacency over the batch: every in-kernel matmul then
    # covers all batch elements in one MXU push (no per-batch grid loop).
    eyeB = jnp.eye(B, dtype=norm_adj.dtype)
    A_bd = (eyeB[:, None, :, None] * norm_adj[:, :, None, :]
            ).reshape(BN, BN).astype(jnp.bfloat16)

    # Time-major (T*B*N, F) slab: slice t is the batch-stacked timestep input.
    x_flat = jnp.transpose(inputs, (1, 0, 2, 3)).reshape(T * BN, F).astype(jnp.bfloat16)

    kernel = functools.partial(_gcgru_fused_kernel,
                               seq_len=T, rows=BN, hidden_dim=H)

    def full(shape):
        nd = len(shape)
        return pl.BlockSpec(shape, lambda i, nd=nd: (0,) * nd)

    # Advisory cost estimate for XLA scheduling around the custom call.
    flops = 2 * B * T * N * (
        F * 3 * H + N * 3 * H                      # layer-0 input projection
        + H * 3 * H + N * 3 * H                    # layer-1 input projection
        + 2 * (2 * N * H + H * 2 * H + H * H))     # recurrent chain, both layers
    trans = B * T * 2 * 3 * N * H
    in_bytes = sum(int(a.size) * int(a.dtype.itemsize)
                   for a in (A_bd, x_flat, w0x, w0h, w0c, b0, w1x, w1h, w1c, b1))
    out_bytes = 4 * (num_layers * BN * H + T * BN * H)
    cost = pl.CostEstimate(flops=int(flops), transcendentals=int(trans),
                           bytes_accessed=int(in_bytes + out_bytes))

    hid, series = pl.pallas_call(
        kernel,
        out_shape=(
            jax.ShapeDtypeStruct((num_layers, BN, H), jnp.float32),
            jax.ShapeDtypeStruct((T, BN, H), jnp.float32),
        ),
        grid=(1,),
        in_specs=[
            full((BN, BN)),              # block-diag adjacency
            full((T * BN, F)),           # inputs, time-major slab
            full((F, 3 * H)), full((H, 2 * H)), full((H, H)), full((1, 3 * H)),
            full((H, 3 * H)), full((H, 2 * H)), full((H, H)), full((1, 3 * H)),
        ],
        out_specs=(
            full((num_layers, BN, H)),
            full((T, BN, H)),
        ),
        scratch_shapes=[pltpu.VMEM((T * BN, 3 * H), jnp.float32)],  # px0 slab
        compiler_params=pltpu.CompilerParams(
            dimension_semantics=("arbitrary",)),
        cost_estimate=cost,
    )(A_bd, x_flat,
      w0x, w0h, w0c, b0,
      w1x, w1h, w1c, b1)

    hidden = hid.reshape(num_layers, B, N, H)                      # (L, B, N, H)
    outputs = jnp.transpose(series.reshape(T, B, N, H), (1, 0, 2, 3))
    output = outputs[:, -1]                                        # last timestep
    if output_series:
        return outputs, hidden
    return output, hidden


# ----------------------------------------------------------------------------
# Pure-JAX reference (mirrors the PyTorch forward) for a correctness check.
# ----------------------------------------------------------------------------
def _cell_ref(A, x, h, p):
    Ax = jnp.einsum("bnm,bmf->bnf", A, x)
    Ah = jnp.einsum("bnm,bmh->bnh", A, h)
    r = jax.nn.sigmoid(Ax @ p["wrx"] + Ah @ p["wrh"] + p["br"])
    u = jax.nn.sigmoid(Ax @ p["wux"] + Ah @ p["wuh"] + p["bu"])
    Arh = jnp.einsum("bnm,bmh->bnh", A, r * h)
    c = jnp.tanh(Ax @ p["wcx"] + Arh @ p["wch"] + p["bc"])
    return u * h + (1.0 - u) * c


def _model_ref(inputs, norm_adj, params_layers):
    B, T, N, _ = inputs.shape
    H = params_layers[0]["wrh"].shape[0]
    h = [jnp.zeros((B, N, H), jnp.float32) for _ in range(len(params_layers))]
    series = []
    output = None
    for t in range(T):
        output = inputs[:, t]
        new_h = []
        for layer, p in enumerate(params_layers):
            hn = _cell_ref(norm_adj, output, h[layer], p)
            new_h.append(hn)
            output = hn
        h = new_h
        series.append(output)
    return output, jnp.stack(h), jnp.stack(series, axis=1)


# ----------------------------------------------------------------------------
# Deterministic parameter init (nn.Linear-style uniform), in-script.
# ----------------------------------------------------------------------------
def init_cell_params(key, input_dim, hidden_dim):
    """Each gate = nn.Linear(input_dim + hidden_dim, hidden_dim); weights are
    stored pre-transposed and split into the x-part and h-part of the concat."""
    in_features = input_dim + hidden_dim
    bound = 1.0 / jnp.sqrt(jnp.float32(in_features))
    keys = jax.random.split(key, 6)
    params = {}
    for i, gate in enumerate(("r", "u", "c")):
        w = jax.random.uniform(keys[2 * i], (in_features, hidden_dim),
                               jnp.float32, -bound, bound)
        b = jax.random.uniform(keys[2 * i + 1], (1, hidden_dim),
                               jnp.float32, -bound, bound)
        params[f"w{gate}x"] = w[:input_dim]     # (input_dim, H)
        params[f"w{gate}h"] = w[input_dim:]     # (H, H)
        params[f"b{gate}"] = b                  # (1, H)
    return params


if __name__ == "__main__":
    # opt: num_layer=2, num_adj=16, hidden_dim=32, num_feature=4
    B, T, N, F, H = 2, 8, 16, 4, 32

    key = jax.random.PRNGKey(0)
    k_in, k_adj, k_l0, k_l1 = jax.random.split(key, 4)

    inputs = jax.random.normal(k_in, (B, T, N, F), jnp.float32)

    # Row-normalized random adjacency (norm_adj).
    adj = jax.random.uniform(k_adj, (B, N, N), jnp.float32)
    norm_adj = adj / jnp.sum(adj, axis=-1, keepdims=True)

    params_layers = [
        init_cell_params(k_l0, F, H),   # layer 0: input_dim = num_feature
        init_cell_params(k_l1, H, H),   # layer 1: input_dim = rnn_units
    ]

    # Default path: (output, hidden)
    output, hidden = gcgru_model_forward(inputs, norm_adj, params_layers)
    output = jax.block_until_ready(output)
    hidden = jax.block_until_ready(hidden)
    assert output.shape == (B, N, H)
    assert hidden.shape == (2, B, N, H)

    # Series path: (outputs, hidden)
    outputs_series, hidden2 = gcgru_model_forward(
        inputs, norm_adj, params_layers, output_series=True)
    outputs_series = jax.block_until_ready(outputs_series)
    assert outputs_series.shape == (B, T, N, H)

    # Cross-check against the pure-JAX f32 reference of the PyTorch forward.
    # Tolerances loosened (5e-2) because the kernel uses single-pass bf16 MXU
    # operands with f32 accumulation.
    out_ref, hid_ref_, series_ref_ = _model_ref(inputs, norm_adj, params_layers)
    assert jnp.allclose(output, out_ref, rtol=5e-2, atol=5e-2)
    assert jnp.allclose(hidden, hid_ref_, rtol=5e-2, atol=5e-2)
    assert jnp.allclose(hidden2, hid_ref_, rtol=5e-2, atol=5e-2)
    assert jnp.allclose(outputs_series, series_ref_, rtol=5e-2, atol=5e-2)

    print("KERNEL_OK")
</pallas_src>

<mosaic_0001>
module attributes {stable_mosaic.version = 11 : i64} {
  func.func @_gcgru_fused_kernel(%arg0: i32, %arg1: memref<32x32xbf16, #tpu.memory_space<vmem>>, %arg2: memref<256x4xbf16, #tpu.memory_space<vmem>>, %arg3: memref<4x96xbf16, #tpu.memory_space<vmem>>, %arg4: memref<32x64xbf16, #tpu.memory_space<vmem>>, %arg5: memref<32x32xbf16, #tpu.memory_space<vmem>>, %arg6: memref<1x96xf32, #tpu.memory_space<vmem>>, %arg7: memref<32x96xbf16, #tpu.memory_space<vmem>>, %arg8: memref<32x64xbf16, #tpu.memory_space<vmem>>, %arg9: memref<32x32xbf16, #tpu.memory_space<vmem>>, %arg10: memref<1x96xf32, #tpu.memory_space<vmem>>, %arg11: memref<2x32x32xf32, #tpu.memory_space<vmem>>, %arg12: memref<8x32x32xf32, #tpu.memory_space<vmem>>, %arg13: memref<256x96xf32, #tpu.memory_space<vmem>>) attributes {dimension_semantics = [#tpu.dimension_semantics<arbitrary>], iteration_bounds = array<i64: 1>, scalar_prefetch = 0 : i64, scratch_operands = 1 : i64, tpu.core_type = #tpu.core_type<tc>, window_params = [{pipeline_mode = #tpu.pipeline_mode<synchronous>, transform_indices = @transform_0, window_bounds = array<i64: 32, 32>}, {pipeline_mode = #tpu.pipeline_mode<synchronous>, transform_indices = @transform_1, window_bounds = array<i64: 256, 4>}, {pipeline_mode = #tpu.pipeline_mode<synchronous>, transform_indices = @transform_2, window_bounds = array<i64: 4, 96>}, {pipeline_mode = #tpu.pipeline_mode<synchronous>, transform_indices = @transform_3, window_bounds = array<i64: 32, 64>}, {pipeline_mode = #tpu.pipeline_mode<synchronous>, transform_indices = @transform_4, window_bounds = array<i64: 32, 32>}, {pipeline_mode = #tpu.pipeline_mode<synchronous>, transform_indices = @transform_5, window_bounds = array<i64: 1, 96>}, {pipeline_mode = #tpu.pipeline_mode<synchronous>, transform_indices = @transform_6, window_bounds = array<i64: 32, 96>}, {pipeline_mode = #tpu.pipeline_mode<synchronous>, transform_indices = @transform_7, window_bounds = array<i64: 32, 64>}, {pipeline_mode = #tpu.pipeline_mode<synchronous>, transform_indices = @transform_8, window_bounds = array<i64: 32, 32>}, {pipeline_mode = #tpu.pipeline_mode<synchronous>, transform_indices = @transform_9, window_bounds = array<i64: 1, 96>}, {pipeline_mode = #tpu.pipeline_mode<synchronous>, transform_indices = @transform_10, window_bounds = array<i64: 2, 32, 32>}, {pipeline_mode = #tpu.pipeline_mode<synchronous>, transform_indices = @transform_11, window_bounds = array<i64: 8, 32, 32>}]} {
    %c0 = arith.constant 0 : index
    %c0_0 = arith.constant 0 : index
    %0 = vector.load %arg1[%c0, %c0_0] : memref<32x32xbf16, #tpu.memory_space<vmem>>, vector<32x32xbf16>
    %c0_1 = arith.constant 0 : index
    %c0_2 = arith.constant 0 : index
    %1 = vector.load %arg4[%c0_1, %c0_2] : memref<32x64xbf16, #tpu.memory_space<vmem>>, vector<32x64xbf16>
    %c0_3 = arith.constant 0 : index
    %c0_4 = arith.constant 0 : index
    %2 = vector.load %arg5[%c0_3, %c0_4] : memref<32x32xbf16, #tpu.memory_space<vmem>>, vector<32x32xbf16>
    %c0_5 = arith.constant 0 : index
    %c0_6 = arith.constant 0 : index
    %3 = vector.load %arg7[%c0_5, %c0_6] : memref<32x96xbf16, #tpu.memory_space<vmem>>, vector<32x96xbf16>
    %c0_7 = arith.constant 0 : index
    %c0_8 = arith.constant 0 : index
    %4 = vector.load %arg8[%c0_7, %c0_8] : memref<32x64xbf16, #tpu.memory_space<vmem>>, vector<32x64xbf16>
    %c0_9 = arith.constant 0 : index
    %c0_10 = arith.constant 0 : index
    %5 = vector.load %arg9[%c0_9, %c0_10] : memref<32x32xbf16, #tpu.memory_space<vmem>>, vector<32x32xbf16>
    %c0_11 = arith.constant 0 : index
    %c0_12 = arith.constant 0 : index
    %6 = vector.load %arg6[%c0_11, %c0_12] : memref<1x96xf32, #tpu.memory_space<vmem>>, vector<1x96xf32>
    %c0_13 = arith.constant 0 : index
    %c0_14 = arith.constant 0 : index
    %7 = vector.load %arg10[%c0_13, %c0_14] : memref<1x96xf32, #tpu.memory_space<vmem>>, vector<1x96xf32>
    %c0_15 = arith.constant 0 : index
    %c0_16 = arith.constant 0 : index
    %8 = vector.load %arg2[%c0_15, %c0_16] : memref<256x4xbf16, #tpu.memory_space<vmem>>, vector<256x4xbf16>
    %c0_17 = arith.constant 0 : index
    %c0_18 = arith.constant 0 : index
    %9 = vector.load %arg3[%c0_17, %c0_18] : memref<4x96xbf16, #tpu.memory_space<vmem>>, vector<4x96xbf16>
    %cst = arith.constant dense<0.000000e+00> : vector<256x96xf32>
    %10 = tpu.matmul %8, %9, %cst {dimension_numbers = #tpu.dot_dimension_numbers<[1], [0], [0], [1], [0, 0, 1, 1], [], []>} : vector<256x4xbf16>, vector<4x96xbf16>, vector<256x96xf32> -> vector<256x96xf32>
    %11 = arith.truncf %10 : vector<256x96xf32> to vector<256x96xbf16>
    %12 = vector.extract_strided_slice %11 {offsets = [0, 0], sizes = [32, 96], strides = [1, 1]} : vector<256x96xbf16> to vector<32x96xbf16>
    %cst_19 = arith.constant dense<0.000000e+00> : vector<32x96xf32>
    %13 = tpu.matmul %0, %12, %cst_19 {dimension_numbers = #tpu.dot_dimension_numbers<[1], [0], [0], [1], [0, 0, 1, 1], [], []>} : vector<32x32xbf16>, vector<32x96xbf16>, vector<32x96xf32> -> vector<32x96xf32>
    %14 = vector.broadcast %6 : vector<1x96xf32> to vector<32x96xf32>
    %15 = arith.addf %13, %14 : vector<32x96xf32>
    %c0_20 = arith.constant 0 : index
    %c0_21 = arith.constant 0 : index
    %16 = vector.load %arg13[%c0_20, %c0_21] : memref<256x96xf32, #tpu.memory_space<vmem>>, vector<32x96xf32>
    tpu.vector_store %arg13[%c0_20, %c0_21], %15 {strides = array<i32>} : memref<256x96xf32, #tpu.memory_space<vmem>>, vector<32x96xf32>,
    %17 = vector.extract_strided_slice %11 {offsets = [32, 0], sizes = [32, 96], strides = [1, 1]} : vector<256x96xbf16> to vector<32x96xbf16>
    %cst_22 = arith.constant dense<0.000000e+00> : vector<32x96xf32>
    %18 = tpu.matmul %0, %17, %cst_22 {dimension_numbers = #tpu.dot_dimension_numbers<[1], [0], [0], [1], [0, 0, 1, 1], [], []>} : vector<32x32xbf16>, vector<32x96xbf16>, vector<32x96xf32> -> vector<32x96xf32>
    %19 = vector.broadcast %6 : vector<1x96xf32> to vector<32x96xf32>
    %20 = arith.addf %18, %19 : vector<32x96xf32>
    %c32 = arith.constant 32 : index
    %c0_23 = arith.constant 0 : index
    %21 = vector.load %arg13[%c32, %c0_23] : memref<256x96xf32, #tpu.memory_space<vmem>>, vector<32x96xf32>
    tpu.vector_store %arg13[%c32, %c0_23], %20 {strides = array<i32>} : memref<256x96xf32, #tpu.memory_space<vmem>>, vector<32x96xf32>,
    %22 = vector.extract_strided_slice %11 {offsets = [64, 0], sizes = [32, 96], strides = [1, 1]} : vector<256x96xbf16> to vector<32x96xbf16>
    %cst_24 = arith.constant dense<0.000000e+00> : vector<32x96xf32>
    %23 = tpu.matmul %0, %22, %cst_24 {dimension_numbers = #tpu.dot_dimension_numbers<[1], [0], [0], [1], [0, 0, 1, 1], [], []>} : vector<32x32xbf16>, vector<32x96xbf16>, vector<32x96xf32> -> vector<32x96xf32>
    %24 = vector.broadcast %6 : vector<1x96xf32> to vector<32x96xf32>
    %25 = arith.addf %23, %24 : vector<32x96xf32>
    %c64 = arith.constant 64 : index
    %c0_25 = arith.constant 0 : index
    %26 = vector.load %arg13[%c64, %c0_25] : memref<256x96xf32, #tpu.memory_space<vmem>>, vector<32x96xf32>
    tpu.vector_store %arg13[%c64, %c0_25], %25 {strides = array<i32>} : memref<256x96xf32, #tpu.memory_space<vmem>>, vector<32x96xf32>,
    %27 = vector.extract_strided_slice %11 {offsets = [96, 0], sizes = [32, 96], strides = [1, 1]} : vector<256x96xbf16> to vector<32x96xbf16>
    %cst_26 = arith.constant dense<0.000000e+00> : vector<32x96xf32>
    %28 = tpu.matmul %0, %27, %cst_26 {dimension_numbers = #tpu.dot_dimension_numbers<[1], [0], [0], [1], [0, 0, 1, 1], [], []>} : vector<32x32xbf16>, vector<32x96xbf16>, vector<32x96xf32> -> vector<32x96xf32>
    %29 = vector.broadcast %6 : vector<1x96xf32> to vector<32x96xf32>
    %30 = arith.addf %28, %29 : vector<32x96xf32>
    %c96 = arith.constant 96 : index
    %c0_27 = arith.constant 0 : index
    %31 = vector.load %arg13[%c96, %c0_27] : memref<256x96xf32, #tpu.memory_space<vmem>>, vector<32x96xf32>
    tpu.vector_store %arg13[%c96, %c0_27], %30 {strides = array<i32>} : memref<256x96xf32, #tpu.memory_space<vmem>>, vector<32x96xf32>,
    %32 = vector.extract_strided_slice %11 {offsets = [128, 0], sizes = [32, 96], strides = [1, 1]} : vector<256x96xbf16> to vector<32x96xbf16>
    %cst_28 = arith.constant dense<0.000000e+00> : vector<32x96xf32>
    %33 = tpu.matmul %0, %32, %cst_28 {dimension_numbers = #tpu.dot_dimension_numbers<[1], [0], [0], [1], [0, 0, 1, 1], [], []>} : vector<32x32xbf16>, vector<32x96xbf16>, vector<32x96xf32> -> vector<32x96xf32>
    %34 = vector.broadcast %6 : vector<1x96xf32> to vector<32x96xf32>
    %35 = arith.addf %33, %34 : vector<32x96xf32>
    %c128 = arith.constant 128 : index
    %c0_29 = arith.constant 0 : index
    %36 = vector.load %arg13[%c128, %c0_29] : memref<256x96xf32, #tpu.memory_space<vmem>>, vector<32x96xf32>
    tpu.vector_store %arg13[%c128, %c0_29], %35 {strides = array<i32>} : memref<256x96xf32, #tpu.memory_space<vmem>>, vector<32x96xf32>,
    %37 = vector.extract_strided_slice %11 {offsets = [160, 0], sizes = [32, 96], strides = [1, 1]} : vector<256x96xbf16> to vector<32x96xbf16>
    %cst_30 = arith.constant dense<0.000000e+00> : vector<32x96xf32>
    %38 = tpu.matmul %0, %37, %cst_30 {dimension_numbers = #tpu.dot_dimension_numbers<[1], [0], [0], [1], [0, 0, 1, 1], [], []>} : vector<32x32xbf16>, vector<32x96xbf16>, vector<32x96xf32> -> vector<32x96xf32>
    %39 = vector.broadcast %6 : vector<1x96xf32> to vector<32x96xf32>
    %40 = arith.addf %38, %39 : vector<32x96xf32>
    %c160 = arith.constant 160 : index
    %c0_31 = arith.constant 0 : index
    %41 = vector.load %arg13[%c160, %c0_31] : memref<256x96xf32, #tpu.memory_space<vmem>>, vector<32x96xf32>
    tpu.vector_store %arg13[%c160, %c0_31], %40 {strides = array<i32>} : memref<256x96xf32, #tpu.memory_space<vmem>>, vector<32x96xf32>,
    %42 = vector.extract_strided_slice %11 {offsets = [192, 0], sizes = [32, 96], strides = [1, 1]} : vector<256x96xbf16> to vector<32x96xbf16>
    %cst_32 = arith.constant dense<0.000000e+00> : vector<32x96xf32>
    %43 = tpu.matmul %0, %42, %cst_32 {dimension_numbers = #tpu.dot_dimension_numbers<[1], [0], [0], [1], [0, 0, 1, 1], [], []>} : vector<32x32xbf16>, vector<32x96xbf16>, vector<32x96xf32> -> vector<32x96xf32>
    %44 = vector.broadcast %6 : vector<1x96xf32> to vector<32x96xf32>
    %45 = arith.addf %43, %44 : vector<32x96xf32>
    %c192 = arith.constant 192 : index
    %c0_33 = arith.constant 0 : index
    %46 = vector.load %arg13[%c192, %c0_33] : memref<256x96xf32, #tpu.memory_space<vmem>>, vector<32x96xf32>
    tpu.vector_store %arg13[%c192, %c0_33], %45 {strides = array<i32>} : memref<256x96xf32, #tpu.memory_space<vmem>>, vector<32x96xf32>,
    %47 = vector.extract_strided_slice %11 {offsets = [224, 0], sizes = [32, 96], strides = [1, 1]} : vector<256x96xbf16> to vector<32x96xbf16>
    %cst_34 = arith.constant dense<0.000000e+00> : vector<32x96xf32>
    %48 = tpu.matmul %0, %47, %cst_34 {dimension_numbers = #tpu.dot_dimension_numbers<[1], [0], [0], [1], [0, 0, 1, 1], [], []>} : vector<32x32xbf16>, vector<32x96xbf16>, vector<32x96xf32> -> vector<32x96xf32>
    %49 = vector.broadcast %6 : vector<1x96xf32> to vector<32x96xf32>
    %50 = arith.addf %48, %49 : vector<32x96xf32>
    %c224 = arith.constant 224 : index
    %c0_35 = arith.constant 0 : index
    %51 = vector.load %arg13[%c224, %c0_35] : memref<256x96xf32, #tpu.memory_space<vmem>>, vector<32x96xf32>
    tpu.vector_store %arg13[%c224, %c0_35], %50 {strides = array<i32>} : memref<256x96xf32, #tpu.memory_space<vmem>>, vector<32x96xf32>,
    %cst_36 = arith.constant 0.000000e+00 : f32
    %52 = vector.broadcast %cst_36 : f32 to vector<32x32xf32>
    %cst_37 = arith.constant 0.000000e+00 : f32
    %53 = vector.broadcast %cst_37 : f32 to vector<32x32xf32>
    %c0_38 = arith.constant 0 : index
    %c0_39 = arith.constant 0 : index
    %54 = vector.load %arg13[%c0_38, %c0_39] : memref<256x96xf32, #tpu.memory_space<vmem>>, vector<32x96xf32>
    %55 = arith.truncf %52 : vector<32x32xf32> to vector<32x32xbf16>
    %cst_40 = arith.constant dense<0.000000e+00> : vector<32x32xf32>
    %56 = tpu.matmul %0, %55, %cst_40 {dimension_numbers = #tpu.dot_dimension_numbers<[1], [0], [0], [1], [0, 0, 1, 1], [], []>} : vector<32x32xbf16>, vector<32x32xbf16>, vector<32x32xf32> -> vector<32x32xf32>
    %57 = arith.truncf %56 : vector<32x32xf32> to vector<32x32xbf16>
    %cst_41 = arith.constant dense<0.000000e+00> : vector<32x64xf32>
    %58 = tpu.matmul %57, %1, %cst_41 {dimension_numbers = #tpu.dot_dimension_numbers<[1], [0], [0], [1], [0, 0, 1, 1], [], []>} : vector<32x32xbf16>, vector<32x64xbf16>, vector<32x64xf32> -> vector<32x64xf32>
    %59 = vector.extract_strided_slice %54 {offsets = [0, 0], sizes = [32, 64], strides = [1, 1]} : vector<32x96xf32> to vector<32x64xf32>
    %60 = arith.addf %59, %58 : vector<32x64xf32>
    %61 = arith.negf %60 : vector<32x64xf32>
    %62 = math.exp %61 : vector<32x64xf32>
    %cst_42 = arith.constant 1.000000e+00 : f32
    %63 = vector.broadcast %cst_42 : f32 to vector<32x64xf32>
    %64 = arith.addf %63, %62 : vector<32x64xf32>
    %65 = arith.divf %63, %64 : vector<32x64xf32>
    %66 = vector.extract_strided_slice %65 {offsets = [0, 0], sizes = [32, 32], strides = [1, 1]} : vector<32x64xf32> to vector<32x32xf32>
    %67 = vector.extract_strided_slice %65 {offsets = [0, 32], sizes = [32, 32], strides = [1, 1]} : vector<32x64xf32> to vector<32x32xf32>
    %68 = arith.mulf %66, %52 : vector<32x32xf32>
    %69 = arith.truncf %68 : vector<32x32xf32> to vector<32x32xbf16>
    %cst_43 = arith.constant dense<0.000000e+00> : vector<32x32xf32>
    %70 = tpu.matmul %0, %69, %cst_43 {dimension_numbers = #tpu.dot_dimension_numbers<[1], [0], [0], [1], [0, 0, 1, 1], [], []>} : vector<32x32xbf16>, vector<32x32xbf16>, vector<32x32xf32> -> vector<32x32xf32>
    %71 = arith.truncf %70 : vector<32x32xf32> to vector<32x32xbf16>
    %cst_44 = arith.constant dense<0.000000e+00> : vector<32x32xf32>
    %72 = tpu.matmul %71, %2, %cst_44 {dimension_numbers = #tpu.dot_dimension_numbers<[1], [0], [0], [1], [0, 0, 1, 1], [], []>} : vector<32x32xbf16>, vector<32x32xbf16>, vector<32x32xf32> -> vector<32x32xf32>
    %73 = vector.extract_strided_slice %54 {offsets = [0, 64], sizes = [32, 32], strides = [1, 1]} : vector<32x96xf32> to vector<32x32xf32>
    %74 = arith.addf %73, %72 : vector<32x32xf32>
    %75 = math.tanh %74 : vector<32x32xf32>
    %76 = arith.mulf %67, %52 : vector<32x32xf32>
    %cst_45 = arith.constant 1.000000e+00 : f32
    %77 = vector.broadcast %cst_45 : f32 to vector<32x32xf32>
    %78 = arith.subf %77, %67 : vector<32x32xf32>
    %79 = arith.mulf %78, %75 : vector<32x32xf32>
    %80 = arith.addf %76, %79 : vector<32x32xf32>
    %81 = arith.truncf %80 : vector<32x32xf32> to vector<32x32xbf16>
    %cst_46 = arith.constant dense<0.000000e+00> : vector<32x96xf32>
    %82 = tpu.matmul %81, %3, %cst_46 {dimension_numbers = #tpu.dot_dimension_numbers<[1], [0], [0], [1], [0, 0, 1, 1], [], []>} : vector<32x32xbf16>, vector<32x96xbf16>, vector<32x96xf32> -> vector<32x96xf32>
    %83 = arith.truncf %82 : vector<32x96xf32> to vector<32x96xbf16>
    %cst_47 = arith.constant dense<0.000000e+00> : vector<32x96xf32>
    %84 = tpu.matmul %0, %83, %cst_47 {dimension_numbers = #tpu.dot_dimension_numbers<[1], [0], [0], [1], [0, 0, 1, 1], [], []>} : vector<32x32xbf16>, vector<32x96xbf16>, vector<32x96xf32> -> vector<32x96xf32>
    %85 = vector.broadcast %7 : vector<1x96xf32> to vector<32x96xf32>
    %86 = arith.addf %84, %85 : vector<32x96xf32>
    %c32_48 = arith.constant 32 : index
    %c0_49 = arith.constant 0 : index
    %87 = vector.load %arg13[%c32_48, %c0_49] : memref<256x96xf32, #tpu.memory_space<vmem>>, vector<32x96xf32>
    %88 = arith.truncf %80 : vector<32x32xf32> to vector<32x32xbf16>
    %cst_50 = arith.constant dense<0.000000e+00> : vector<32x32xf32>
    %89 = tpu.matmul %0, %88, %cst_50 {dimension_numbers = #tpu.dot_dimension_numbers<[1], [0], [0], [1], [0, 0, 1, 1], [], []>} : vector<32x32xbf16>, vector<32x32xbf16>, vector<32x32xf32> -> vector<32x32xf32>
    %90 = arith.truncf %89 : vector<32x32xf32> to vector<32x32xbf16>
    %cst_51 = arith.constant dense<0.000000e+00> : vector<32x64xf32>
    %91 = tpu.matmul %90, %1, %cst_51 {dimension_numbers = #tpu.dot_dimension_numbers<[1], [0], [0], [1], [0, 0, 1, 1], [], []>} : vector<32x32xbf16>, vector<32x64xbf16>, vector<32x64xf32> -> vector<32x64xf32>
    %92 = vector.extract_strided_slice %87 {offsets = [0, 0], sizes = [32, 64], strides = [1, 1]} : vector<32x96xf32> to vector<32x64xf32>
    %93 = arith.addf %92, %91 : vector<32x64xf32>
    %94 = arith.negf %93 : vector<32x64xf32>
    %95 = math.exp %94 : vector<32x64xf32>
    %cst_52 = arith.constant 1.000000e+00 : f32
    %96 = vector.broadcast %cst_52 : f32 to vector<32x64xf32>
    %97 = arith.addf %96, %95 : vector<32x64xf32>
    %98 = arith.divf %96, %97 : vector<32x64xf32>
    %99 = vector.extract_strided_slice %98 {offsets = [0, 0], sizes = [32, 32], strides = [1, 1]} : vector<32x64xf32> to vector<32x32xf32>
    %100 = vector.extract_strided_slice %98 {offsets = [0, 32], sizes = [32, 32], strides = [1, 1]} : vector<32x64xf32> to vector<32x32xf32>
    %101 = arith.mulf %99, %80 : vector<32x32xf32>
    %102 = arith.truncf %101 : vector<32x32xf32> to vector<32x32xbf16>
    %cst_53 = arith.constant dense<0.000000e+00> : vector<32x32xf32>
    %103 = tpu.matmul %0, %102, %cst_53 {dimension_numbers = #tpu.dot_dimension_numbers<[1], [0], [0], [1], [0, 0, 1, 1], [], []>} : vector<32x32xbf16>, vector<32x32xbf16>, vector<32x32xf32> -> vector<32x32xf32>
    %104 = arith.truncf %103 : vector<32x32xf32> to vector<32x32xbf16>
    %cst_54 = arith.constant dense<0.000000e+00> : vector<32x32xf32>
    %105 = tpu.matmul %104, %2, %cst_54 {dimension_numbers = #tpu.dot_dimension_numbers<[1], [0], [0], [1], [0, 0, 1, 1], [], []>} : vector<32x32xbf16>, vector<32x32xbf16>, vector<32x32xf32> -> vector<32x32xf32>
    %106 = vector.extract_strided_slice %87 {offsets = [0, 64], sizes = [32, 32], strides = [1, 1]} : vector<32x96xf32> to vector<32x32xf32>
    %107 = arith.addf %106, %105 : vector<32x32xf32>
    %108 = math.tanh %107 : vector<32x32xf32>
    %109 = arith.mulf %100, %80 : vector<32x32xf32>
    %cst_55 = arith.constant 1.000000e+00 : f32
    %110 = vector.broadcast %cst_55 : f32 to vector<32x32xf32>
    %111 = arith.subf %110, %100 : vector<32x32xf32>
    %112 = arith.mulf %111, %108 : vector<32x32xf32>
    %113 = arith.addf %109, %112 : vector<32x32xf32>
    %114 = arith.truncf %53 : vector<32x32xf32> to vector<32x32xbf16>
    %cst_56 = arith.constant dense<0.000000e+00> : vector<32x32xf32>
    %115 = tpu.matmul %0, %114, %cst_56 {dimension_numbers = #tpu.dot_dimension_numbers<[1], [0], [0], [1], [0, 0, 1, 1], [], []>} : vector<32x32xbf16>, vector<32x32xbf16>, vector<32x32xf32> -> vector<32x32xf32>
    %116 = arith.truncf %115 : vector<32x32xf32> to vector<32x32xbf16>
    %cst_57 = arith.constant dense<0.000000e+00> : vector<32x64xf32>
    %117 = tpu.matmul %116, %4, %cst_57 {dimension_numbers = #tpu.dot_dimension_numbers<[1], [0], [0], [1], [0, 0, 1, 1], [], []>} : vector<32x32xbf16>, vector<32x64xbf16>, vector<32x64xf32> -> vector<32x64xf32>
    %118 = vector.extract_strided_slice %86 {offsets = [0, 0], sizes = [32, 64], strides = [1, 1]} : vector<32x96xf32> to vector<32x64xf32>
    %119 = arith.addf %118, %117 : vector<32x64xf32>
    %120 = arith.negf %119 : vector<32x64xf32>
    %121 = math.exp %120 : vector<32x64xf32>
    %cst_58 = arith.constant 1.000000e+00 : f32
    %122 = vector.broadcast %cst_58 : f32 to vector<32x64xf32>
    %123 = arith.addf %122, %121 : vector<32x64xf32>
    %124 = arith.divf %122, %123 : vector<32x64xf32>
    %125 = vector.extract_strided_slice %124 {offsets = [0, 0], sizes = [32, 32], strides = [1, 1]} : vector<32x64xf32> to vector<32x32xf32>
    %126 = vector.extract_strided_slice %124 {offsets = [0, 32], sizes = [32, 32], strides = [1, 1]} : vector<32x64xf32> to vector<32x32xf32>
    %127 = arith.mulf %125, %53 : vector<32x32xf32>
    %128 = arith.truncf %127 : vector<32x32xf32> to vector<32x32xbf16>
    %cst_59 = arith.constant dense<0.000000e+00> : vector<32x32xf32>
    %129 = tpu.matmul %0, %128, %cst_59 {dimension_numbers = #tpu.dot_dimension_numbers<[1], [0], [0], [1], [0, 0, 1, 1], [], []>} : vector<32x32xbf16>, vector<32x32xbf16>, vector<32x32xf32> -> vector<32x32xf32>
    %130 = arith.truncf %129 : vector<32x32xf32> to vector<32x32xbf16>
    %cst_60 = arith.constant dense<0.000000e+00> : vector<32x32xf32>
    %131 = tpu.matmul %130, %5, %cst_60 {dimension_numbers = #tpu.dot_dimension_numbers<[1], [0], [0], [1], [0, 0, 1, 1], [], []>} : vector<32x32xbf16>, vector<32x32xbf16>, vector<32x32xf32> -> vector<32x32xf32>
    %132 = vector.extract_strided_slice %86 {offsets = [0, 64], sizes = [32, 32], strides = [1, 1]} : vector<32x96xf32> to vector<32x32xf32>
    %133 = arith.addf %132, %131 : vector<32x32xf32>
    %134 = math.tanh %133 : vector<32x32xf32>
    %135 = arith.mulf %126, %53 : vector<32x32xf32>
    %cst_61 = arith.constant 1.000000e+00 : f32
    %136 = vector.broadcast %cst_61 : f32 to vector<32x32xf32>
    %137 = arith.subf %136, %126 : vector<32x32xf32>
    %138 = arith.mulf %137, %134 : vector<32x32xf32>
    %139 = arith.addf %135, %138 : vector<32x32xf32>
    %c0_62 = arith.constant 0 : index
    %c0_63 = arith.constant 0 : index
    %c0_64 = arith.constant 0 : index
    %140 = vector.load %arg12[%c0_62, %c0_63, %c0_64] : memref<8x32x32xf32, #tpu.memory_space<vmem>>, vector<1x32x32xf32>
    %141 = vector.shape_cast %140 : vector<1x32x32xf32> to vector<32x32xf32>
    %142 = vector.shape_cast %139 : vector<32x32xf32> to vector<1x32x32xf32>
    tpu.vector_store %arg12[%c0_62, %c0_63, %c0_64], %142 {strides = array<i32>} : memref<8x32x32xf32, #tpu.memory_space<vmem>>, vector<1x32x32xf32>,
    %143 = arith.truncf %113 : vector<32x32xf32> to vector<32x32xbf16>
    %cst_65 = arith.constant dense<0.000000e+00> : vector<32x96xf32>
    %144 = tpu.matmul %143, %3, %cst_65 {dimension_numbers = #tpu.dot_dimension_numbers<[1], [0], [0], [1], [0, 0, 1, 1], [], []>} : vector<32x32xbf16>, vector<32x96xbf16>, vector<32x96xf32> -> vector<32x96xf32>
    %145 = arith.truncf %144 : vector<32x96xf32> to vector<32x96xbf16>
    %cst_66 = arith.constant dense<0.000000e+00> : vector<32x96xf32>
    %146 = tpu.matmul %0, %145, %cst_66 {dimension_numbers = #tpu.dot_dimension_numbers<[1], [0], [0], [1], [0, 0, 1, 1], [], []>} : vector<32x32xbf16>, vector<32x96xbf16>, vector<32x96xf32> -> vector<32x96xf32>
    %147 = vector.broadcast %7 : vector<1x96xf32> to vector<32x96xf32>
    %148 = arith.addf %146, %147 : vector<32x96xf32>
    %c64_67 = arith.constant 64 : index
    %c0_68 = arith.constant 0 : index
    %149 = vector.load %arg13[%c64_67, %c0_68] : memref<256x96xf32, #tpu.memory_space<vmem>>, vector<32x96xf32>
    %150 = arith.truncf %113 : vector<32x32xf32> to vector<32x32xbf16>
    %cst_69 = arith.constant dense<0.000000e+00> : vector<32x32xf32>
    %151 = tpu.matmul %0, %150, %cst_69 {dimension_numbers = #tpu.dot_dimension_numbers<[1], [0], [0], [1], [0, 0, 1, 1], [], []>} : vector<32x32xbf16>, vector<32x32xbf16>, vector<32x32xf32> -> vector<32x32xf32>
    %152 = arith.truncf %151 : vector<32x32xf32> to vector<32x32xbf16>
    %cst_70 = arith.constant dense<0.000000e+00> : vector<32x64xf32>
    %153 = tpu.matmul %152, %1, %cst_70 {dimension_numbers = #tpu.dot_dimension_numbers<[1], [0], [0], [1], [0, 0, 1, 1], [], []>} : vector<32x32xbf16>, vector<32x64xbf16>, vector<32x64xf32> -> vector<32x64xf32>
    %154 = vector.extract_strided_slice %149 {offsets = [0, 0], sizes = [32, 64], strides = [1, 1]} : vector<32x96xf32> to vector<32x64xf32>
    %155 = arith.addf %154, %153 : vector<32x64xf32>
    %156 = arith.negf %155 : vector<32x64xf32>
    %157 = math.exp %156 : vector<32x64xf32>
    %cst_71 = arith.constant 1.000000e+00 : f32
    %158 = vector.broadcast %cst_71 : f32 to vector<32x64xf32>
    %159 = arith.addf %158, %157 : vector<32x64xf32>
    %160 = arith.divf %158, %159 : vector<32x64xf32>
    %161 = vector.extract_strided_slice %160 {offsets = [0, 0], sizes = [32, 32], strides = [1, 1]} : vector<32x64xf32> to vector<32x32xf32>
    %162 = vector.extract_strided_slice %160 {offsets = [0, 32], sizes = [32, 32], strides = [1, 1]} : vector<32x64xf32> to vector<32x32xf32>
    %163 = arith.mulf %161, %113 : vector<32x32xf32>
    %164 = arith.truncf %163 : vector<32x32xf32> to vector<32x32xbf16>
    %cst_72 = arith.constant dense<0.000000e+00> : vector<32x32xf32>
    %165 = tpu.matmul %0, %164, %cst_72 {dimension_numbers = #tpu.dot_dimension_numbers<[1], [0], [0], [1], [0, 0, 1, 1], [], []>} : vector<32x32xbf16>, vector<32x32xbf16>, vector<32x32xf32> -> vector<32x32xf32>
    %166 = arith.truncf %165 : vector<32x32xf32> to vector<32x32xbf16>
    %cst_73 = arith.constant dense<0.000000e+00> : vector<32x32xf32>
    %167 = tpu.matmul %166, %2, %cst_73 {dimension_numbers = #tpu.dot_dimension_numbers<[1], [0], [0], [1], [0, 0, 1, 1], [], []>} : vector<32x32xbf16>, vector<32x32xbf16>, vector<32x32xf32> -> vector<32x32xf32>
    %168 = vector.extract_strided_slice %149 {offsets = [0, 64], sizes = [32, 32], strides = [1, 1]} : vector<32x96xf32> to vector<32x32xf32>
    %169 = arith.addf %168, %167 : vector<32x32xf32>
    %170 = math.tanh %169 : vector<32x32xf32>
    %171 = arith.mulf %162, %113 : vector<32x32xf32>
    %cst_74 = arith.constant 1.000000e+00 : f32
    %172 = vector.broadcast %cst_74 : f32 to vector<32x32xf32>
    %173 = arith.subf %172, %162 : vector<32x32xf32>
    %174 = arith.mulf %173, %170 : vector<32x32xf32>
    %175 = arith.addf %171, %174 : vector<32x32xf32>
    %176 = arith.truncf %139 : vector<32x32xf32> to vector<32x32xbf16>
    %cst_75 = arith.constant dense<0.000000e+00> : vector<32x32xf32>
    %177 = tpu.matmul %0, %176, %cst_75 {dimension_numbers = #tpu.dot_dimension_numbers<[1], [0], [0], [1], [0, 0, 1, 1], [], []>} : vector<32x32xbf16>, vector<32x32xbf16>, vector<32x32xf32> -> vector<32x32xf32>
    %178 = arith.truncf %177 : vector<32x32xf32> to vector<32x32xbf16>
    %cst_76 = arith.constant dense<0.000000e+00> : vector<32x64xf32>
    %179 = tpu.matmul %178, %4, %cst_76 {dimension_numbers = #tpu.dot_dimension_numbers<[1], [0], [0], [1], [0, 0, 1, 1], [], []>} : vector<32x32xbf16>, vector<32x64xbf16>, vector<32x64xf32> -> vector<32x64xf32>
    %180 = vector.extract_strided_slice %148 {offsets = [0, 0], sizes = [32, 64], strides = [1, 1]} : vector<32x96xf32> to vector<32x64xf32>
    %181 = arith.addf %180, %179 : vector<32x64xf32>
    %182 = arith.negf %181 : vector<32x64xf32>
    %183 = math.exp %182 : vector<32x64xf32>
    %cst_77 = arith.constant 1.000000e+00 : f32
    %184 = vector.broadcast %cst_77 : f32 to vector<32x64xf32>
    %185 = arith.addf %184, %183 : vector<32x64xf32>
    %186 = arith.divf %184, %185 : vector<32x64xf32>
    %187 = vector.extract_strided_slice %186 {offsets = [0, 0], sizes = [32, 32], strides = [1, 1]} : vector<32x64xf32> to vector<32x32xf32>
    %188 = vector.extract_strided_slice %186 {offsets = [0, 32], sizes = [32, 32], strides = [1, 1]} : vector<32x64xf32> to vector<32x32xf32>
    %189 = arith.mulf %187, %139 : vector<32x32xf32>
    %190 = arith.truncf %189 : vector<32x32xf32> to vector<32x32xbf16>
    %cst_78 = arith.constant dense<0.000000e+00> : vector<32x32xf32>
    %191 = tpu.matmul %0, %190, %cst_78 {dimension_numbers = #tpu.dot_dimension_numbers<[1], [0], [0], [1], [0, 0, 1, 1], [], []>} : vector<32x32xbf16>, vector<32x32xbf16>, vector<32x32xf32> -> vector<32x32xf32>
    %192 = arith.truncf %191 : vector<32x32xf32> to vector<32x32xbf16>
    %cst_79 = arith.constant dense<0.000000e+00> : vector<32x32xf32>
    %193 = tpu.matmul %192, %5, %cst_79 {dimension_numbers = #tpu.dot_dimension_numbers<[1], [0], [0], [1], [0, 0, 1, 1], [], []>} : vector<32x32xbf16>, vector<32x32xbf16>, vector<32x32xf32> -> vector<32x32xf32>
    %194 = vector.extract_strided_slice %148 {offsets = [0, 64], sizes = [32, 32], strides = [1, 1]} : vector<32x96xf32> to vector<32x32xf32>
    %195 = arith.addf %194, %193 : vector<32x32xf32>
    %196 = math.tanh %195 : vector<32x32xf32>
    %197 = arith.mulf %188, %139 : vector<32x32xf32>
    %cst_80 = arith.constant 1.000000e+00 : f32
    %198 = vector.broadcast %cst_80 : f32 to vector<32x32xf32>
    %199 = arith.subf %198, %188 : vector<32x32xf32>
    %200 = arith.mulf %199, %196 : vector<32x32xf32>
    %201 = arith.addf %197, %200 : vector<32x32xf32>
    %c1 = arith.constant 1 : index
    %c0_81 = arith.constant 0 : index
    %c0_82 = arith.constant 0 : index
    %202 = vector.load %arg12[%c1, %c0_81, %c0_82] : memref<8x32x32xf32, #tpu.memory_space<vmem>>, vector<1x32x32xf32>
    %203 = vector.shape_cast %202 : vector<1x32x32xf32> to vector<32x32xf32>
    %204 = vector.shape_cast %201 : vector<32x32xf32> to vector<1x32x32xf32>
    tpu.vector_store %arg12[%c1, %c0_81, %c0_82], %204 {strides = array<i32>} : memref<8x32x32xf32, #tpu.memory_space<vmem>>, vector<1x32x32xf32>,
    %205 = arith.truncf %175 : vector<32x32xf32> to vector<32x32xbf16>
    %cst_83 = arith.constant dense<0.000000e+00> : vector<32x96xf32>
    %206 = tpu.matmul %205, %3, %cst_83 {dimension_numbers = #tpu.dot_dimension_numbers<[1], [0], [0], [1], [0, 0, 1, 1], [], []>} : vector<32x32xbf16>, vector<32x96xbf16>, vector<32x96xf32> -> vector<32x96xf32>
    %207 = arith.truncf %206 : vector<32x96xf32> to vector<32x96xbf16>
    %cst_84 = arith.constant dense<0.000000e+00> : vector<32x96xf32>
    %208 = tpu.matmul %0, %207, %cst_84 {dimension_numbers = #tpu.dot_dimension_numbers<[1], [0], [0], [1], [0, 0, 1, 1], [], []>} : vector<32x32xbf16>, vector<32x96xbf16>, vector<32x96xf32> -> vector<32x96xf32>
    %209 = vector.broadcast %7 : vector<1x96xf32> to vector<32x96xf32>
    %210 = arith.addf %208, %209 : vector<32x96xf32>
    %c96_85 = arith.constant 96 : index
    %c0_86 = arith.constant 0 : index
    %211 = vector.load %arg13[%c96_85, %c0_86] : memref<256x96xf32, #tpu.memory_space<vmem>>, vector<32x96xf32>
    %212 = arith.truncf %175 : vector<32x32xf32> to vector<32x32xbf16>
    %cst_87 = arith.constant dense<0.000000e+00> : vector<32x32xf32>
    %213 = tpu.matmul %0, %212, %cst_87 {dimension_numbers = #tpu.dot_dimension_numbers<[1], [0], [0], [1], [0, 0, 1, 1], [], []>} : vector<32x32xbf16>, vector<32x32xbf16>, vector<32x32xf32> -> vector<32x32xf32>
    %214 = arith.truncf %213 : vector<32x32xf32> to vector<32x32xbf16>
    %cst_88 = arith.constant dense<0.000000e+00> : vector<32x64xf32>
    %215 = tpu.matmul %214, %1, %cst_88 {dimension_numbers = #tpu.dot_dimension_numbers<[1], [0], [0], [1], [0, 0, 1, 1], [], []>} : vector<32x32xbf16>, vector<32x64xbf16>, vector<32x64xf32> -> vector<32x64xf32>
    %216 = vector.extract_strided_slice %211 {offsets = [0, 0], sizes = [32, 64], strides = [1, 1]} : vector<32x96xf32> to vector<32x64xf32>
    %217 = arith.addf %216, %215 : vector<32x64xf32>
    %218 = arith.negf %217 : vector<32x64xf32>
    %219 = math.exp %218 : vector<32x64xf32>
    %cst_89 = arith.constant 1.000000e+00 : f32
    %220 = vector.broadcast %cst_89 : f32 to vector<32x64xf32>
    %221 = arith.addf %220, %219 : vector<32x64xf32>
    %222 = arith.divf %220, %221 : vector<32x64xf32>
    %223 = vector.extract_strided_slice %222 {offsets = [0, 0], sizes = [32, 32], strides = [1, 1]} : vector<32x64xf32> to vector<32x32xf32>
    %224 = vector.extract_strided_slice %222 {offsets = [0, 32], sizes = [32, 32], strides = [1, 1]} : vector<32x64xf32> to vector<32x32xf32>
    %225 = arith.mulf %223, %175 : vector<32x32xf32>
    %226 = arith.truncf %225 : vector<32x32xf32> to vector<32x32xbf16>
    %cst_90 = arith.constant dense<0.000000e+00> : vector<32x32xf32>
    %227 = tpu.matmul %0, %226, %cst_90 {dimension_numbers = #tpu.dot_dimension_numbers<[1], [0], [0], [1], [0, 0, 1, 1], [], []>} : vector<32x32xbf16>, vector<32x32xbf16>, vector<32x32xf32> -> vector<32x32xf32>
    %228 = arith.truncf %227 : vector<32x32xf32> to vector<32x32xbf16>
    %cst_91 = arith.constant dense<0.000000e+00> : vector<32x32xf32>
    %229 = tpu.matmul %228, %2, %cst_91 {dimension_numbers = #tpu.dot_dimension_numbers<[1], [0], [0], [1], [0, 0, 1, 1], [], []>} : vector<32x32xbf16>, vector<32x32xbf16>, vector<32x32xf32> -> vector<32x32xf32>
    %230 = vector.extract_strided_slice %211 {offsets = [0, 64], sizes = [32, 32], strides = [1, 1]} : vector<32x96xf32> to vector<32x32xf32>
    %231 = arith.addf %230, %229 : vector<32x32xf32>
    %232 = math.tanh %231 : vector<32x32xf32>
    %233 = arith.mulf %224, %175 : vector<32x32xf32>
    %cst_92 = arith.constant 1.000000e+00 : f32
    %234 = vector.broadcast %cst_92 : f32 to vector<32x32xf32>
    %235 = arith.subf %234, %224 : vector<32x32xf32>
    %236 = arith.mulf %235, %232 : vector<32x32xf32>
    %237 = arith.addf %233, %236 : vector<32x32xf32>
    %238 = arith.truncf %201 : vector<32x32xf32> to vector<32x32xbf16>
    %cst_93 = arith.constant dense<0.000000e+00> : vector<32x32xf32>
    %239 = tpu.matmul %0, %238, %cst_93 {dimension_numbers = #tpu.dot_dimension_numbers<[1], [0], [0], [1], [0, 0, 1, 1], [], []>} : vector<32x32xbf16>, vector<32x32xbf16>, vector<32x32xf32> -> vector<32x32xf32>
    %240 = arith.truncf %239 : vector<32x32xf32> to vector<32x32xbf16>
    %cst_94 = arith.constant dense<0.000000e+00> : vector<32x64xf32>
    %241 = tpu.matmul %240, %4, %cst_94 {dimension_numbers = #tpu.dot_dimension_numbers<[1], [0], [0], [1], [0, 0, 1, 1], [], []>} : vector<32x32xbf16>, vector<32x64xbf16>, vector<32x64xf32> -> vector<32x64xf32>
    %242 = vector.extract_strided_slice %210 {offsets = [0, 0], sizes = [32, 64], strides = [1, 1]} : vector<32x96xf32> to vector<32x64xf32>
    %243 = arith.addf %242, %241 : vector<32x64xf32>
    %244 = arith.negf %243 : vector<32x64xf32>
    %245 = math.exp %244 : vector<32x64xf32>
    %cst_95 = arith.constant 1.000000e+00 : f32
    %246 = vector.broadcast %cst_95 : f32 to vector<32x64xf32>
    %247 = arith.addf %246, %245 : vector<32x64xf32>
    %248 = arith.divf %246, %247 : vector<32x64xf32>
    %249 = vector.extract_strided_slice %248 {offsets = [0, 0], sizes = [32, 32], strides = [1, 1]} : vector<32x64xf32> to vector<32x32xf32>
    %250 = vector.extract_strided_slice %248 {offsets = [0, 32], sizes = [32, 32], strides = [1, 1]} : vector<32x64xf32> to vector<32x32xf32>
    %251 = arith.mulf %249, %201 : vector<32x32xf32>
    %252 = arith.truncf %251 : vector<32x32xf32> to vector<32x32xbf16>
    %cst_96 = arith.constant dense<0.000000e+00> : vector<32x32xf32>
    %253 = tpu.matmul %0, %252, %cst_96 {dimension_numbers = #tpu.dot_dimension_numbers<[1], [0], [0], [1], [0, 0, 1, 1], [], []>} : vector<32x32xbf16>, vector<32x32xbf16>, vector<32x32xf32> -> vector<32x32xf32>
    %254 = arith.truncf %253 : vector<32x32xf32> to vector<32x32xbf16>
    %cst_97 = arith.constant dense<0.000000e+00> : vector<32x32xf32>
    %255 = tpu.matmul %254, %5, %cst_97 {dimension_numbers = #tpu.dot_dimension_numbers<[1], [0], [0], [1], [0, 0, 1, 1], [], []>} : vector<32x32xbf16>, vector<32x32xbf16>, vector<32x32xf32> -> vector<32x32xf32>
    %256 = vector.extract_strided_slice %210 {offsets = [0, 64], sizes = [32, 32], strides = [1, 1]} : vector<32x96xf32> to vector<32x32xf32>
    %257 = arith.addf %256, %255 : vector<32x32xf32>
    %258 = math.tanh %257 : vector<32x32xf32>
    %259 = arith.mulf %250, %201 : vector<32x32xf32>
    %cst_98 = arith.constant 1.000000e+00 : f32
    %260 = vector.broadcast %cst_98 : f32 to vector<32x32xf32>
    %261 = arith.subf %260, %250 : vector<32x32xf32>
    %262 = arith.mulf %261, %258 : vector<32x32xf32>
    %263 = arith.addf %259, %262 : vector<32x32xf32>
    %c2 = arith.constant 2 : index
    %c0_99 = arith.constant 0 : index
    %c0_100 = arith.constant 0 : index
    %264 = vector.load %arg12[%c2, %c0_99, %c0_100] : memref<8x32x32xf32, #tpu.memory_space<vmem>>, vector<1x32x32xf32>
    %265 = vector.shape_cast %264 : vector<1x32x32xf32> to vector<32x32xf32>
    %266 = vector.shape_cast %263 : vector<32x32xf32> to vector<1x32x32xf32>
    tpu.vector_store %arg12[%c2, %c0_99, %c0_100], %266 {strides = array<i32>} : memref<8x32x32xf32, #tpu.memory_space<vmem>>, vector<1x32x32xf32>,
    %267 = arith.truncf %237 : vector<32x32xf32> to vector<32x32xbf16>
    %cst_101 = arith.constant dense<0.000000e+00> : vector<32x96xf32>
    %268 = tpu.matmul %267, %3, %cst_101 {dimension_numbers = #tpu.dot_dimension_numbers<[1], [0], [0], [1], [0, 0, 1, 1], [], []>} : vector<32x32xbf16>, vector<32x96xbf16>, vector<32x96xf32> -> vector<32x96xf32>
    %269 = arith.truncf %268 : vector<32x96xf32> to vector<32x96xbf16>
    %cst_102 = arith.constant dense<0.000000e+00> : vector<32x96xf32>
    %270 = tpu.matmul %0, %269, %cst_102 {dimension_numbers = #tpu.dot_dimension_numbers<[1], [0], [0], [1], [0, 0, 1, 1], [], []>} : vector<32x32xbf16>, vector<32x96xbf16>, vector<32x96xf32> -> vector<32x96xf32>
    %271 = vector.broadcast %7 : vector<1x96xf32> to vector<32x96xf32>
    %272 = arith.addf %270, %271 : vector<32x96xf32>
    %c128_103 = arith.constant 128 : index
    %c0_104 = arith.constant 0 : index
    %273 = vector.load %arg13[%c128_103, %c0_104] : memref<256x96xf32, #tpu.memory_space<vmem>>, vector<32x96xf32>
    %274 = arith.truncf %237 : vector<32x32xf32> to vector<32x32xbf16>
    %cst_105 = arith.constant dense<0.000000e+00> : vector<32x32xf32>
    %275 = tpu.matmul %0, %274, %cst_105 {dimension_numbers = #tpu.dot_dimension_numbers<[1], [0], [0], [1], [0, 0, 1, 1], [], []>} : vector<32x32xbf16>, vector<32x32xbf16>, vector<32x32xf32> -> vector<32x32xf32>
    %276 = arith.truncf %275 : vector<32x32xf32> to vector<32x32xbf16>
    %cst_106 = arith.constant dense<0.000000e+00> : vector<32x64xf32>
    %277 = tpu.matmul %276, %1, %cst_106 {dimension_numbers = #tpu.dot_dimension_numbers<[1], [0], [0], [1], [0, 0, 1, 1], [], []>} : vector<32x32xbf16>, vector<32x64xbf16>, vector<32x64xf32> -> vector<32x64xf32>
    %278 = vector.extract_strided_slice %273 {offsets = [0, 0], sizes = [32, 64], strides = [1, 1]} : vector<32x96xf32> to vector<32x64xf32>
    %279 = arith.addf %278, %277 : vector<32x64xf32>
    %280 = arith.negf %279 : vector<32x64xf32>
    %281 = math.exp %280 : vector<32x64xf32>
    %cst_107 = arith.constant 1.000000e+00 : f32
    %282 = vector.broadcast %cst_107 : f32 to vector<32x64xf32>
    %283 = arith.addf %282, %281 : vector<32x64xf32>
    %284 = arith.divf %282, %283 : vector<32x64xf32>
    %285 = vector.extract_strided_slice %284 {offsets = [0, 0], sizes = [32, 32], strides = [1, 1]} : vector<32x64xf32> to vector<32x32xf32>
    %286 = vector.extract_strided_slice %284 {offsets = [0, 32], sizes = [32, 32], strides = [1, 1]} : vector<32x64xf32> to vector<32x32xf32>
    %287 = arith.mulf %285, %237 : vector<32x32xf32>
    %288 = arith.truncf %287 : vector<32x32xf32> to vector<32x32xbf16>
    %cst_108 = arith.constant dense<0.000000e+00> : vector<32x32xf32>
    %289 = tpu.matmul %0, %288, %cst_108 {dimension_numbers = #tpu.dot_dimension_numbers<[1], [0], [0], [1], [0, 0, 1, 1], [], []>} : vector<32x32xbf16>, vector<32x32xbf16>, vector<32x32xf32> -> vector<32x32xf32>
    %290 = arith.truncf %289 : vector<32x32xf32> to vector<32x32xbf16>
    %cst_109 = arith.constant dense<0.000000e+00> : vector<32x32xf32>
    %291 = tpu.matmul %290, %2, %cst_109 {dimension_numbers = #tpu.dot_dimension_numbers<[1], [0], [0], [1], [0, 0, 1, 1], [], []>} : vector<32x32xbf16>, vector<32x32xbf16>, vector<32x32xf32> -> vector<32x32xf32>
    %292 = vector.extract_strided_slice %273 {offsets = [0, 64], sizes = [32, 32], strides = [1, 1]} : vector<32x96xf32> to vector<32x32xf32>
    %293 = arith.addf %292, %291 : vector<32x32xf32>
    %294 = math.tanh %293 : vector<32x32xf32>
    %295 = arith.mulf %286, %237 : vector<32x32xf32>
    %cst_110 = arith.constant 1.000000e+00 : f32
    %296 = vector.broadcast %cst_110 : f32 to vector<32x32xf32>
    %297 = arith.subf %296, %286 : vector<32x32xf32>
    %298 = arith.mulf %297, %294 : vector<32x32xf32>
    %299 = arith.addf %295, %298 : vector<32x32xf32>
    %300 = arith.truncf %263 : vector<32x32xf32> to vector<32x32xbf16>
    %cst_111 = arith.constant dense<0.000000e+00> : vector<32x32xf32>
    %301 = tpu.matmul %0, %300, %cst_111 {dimension_numbers = #tpu.dot_dimension_numbers<[1], [0], [0], [1], [0, 0, 1, 1], [], []>} : vector<32x32xbf16>, vector<32x32xbf16>, vector<32x32xf32> -> vector<32x32xf32>
    %302 = arith.truncf %301 : vector<32x32xf32> to vector<32x32xbf16>
    %cst_112 = arith.constant dense<0.000000e+00> : vector<32x64xf32>
    %303 = tpu.matmul %302, %4, %cst_112 {dimension_numbers = #tpu.dot_dimension_numbers<[1], [0], [0], [1], [0, 0, 1, 1], [], []>} : vector<32x32xbf16>, vector<32x64xbf16>, vector<32x64xf32> -> vector<32x64xf32>
    %304 = vector.extract_strided_slice %272 {offsets = [0, 0], sizes = [32, 64], strides = [1, 1]} : vector<32x96xf32> to vector<32x64xf32>
    %305 = arith.addf %304, %303 : vector<32x64xf32>
    %306 = arith.negf %305 : vector<32x64xf32>
    %307 = math.exp %306 : vector<32x64xf32>
    %cst_113 = arith.constant 1.000000e+00 : f32
    %308 = vector.broadcast %cst_113 : f32 to vector<32x64xf32>
    %309 = arith.addf %308, %307 : vector<32x64xf32>
    %310 = arith.divf %308, %309 : vector<32x64xf32>
    %311 = vector.extract_strided_slice %310 {offsets = [0, 0], sizes = [32, 32], strides = [1, 1]} : vector<32x64xf32> to vector<32x32xf32>
    %312 = vector.extract_strided_slice %310 {offsets = [0, 32], sizes = [32, 32], strides = [1, 1]} : vector<32x64xf32> to vector<32x32xf32>
    %313 = arith.mulf %311, %263 : vector<32x32xf32>
    %314 = arith.truncf %313 : vector<32x32xf32> to vector<32x32xbf16>
    %cst_114 = arith.constant dense<0.000000e+00> : vector<32x32xf32>
    %315 = tpu.matmul %0, %314, %cst_114 {dimension_numbers = #tpu.dot_dimension_numbers<[1], [0], [0], [1], [0, 0, 1, 1], [], []>} : vector<32x32xbf16>, vector<32x32xbf16>, vector<32x32xf32> -> vector<32x32xf32>
    %316 = arith.truncf %315 : vector<32x32xf32> to vector<32x32xbf16>
    %cst_115 = arith.constant dense<0.000000e+00> : vector<32x32xf32>
    %317 = tpu.matmul %316, %5, %cst_115 {dimension_numbers = #tpu.dot_dimension_numbers<[1], [0], [0], [1], [0, 0, 1, 1], [], []>} : vector<32x32xbf16>, vector<32x32xbf16>, vector<32x32xf32> -> vector<32x32xf32>
    %318 = vector.extract_strided_slice %272 {offsets = [0, 64], sizes = [32, 32], strides = [1, 1]} : vector<32x96xf32> to vector<32x32xf32>
    %319 = arith.addf %318, %317 : vector<32x32xf32>
    %320 = math.tanh %319 : vector<32x32xf32>
    %321 = arith.mulf %312, %263 : vector<32x32xf32>
    %cst_116 = arith.constant 1.000000e+00 : f32
    %322 = vector.broadcast %cst_116 : f32 to vector<32x32xf32>
    %323 = arith.subf %322, %312 : vector<32x32xf32>
    %324 = arith.mulf %323, %320 : vector<32x32xf32>
    %325 = arith.addf %321, %324 : vector<32x32xf32>
    %c3 = arith.constant 3 : index
    %c0_117 = arith.constant 0 : index
    %c0_118 = arith.constant 0 : index
    %326 = vector.load %arg12[%c3, %c0_117, %c0_118] : memref<8x32x32xf32, #tpu.memory_space<vmem>>, vector<1x32x32xf32>
    %327 = vector.shape_cast %326 : vector<1x32x32xf32> to vector<32x32xf32>
    %328 = vector.shape_cast %325 : vector<32x32xf32> to vector<1x32x32xf32>
    tpu.vector_store %arg12[%c3, %c0_117, %c0_118], %328 {strides = array<i32>} : memref<8x32x32xf32, #tpu.memory_space<vmem>>, vector<1x32x32xf32>,
    %329 = arith.truncf %299 : vector<32x32xf32> to vector<32x32xbf16>
    %cst_119 = arith.constant dense<0.000000e+00> : vector<32x96xf32>
    %330 = tpu.matmul %329, %3, %cst_119 {dimension_numbers = #tpu.dot_dimension_numbers<[1], [0], [0], [1], [0, 0, 1, 1], [], []>} : vector<32x32xbf16>, vector<32x96xbf16>, vector<32x96xf32> -> vector<32x96xf32>
    %331 = arith.truncf %330 : vector<32x96xf32> to vector<32x96xbf16>
    %cst_120 = arith.constant dense<0.000000e+00> : vector<32x96xf32>
    %332 = tpu.matmul %0, %331, %cst_120 {dimension_numbers = #tpu.dot_dimension_numbers<[1], [0], [0], [1], [0, 0, 1, 1], [], []>} : vector<32x32xbf16>, vector<32x96xbf16>, vector<32x96xf32> -> vector<32x96xf32>
    %333 = vector.broadcast %7 : vector<1x96xf32> to vector<32x96xf32>
    %334 = arith.addf %332, %333 : vector<32x96xf32>
    %c160_121 = arith.constant 160 : index
    %c0_122 = arith.constant 0 : index
    %335 = vector.load %arg13[%c160_121, %c0_122] : memref<256x96xf32, #tpu.memory_space<vmem>>, vector<32x96xf32>
    %336 = arith.truncf %299 : vector<32x32xf32> to vector<32x32xbf16>
    %cst_123 = arith.constant dense<0.000000e+00> : vector<32x32xf32>
    %337 = tpu.matmul %0, %336, %cst_123 {dimension_numbers = #tpu.dot_dimension_numbers<[1], [0], [0], [1], [0, 0, 1, 1], [], []>} : vector<32x32xbf16>, vector<32x32xbf16>, vector<32x32xf32> -> vector<32x32xf32>
    %338 = arith.truncf %337 : vector<32x32xf32> to vector<32x32xbf16>
    %cst_124 = arith.constant dense<0.000000e+00> : vector<32x64xf32>
    %339 = tpu.matmul %338, %1, %cst_124 {dimension_numbers = #tpu.dot_dimension_numbers<[1], [0], [0], [1], [0, 0, 1, 1], [], []>} : vector<32x32xbf16>, vector<32x64xbf16>, vector<32x64xf32> -> vector<32x64xf32>
    %340 = vector.extract_strided_slice %335 {offsets = [0, 0], sizes = [32, 64], strides = [1, 1]} : vector<32x96xf32> to vector<32x64xf32>
    %341 = arith.addf %340, %339 : vector<32x64xf32>
    %342 = arith.negf %341 : vector<32x64xf32>
    %343 = math.exp %342 : vector<32x64xf32>
    %cst_125 = arith.constant 1.000000e+00 : f32
    %344 = vector.broadcast %cst_125 : f32 to vector<32x64xf32>
    %345 = arith.addf %344, %343 : vector<32x64xf32>
    %346 = arith.divf %344, %345 : vector<32x64xf32>
    %347 = vector.extract_strided_slice %346 {offsets = [0, 0], sizes = [32, 32], strides = [1, 1]} : vector<32x64xf32> to vector<32x32xf32>
    %348 = vector.extract_strided_slice %346 {offsets = [0, 32], sizes = [32, 32], strides = [1, 1]} : vector<32x64xf32> to vector<32x32xf32>
    %349 = arith.mulf %347, %299 : vector<32x32xf32>
    %350 = arith.truncf %349 : vector<32x32xf32> to vector<32x32xbf16>
    %cst_126 = arith.constant dense<0.000000e+00> : vector<32x32xf32>
    %351 = tpu.matmul %0, %350, %cst_126 {dimension_numbers = #tpu.dot_dimension_numbers<[1], [0], [0], [1], [0, 0, 1, 1], [], []>} : vector<32x32xbf16>, vector<32x32xbf16>, vector<32x32xf32> -> vector<32x32xf32>
    %352 = arith.truncf %351 : vector<32x32xf32> to vector<32x32xbf16>
    %cst_127 = arith.constant dense<0.000000e+00> : vector<32x32xf32>
    %353 = tpu.matmul %352, %2, %cst_127 {dimension_numbers = #tpu.dot_dimension_numbers<[1], [0], [0], [1], [0, 0, 1, 1], [], []>} : vector<32x32xbf16>, vector<32x32xbf16>, vector<32x32xf32> -> vector<32x32xf32>
    %354 = vector.extract_strided_slice %335 {offsets = [0, 64], sizes = [32, 32], strides = [1, 1]} : vector<32x96xf32> to vector<32x32xf32>
    %355 = arith.addf %354, %353 : vector<32x32xf32>
    %356 = math.tanh %355 : vector<32x32xf32>
    %357 = arith.mulf %348, %299 : vector<32x32xf32>
    %cst_128 = arith.constant 1.000000e+00 : f32
    %358 = vector.broadcast %cst_128 : f32 to vector<32x32xf32>
    %359 = arith.subf %358, %348 : vector<32x32xf32>
    %360 = arith.mulf %359, %356 : vector<32x32xf32>
    %361 = arith.addf %357, %360 : vector<32x32xf32>
    %362 = arith.truncf %325 : vector<32x32xf32> to vector<32x32xbf16>
    %cst_129 = arith.constant dense<0.000000e+00> : vector<32x32xf32>
    %363 = tpu.matmul %0, %362, %cst_129 {dimension_numbers = #tpu.dot_dimension_numbers<[1], [0], [0], [1], [0, 0, 1, 1], [], []>} : vector<32x32xbf16>, vector<32x32xbf16>, vector<32x32xf32> -> vector<32x32xf32>
    %364 = arith.truncf %363 : vector<32x32xf32> to vector<32x32xbf16>
    %cst_130 = arith.constant dense<0.000000e+00> : vector<32x64xf32>
    %365 = tpu.matmul %364, %4, %cst_130 {dimension_numbers = #tpu.dot_dimension_numbers<[1], [0], [0], [1], [0, 0, 1, 1], [], []>} : vector<32x32xbf16>, vector<32x64xbf16>, vector<32x64xf32> -> vector<32x64xf32>
    %366 = vector.extract_strided_slice %334 {offsets = [0, 0], sizes = [32, 64], strides = [1, 1]} : vector<32x96xf32> to vector<32x64xf32>
    %367 = arith.addf %366, %365 : vector<32x64xf32>
    %368 = arith.negf %367 : vector<32x64xf32>
    %369 = math.exp %368 : vector<32x64xf32>
    %cst_131 = arith.constant 1.000000e+00 : f32
    %370 = vector.broadcast %cst_131 : f32 to vector<32x64xf32>
    %371 = arith.addf %370, %369 : vector<32x64xf32>
    %372 = arith.divf %370, %371 : vector<32x64xf32>
    %373 = vector.extract_strided_slice %372 {offsets = [0, 0], sizes = [32, 32], strides = [1, 1]} : vector<32x64xf32> to vector<32x32xf32>
    %374 = vector.extract_strided_slice %372 {offsets = [0, 32], sizes = [32, 32], strides = [1, 1]} : vector<32x64xf32> to vector<32x32xf32>
    %375 = arith.mulf %373, %325 : vector<32x32xf32>
    %376 = arith.truncf %375 : vector<32x32xf32> to vector<32x32xbf16>
    %cst_132 = arith.constant dense<0.000000e+00> : vector<32x32xf32>
    %377 = tpu.matmul %0, %376, %cst_132 {dimension_numbers = #tpu.dot_dimension_numbers<[1], [0], [0], [1], [0, 0, 1, 1], [], []>} : vector<32x32xbf16>, vector<32x32xbf16>, vector<32x32xf32> -> vector<32x32xf32>
    %378 = arith.truncf %377 : vector<32x32xf32> to vector<32x32xbf16>
    %cst_133 = arith.constant dense<0.000000e+00> : vector<32x32xf32>
    %379 = tpu.matmul %378, %5, %cst_133 {dimension_numbers = #tpu.dot_dimension_numbers<[1], [0], [0], [1], [0, 0, 1, 1], [], []>} : vector<32x32xbf16>, vector<32x32xbf16>, vector<32x32xf32> -> vector<32x32xf32>
    %380 = vector.extract_strided_slice %334 {offsets = [0, 64], sizes = [32, 32], strides = [1, 1]} : vector<32x96xf32> to vector<32x32xf32>
    %381 = arith.addf %380, %379 : vector<32x32xf32>
    %382 = math.tanh %381 : vector<32x32xf32>
    %383 = arith.mulf %374, %325 : vector<32x32xf32>
    %cst_134 = arith.constant 1.000000e+00 : f32
    %384 = vector.broadcast %cst_134 : f32 to vector<32x32xf32>
    %385 = arith.subf %384, %374 : vector<32x32xf32>
    %386 = arith.mulf %385, %382 : vector<32x32xf32>
    %387 = arith.addf %383, %386 : vector<32x32xf32>
    %c4 = arith.constant 4 : index
    %c0_135 = arith.constant 0 : index
    %c0_136 = arith.constant 0 : index
    %388 = vector.load %arg12[%c4, %c0_135, %c0_136] : memref<8x32x32xf32, #tpu.memory_space<vmem>>, vector<1x32x32xf32>
    %389 = vector.shape_cast %388 : vector<1x32x32xf32> to vector<32x32xf32>
    %390 = vector.shape_cast %387 : vector<32x32xf32> to vector<1x32x32xf32>
    tpu.vector_store %arg12[%c4, %c0_135, %c0_136], %390 {strides = array<i32>} : memref<8x32x32xf32, #tpu.memory_space<vmem>>, vector<1x32x32xf32>,
    %391 = arith.truncf %361 : vector<32x32xf32> to vector<32x32xbf16>
    %cst_137 = arith.constant dense<0.000000e+00> : vector<32x96xf32>
    %392 = tpu.matmul %391, %3, %cst_137 {dimension_numbers = #tpu.dot_dimension_numbers<[1], [0], [0], [1], [0, 0, 1, 1], [], []>} : vector<32x32xbf16>, vector<32x96xbf16>, vector<32x96xf32> -> vector<32x96xf32>
    %393 = arith.truncf %392 : vector<32x96xf32> to vector<32x96xbf16>
    %cst_138 = arith.constant dense<0.000000e+00> : vector<32x96xf32>
    %394 = tpu.matmul %0, %393, %cst_138 {dimension_numbers = #tpu.dot_dimension_numbers<[1], [0], [0], [1], [0, 0, 1, 1], [], []>} : vector<32x32xbf16>, vector<32x96xbf16>, vector<32x96xf32> -> vector<32x96xf32>
    %395 = vector.broadcast %7 : vector<1x96xf32> to vector<32x96xf32>
    %396 = arith.addf %394, %395 : vector<32x96xf32>
    %c192_139 = arith.constant 192 : index
    %c0_140 = arith.constant 0 : index
    %397 = vector.load %arg13[%c192_139, %c0_140] : memref<256x96xf32, #tpu.memory_space<vmem>>, vector<32x96xf32>
    %398 = arith.truncf %361 : vector<32x32xf32> to vector<32x32xbf16>
    %cst_141 = arith.constant dense<0.000000e+00> : vector<32x32xf32>
    %399 = tpu.matmul %0, %398, %cst_141 {dimension_numbers = #tpu.dot_dimension_numbers<[1], [0], [0], [1], [0, 0, 1, 1], [], []>} : vector<32x32xbf16>, vector<32x32xbf16>, vector<32x32xf32> -> vector<32x32xf32>
    %400 = arith.truncf %399 : vector<32x32xf32> to vector<32x32xbf16>
    %cst_142 = arith.constant dense<0.000000e+00> : vector<32x64xf32>
    %401 = tpu.matmul %400, %1, %cst_142 {dimension_numbers = #tpu.dot_dimension_numbers<[1], [0], [0], [1], [0, 0, 1, 1], [], []>} : vector<32x32xbf16>, vector<32x64xbf16>, vector<32x64xf32> -> vector<32x64xf32>
    %402 = vector.extract_strided_slice %397 {offsets = [0, 0], sizes = [32, 64], strides = [1, 1]} : vector<32x96xf32> to vector<32x64xf32>
    %403 = arith.addf %402, %401 : vector<32x64xf32>
    %404 = arith.negf %403 : vector<32x64xf32>
    %405 = math.exp %404 : vector<32x64xf32>
    %cst_143 = arith.constant 1.000000e+00 : f32
    %406 = vector.broadcast %cst_143 : f32 to vector<32x64xf32>
    %407 = arith.addf %406, %405 : vector<32x64xf32>
    %408 = arith.divf %406, %407 : vector<32x64xf32>
    %409 = vector.extract_strided_slice %408 {offsets = [0, 0], sizes = [32, 32], strides = [1, 1]} : vector<32x64xf32> to vector<32x32xf32>
    %410 = vector.extract_strided_slice %408 {offsets = [0, 32], sizes = [32, 32], strides = [1, 1]} : vector<32x64xf32> to vector<32x32xf32>
    %411 = arith.mulf %409, %361 : vector<32x32xf32>
    %412 = arith.truncf %411 : vector<32x32xf32> to vector<32x32xbf16>
    %cst_144 = arith.constant dense<0.000000e+00> : vector<32x32xf32>
    %413 = tpu.matmul %0, %412, %cst_144 {dimension_numbers = #tpu.dot_dimension_numbers<[1], [0], [0], [1], [0, 0, 1, 1], [], []>} : vector<32x32xbf16>, vector<32x32xbf16>, vector<32x32xf32> -> vector<32x32xf32>
    %414 = arith.truncf %413 : vector<32x32xf32> to vector<32x32xbf16>
    %cst_145 = arith.constant dense<0.000000e+00> : vector<32x32xf32>
    %415 = tpu.matmul %414, %2, %cst_145 {dimension_numbers = #tpu.dot_dimension_numbers<[1], [0], [0], [1], [0, 0, 1, 1], [], []>} : vector<32x32xbf16>, vector<32x32xbf16>, vector<32x32xf32> -> vector<32x32xf32>
    %416 = vector.extract_strided_slice %397 {offsets = [0, 64], sizes = [32, 32], strides = [1, 1]} : vector<32x96xf32> to vector<32x32xf32>
    %417 = arith.addf %416, %415 : vector<32x32xf32>
    %418 = math.tanh %417 : vector<32x32xf32>
    %419 = arith.mulf %410, %361 : vector<32x32xf32>
    %cst_146 = arith.constant 1.000000e+00 : f32
    %420 = vector.broadcast %cst_146 : f32 to vector<32x32xf32>
    %421 = arith.subf %420, %410 : vector<32x32xf32>
    %422 = arith.mulf %421, %418 : vector<32x32xf32>
    %423 = arith.addf %419, %422 : vector<32x32xf32>
    %424 = arith.truncf %387 : vector<32x32xf32> to vector<32x32xbf16>
    %cst_147 = arith.constant dense<0.000000e+00> : vector<32x32xf32>
    %425 = tpu.matmul %0, %424, %cst_147 {dimension_numbers = #tpu.dot_dimension_numbers<[1], [0], [0], [1], [0, 0, 1, 1], [], []>} : vector<32x32xbf16>, vector<32x32xbf16>, vector<32x32xf32> -> vector<32x32xf32>
    %426 = arith.truncf %425 : vector<32x32xf32> to vector<32x32xbf16>
    %cst_148 = arith.constant dense<0.000000e+00> : vector<32x64xf32>
    %427 = tpu.matmul %426, %4, %cst_148 {dimension_numbers = #tpu.dot_dimension_numbers<[1], [0], [0], [1], [0, 0, 1, 1], [], []>} : vector<32x32xbf16>, vector<32x64xbf16>, vector<32x64xf32> -> vector<32x64xf32>
    %428 = vector.extract_strided_slice %396 {offsets = [0, 0], sizes = [32, 64], strides = [1, 1]} : vector<32x96xf32> to vector<32x64xf32>
    %429 = arith.addf %428, %427 : vector<32x64xf32>
    %430 = arith.negf %429 : vector<32x64xf32>
    %431 = math.exp %430 : vector<32x64xf32>
    %cst_149 = arith.constant 1.000000e+00 : f32
    %432 = vector.broadcast %cst_149 : f32 to vector<32x64xf32>
    %433 = arith.addf %432, %431 : vector<32x64xf32>
    %434 = arith.divf %432, %433 : vector<32x64xf32>
    %435 = vector.extract_strided_slice %434 {offsets = [0, 0], sizes = [32, 32], strides = [1, 1]} : vector<32x64xf32> to vector<32x32xf32>
    %436 = vector.extract_strided_slice %434 {offsets = [0, 32], sizes = [32, 32], strides = [1, 1]} : vector<32x64xf32> to vector<32x32xf32>
    %437 = arith.mulf %435, %387 : vector<32x32xf32>
    %438 = arith.truncf %437 : vector<32x32xf32> to vector<32x32xbf16>
    %cst_150 = arith.constant dense<0.000000e+00> : vector<32x32xf32>
    %439 = tpu.matmul %0, %438, %cst_150 {dimension_numbers = #tpu.dot_dimension_numbers<[1], [0], [0], [1], [0, 0, 1, 1], [], []>} : vector<32x32xbf16>, vector<32x32xbf16>, vector<32x32xf32> -> vector<32x32xf32>
    %440 = arith.truncf %439 : vector<32x32xf32> to vector<32x32xbf16>
    %cst_151 = arith.constant dense<0.000000e+00> : vector<32x32xf32>
    %441 = tpu.matmul %440, %5, %cst_151 {dimension_numbers = #tpu.dot_dimension_numbers<[1], [0], [0], [1], [0, 0, 1, 1], [], []>} : vector<32x32xbf16>, vector<32x32xbf16>, vector<32x32xf32> -> vector<32x32xf32>
    %442 = vector.extract_strided_slice %396 {offsets = [0, 64], sizes = [32, 32], strides = [1, 1]} : vector<32x96xf32> to vector<32x32xf32>
    %443 = arith.addf %442, %441 : vector<32x32xf32>
    %444 = math.tanh %443 : vector<32x32xf32>
    %445 = arith.mulf %436, %387 : vector<32x32xf32>
    %cst_152 = arith.constant 1.000000e+00 : f32
    %446 = vector.broadcast %cst_152 : f32 to vector<32x32xf32>
    %447 = arith.subf %446, %436 : vector<32x32xf32>
    %448 = arith.mulf %447, %444 : vector<32x32xf32>
    %449 = arith.addf %445, %448 : vector<32x32xf32>
    %c5 = arith.constant 5 : index
    %c0_153 = arith.constant 0 : index
    %c0_154 = arith.constant 0 : index
    %450 = vector.load %arg12[%c5, %c0_153, %c0_154] : memref<8x32x32xf32, #tpu.memory_space<vmem>>, vector<1x32x32xf32>
    %451 = vector.shape_cast %450 : vector<1x32x32xf32> to vector<32x32xf32>
    %452 = vector.shape_cast %449 : vector<32x32xf32> to vector<1x32x32xf32>
    tpu.vector_store %arg12[%c5, %c0_153, %c0_154], %452 {strides = array<i32>} : memref<8x32x32xf32, #tpu.memory_space<vmem>>, vector<1x32x32xf32>,
    %453 = arith.truncf %423 : vector<32x32xf32> to vector<32x32xbf16>
    %cst_155 = arith.constant dense<0.000000e+00> : vector<32x96xf32>
    %454 = tpu.matmul %453, %3, %cst_155 {dimension_numbers = #tpu.dot_dimension_numbers<[1], [0], [0], [1], [0, 0, 1, 1], [], []>} : vector<32x32xbf16>, vector<32x96xbf16>, vector<32x96xf32> -> vector<32x96xf32>
    %455 = arith.truncf %454 : vector<32x96xf32> to vector<32x96xbf16>
    %cst_156 = arith.constant dense<0.000000e+00> : vector<32x96xf32>
    %456 = tpu.matmul %0, %455, %cst_156 {dimension_numbers = #tpu.dot_dimension_numbers<[1], [0], [0], [1], [0, 0, 1, 1], [], []>} : vector<32x32xbf16>, vector<32x96xbf16>, vector<32x96xf32> -> vector<32x96xf32>
    %457 = vector.broadcast %7 : vector<1x96xf32> to vector<32x96xf32>
    %458 = arith.addf %456, %457 : vector<32x96xf32>
    %c224_157 = arith.constant 224 : index
    %c0_158 = arith.constant 0 : index
    %459 = vector.load %arg13[%c224_157, %c0_158] : memref<256x96xf32, #tpu.memory_space<vmem>>, vector<32x96xf32>
    %460 = arith.truncf %423 : vector<32x32xf32> to vector<32x32xbf16>
    %cst_159 = arith.constant dense<0.000000e+00> : vector<32x32xf32>
    %461 = tpu.matmul %0, %460, %cst_159 {dimension_numbers = #tpu.dot_dimension_numbers<[1], [0], [0], [1], [0, 0, 1, 1], [], []>} : vector<32x32xbf16>, vector<32x32xbf16>, vector<32x32xf32> -> vector<32x32xf32>
    %462 = arith.truncf %461 : vector<32x32xf32> to vector<32x32xbf16>
    %cst_160 = arith.constant dense<0.000000e+00> : vector<32x64xf32>
    %463 = tpu.matmul %462, %1, %cst_160 {dimension_numbers = #tpu.dot_dimension_numbers<[1], [0], [0], [1], [0, 0, 1, 1], [], []>} : vector<32x32xbf16>, vector<32x64xbf16>, vector<32x64xf32> -> vector<32x64xf32>
    %464 = vector.extract_strided_slice %459 {offsets = [0, 0], sizes = [32, 64], strides = [1, 1]} : vector<32x96xf32> to vector<32x64xf32>
    %465 = arith.addf %464, %463 : vector<32x64xf32>
    %466 = arith.negf %465 : vector<32x64xf32>
    %467 = math.exp %466 : vector<32x64xf32>
    %cst_161 = arith.constant 1.000000e+00 : f32
    %468 = vector.broadcast %cst_161 : f32 to vector<32x64xf32>
    %469 = arith.addf %468, %467 : vector<32x64xf32>
    %470 = arith.divf %468, %469 : vector<32x64xf32>
    %471 = vector.extract_strided_slice %470 {offsets = [0, 0], sizes = [32, 32], strides = [1, 1]} : vector<32x64xf32> to vector<32x32xf32>
    %472 = vector.extract_strided_slice %470 {offsets = [0, 32], sizes = [32, 32], strides = [1, 1]} : vector<32x64xf32> to vector<32x32xf32>
    %473 = arith.mulf %471, %423 : vector<32x32xf32>
    %474 = arith.truncf %473 : vector<32x32xf32> to vector<32x32xbf16>
    %cst_162 = arith.constant dense<0.000000e+00> : vector<32x32xf32>
    %475 = tpu.matmul %0, %474, %cst_162 {dimension_numbers = #tpu.dot_dimension_numbers<[1], [0], [0], [1], [0, 0, 1, 1], [], []>} : vector<32x32xbf16>, vector<32x32xbf16>, vector<32x32xf32> -> vector<32x32xf32>
    %476 = arith.truncf %475 : vector<32x32xf32> to vector<32x32xbf16>
    %cst_163 = arith.constant dense<0.000000e+00> : vector<32x32xf32>
    %477 = tpu.matmul %476, %2, %cst_163 {dimension_numbers = #tpu.dot_dimension_numbers<[1], [0], [0], [1], [0, 0, 1, 1], [], []>} : vector<32x32xbf16>, vector<32x32xbf16>, vector<32x32xf32> -> vector<32x32xf32>
    %478 = vector.extract_strided_slice %459 {offsets = [0, 64], sizes = [32, 32], strides = [1, 1]} : vector<32x96xf32> to vector<32x32xf32>
    %479 = arith.addf %478, %477 : vector<32x32xf32>
    %480 = math.tanh %479 : vector<32x32xf32>
    %481 = arith.mulf %472, %423 : vector<32x32xf32>
    %cst_164 = arith.constant 1.000000e+00 : f32
    %482 = vector.broadcast %cst_164 : f32 to vector<32x32xf32>
    %483 = arith.subf %482, %472 : vector<32x32xf32>
    %484 = arith.mulf %483, %480 : vector<32x32xf32>
    %485 = arith.addf %481, %484 : vector<32x32xf32>
    %486 = arith.truncf %449 : vector<32x32xf32> to vector<32x32xbf16>
    %cst_165 = arith.constant dense<0.000000e+00> : vector<32x32xf32>
    %487 = tpu.matmul %0, %486, %cst_165 {dimension_numbers = #tpu.dot_dimension_numbers<[1], [0], [0], [1], [0, 0, 1, 1], [], []>} : vector<32x32xbf16>, vector<32x32xbf16>, vector<32x32xf32> -> vector<32x32xf32>
    %488 = arith.truncf %487 : vector<32x32xf32> to vector<32x32xbf16>
    %cst_166 = arith.constant dense<0.000000e+00> : vector<32x64xf32>
    %489 = tpu.matmul %488, %4, %cst_166 {dimension_numbers = #tpu.dot_dimension_numbers<[1], [0], [0], [1], [0, 0, 1, 1], [], []>} : vector<32x32xbf16>, vector<32x64xbf16>, vector<32x64xf32> -> vector<32x64xf32>
    %490 = vector.extract_strided_slice %458 {offsets = [0, 0], sizes = [32, 64], strides = [1, 1]} : vector<32x96xf32> to vector<32x64xf32>
    %491 = arith.addf %490, %489 : vector<32x64xf32>
    %492 = arith.negf %491 : vector<32x64xf32>
    %493 = math.exp %492 : vector<32x64xf32>
    %cst_167 = arith.constant 1.000000e+00 : f32
    %494 = vector.broadcast %cst_167 : f32 to vector<32x64xf32>
    %495 = arith.addf %494, %493 : vector<32x64xf32>
    %496 = arith.divf %494, %495 : vector<32x64xf32>
    %497 = vector.extract_strided_slice %496 {offsets = [0, 0], sizes = [32, 32], strides = [1, 1]} : vector<32x64xf32> to vector<32x32xf32>
    %498 = vector.extract_strided_slice %496 {offsets = [0, 32], sizes = [32, 32], strides = [1, 1]} : vector<32x64xf32> to vector<32x32xf32>
    %499 = arith.mulf %497, %449 : vector<32x32xf32>
    %500 = arith.truncf %499 : vector<32x32xf32> to vector<32x32xbf16>
    %cst_168 = arith.constant dense<0.000000e+00> : vector<32x32xf32>
    %501 = tpu.matmul %0, %500, %cst_168 {dimension_numbers = #tpu.dot_dimension_numbers<[1], [0], [0], [1], [0, 0, 1, 1], [], []>} : vector<32x32xbf16>, vector<32x32xbf16>, vector<32x32xf32> -> vector<32x32xf32>
    %502 = arith.truncf %501 : vector<32x32xf32> to vector<32x32xbf16>
    %cst_169 = arith.constant dense<0.000000e+00> : vector<32x32xf32>
    %503 = tpu.matmul %502, %5, %cst_169 {dimension_numbers = #tpu.dot_dimension_numbers<[1], [0], [0], [1], [0, 0, 1, 1], [], []>} : vector<32x32xbf16>, vector<32x32xbf16>, vector<32x32xf32> -> vector<32x32xf32>
    %504 = vector.extract_strided_slice %458 {offsets = [0, 64], sizes = [32, 32], strides = [1, 1]} : vector<32x96xf32> to vector<32x32xf32>
    %505 = arith.addf %504, %503 : vector<32x32xf32>
    %506 = math.tanh %505 : vector<32x32xf32>
    %507 = arith.mulf %498, %449 : vector<32x32xf32>
    %cst_170 = arith.constant 1.000000e+00 : f32
    %508 = vector.broadcast %cst_170 : f32 to vector<32x32xf32>
    %509 = arith.subf %508, %498 : vector<32x32xf32>
    %510 = arith.mulf %509, %506 : vector<32x32xf32>
    %511 = arith.addf %507, %510 : vector<32x32xf32>
    %c6 = arith.constant 6 : index
    %c0_171 = arith.constant 0 : index
    %c0_172 = arith.constant 0 : index
    %512 = vector.load %arg12[%c6, %c0_171, %c0_172] : memref<8x32x32xf32, #tpu.memory_space<vmem>>, vector<1x32x32xf32>
    %513 = vector.shape_cast %512 : vector<1x32x32xf32> to vector<32x32xf32>
    %514 = vector.shape_cast %511 : vector<32x32xf32> to vector<1x32x32xf32>
    tpu.vector_store %arg12[%c6, %c0_171, %c0_172], %514 {strides = array<i32>} : memref<8x32x32xf32, #tpu.memory_space<vmem>>, vector<1x32x32xf32>,
    %515 = arith.truncf %485 : vector<32x32xf32> to vector<32x32xbf16>
    %cst_173 = arith.constant dense<0.000000e+00> : vector<32x96xf32>
    %516 = tpu.matmul %515, %3, %cst_173 {dimension_numbers = #tpu.dot_dimension_numbers<[1], [0], [0], [1], [0, 0, 1, 1], [], []>} : vector<32x32xbf16>, vector<32x96xbf16>, vector<32x96xf32> -> vector<32x96xf32>
    %517 = arith.truncf %516 : vector<32x96xf32> to vector<32x96xbf16>
    %cst_174 = arith.constant dense<0.000000e+00> : vector<32x96xf32>
    %518 = tpu.matmul %0, %517, %cst_174 {dimension_numbers = #tpu.dot_dimension_numbers<[1], [0], [0], [1], [0, 0, 1, 1], [], []>} : vector<32x32xbf16>, vector<32x96xbf16>, vector<32x96xf32> -> vector<32x96xf32>
    %519 = vector.broadcast %7 : vector<1x96xf32> to vector<32x96xf32>
    %520 = arith.addf %518, %519 : vector<32x96xf32>
    %521 = arith.truncf %511 : vector<32x32xf32> to vector<32x32xbf16>
    %cst_175 = arith.constant dense<0.000000e+00> : vector<32x32xf32>
    %522 = tpu.matmul %0, %521, %cst_175 {dimension_numbers = #tpu.dot_dimension_numbers<[1], [0], [0], [1], [0, 0, 1, 1], [], []>} : vector<32x32xbf16>, vector<32x32xbf16>, vector<32x32xf32> -> vector<32x32xf32>
    %523 = arith.truncf %522 : vector<32x32xf32> to vector<32x32xbf16>
    %cst_176 = arith.constant dense<0.000000e+00> : vector<32x64xf32>
    %524 = tpu.matmul %523, %4, %cst_176 {dimension_numbers = #tpu.dot_dimension_numbers<[1], [0], [0], [1], [0, 0, 1, 1], [], []>} : vector<32x32xbf16>, vector<32x64xbf16>, vector<32x64xf32> -> vector<32x64xf32>
    %525 = vector.extract_strided_slice %520 {offsets = [0, 0], sizes = [32, 64], strides = [1, 1]} : vector<32x96xf32> to vector<32x64xf32>
    %526 = arith.addf %525, %524 : vector<32x64xf32>
    %527 = arith.negf %526 : vector<32x64xf32>
    %528 = math.exp %527 : vector<32x64xf32>
    %cst_177 = arith.constant 1.000000e+00 : f32
    %529 = vector.broadcast %cst_177 : f32 to vector<32x64xf32>
    %530 = arith.addf %529, %528 : vector<32x64xf32>
    %531 = arith.divf %529, %530 : vector<32x64xf32>
    %532 = vector.extract_strided_slice %531 {offsets = [0, 0], sizes = [32, 32], strides = [1, 1]} : vector<32x64xf32> to vector<32x32xf32>
    %533 = vector.extract_strided_slice %531 {offsets = [0, 32], sizes = [32, 32], strides = [1, 1]} : vector<32x64xf32> to vector<32x32xf32>
    %534 = arith.mulf %532, %511 : vector<32x32xf32>
    %535 = arith.truncf %534 : vector<32x32xf32> to vector<32x32xbf16>
    %cst_178 = arith.constant dense<0.000000e+00> : vector<32x32xf32>
    %536 = tpu.matmul %0, %535, %cst_178 {dimension_numbers = #tpu.dot_dimension_numbers<[1], [0], [0], [1], [0, 0, 1, 1], [], []>} : vector<32x32xbf16>, vector<32x32xbf16>, vector<32x32xf32> -> vector<32x32xf32>
    %537 = arith.truncf %536 : vector<32x32xf32> to vector<32x32xbf16>
    %cst_179 = arith.constant dense<0.000000e+00> : vector<32x32xf32>
    %538 = tpu.matmul %537, %5, %cst_179 {dimension_numbers = #tpu.dot_dimension_numbers<[1], [0], [0], [1], [0, 0, 1, 1], [], []>} : vector<32x32xbf16>, vector<32x32xbf16>, vector<32x32xf32> -> vector<32x32xf32>
    %539 = vector.extract_strided_slice %520 {offsets = [0, 64], sizes = [32, 32], strides = [1, 1]} : vector<32x96xf32> to vector<32x32xf32>
    %540 = arith.addf %539, %538 : vector<32x32xf32>
    %541 = math.tanh %540 : vector<32x32xf32>
    %542 = arith.mulf %533, %511 : vector<32x32xf32>
    %cst_180 = arith.constant 1.000000e+00 : f32
    %543 = vector.broadcast %cst_180 : f32 to vector<32x32xf32>
    %544 = arith.subf %543, %533 : vector<32x32xf32>
    %545 = arith.mulf %544, %541 : vector<32x32xf32>
    %546 = arith.addf %542, %545 : vector<32x32xf32>
    %c7 = arith.constant 7 : index
    %c0_181 = arith.constant 0 : index
    %c0_182 = arith.constant 0 : index
    %547 = vector.load %arg12[%c7, %c0_181, %c0_182] : memref<8x32x32xf32, #tpu.memory_space<vmem>>, vector<1x32x32xf32>
    %548 = vector.shape_cast %547 : vector<1x32x32xf32> to vector<32x32xf32>
    %549 = vector.shape_cast %546 : vector<32x32xf32> to vector<1x32x32xf32>
    tpu.vector_store %arg12[%c7, %c0_181, %c0_182], %549 {strides = array<i32>} : memref<8x32x32xf32, #tpu.memory_space<vmem>>, vector<1x32x32xf32>,
    %c0_183 = arith.constant 0 : index
    %c0_184 = arith.constant 0 : index
    %c0_185 = arith.constant 0 : index
    %550 = vector.load %arg11[%c0_183, %c0_184, %c0_185] : memref<2x32x32xf32, #tpu.memory_space<vmem>>, vector<1x32x32xf32>
    %551 = vector.shape_cast %550 : vector<1x32x32xf32> to vector<32x32xf32>
    %552 = vector.shape_cast %485 : vector<32x32xf32> to vector<1x32x32xf32>
    tpu.vector_store %arg11[%c0_183, %c0_184, %c0_185], %552 {strides = array<i32>} : memref<2x32x32xf32, #tpu.memory_space<vmem>>, vector<1x32x32xf32>,
    %c1_186 = arith.constant 1 : index
    %c0_187 = arith.constant 0 : index
    %c0_188 = arith.constant 0 : index
    %553 = vector.load %arg11[%c1_186, %c0_187, %c0_188] : memref<2x32x32xf32, #tpu.memory_space<vmem>>, vector<1x32x32xf32>
    %554 = vector.shape_cast %553 : vector<1x32x32xf32> to vector<32x32xf32>
    %555 = vector.shape_cast %546 : vector<32x32xf32> to vector<1x32x32xf32>
    tpu.vector_store %arg11[%c1_186, %c0_187, %c0_188], %555 {strides = array<i32>} : memref<2x32x32xf32, #tpu.memory_space<vmem>>, vector<1x32x32xf32>,
    return
  }
  func.func @transform_0(%arg0: i32) -> (i32, i32) {
    %c0_i32 = arith.constant 0 : i32
    %c0_i32_0 = arith.constant 0 : i32
    %c0_i32_1 = arith.constant 0 : i32
    return %c0_i32, %c0_i32_0 : i32, i32
  }
  func.func @transform_1(%arg0: i32) -> (i32, i32) {
    %c0_i32 = arith.constant 0 : i32
    %c0_i32_0 = arith.constant 0 : i32
    %c0_i32_1 = arith.constant 0 : i32
    return %c0_i32, %c0_i32_0 : i32, i32
  }
  func.func @transform_2(%arg0: i32) -> (i32, i32) {
    %c0_i32 = arith.constant 0 : i32
    %c0_i32_0 = arith.constant 0 : i32
    %c0_i32_1 = arith.constant 0 : i32
    return %c0_i32, %c0_i32_0 : i32, i32
  }
  func.func @transform_3(%arg0: i32) -> (i32, i32) {
    %c0_i32 = arith.constant 0 : i32
    %c0_i32_0 = arith.constant 0 : i32
    %c0_i32_1 = arith.constant 0 : i32
    return %c0_i32, %c0_i32_0 : i32, i32
  }
  func.func @transform_4(%arg0: i32) -> (i32, i32) {
    %c0_i32 = arith.constant 0 : i32
    %c0_i32_0 = arith.constant 0 : i32
    %c0_i32_1 = arith.constant 0 : i32
    return %c0_i32, %c0_i32_0 : i32, i32
  }
  func.func @transform_5(%arg0: i32) -> (i32, i32) {
    %c0_i32 = arith.constant 0 : i32
    %c0_i32_0 = arith.constant 0 : i32
    %c0_i32_1 = arith.constant 0 : i32
    return %c0_i32, %c0_i32_0 : i32, i32
  }
  func.func @transform_6(%arg0: i32) -> (i32, i32) {
    %c0_i32 = arith.constant 0 : i32
    %c0_i32_0 = arith.constant 0 : i32
    %c0_i32_1 = arith.constant 0 : i32
    return %c0_i32, %c0_i32_0 : i32, i32
  }
  func.func @transform_7(%arg0: i32) -> (i32, i32) {
    %c0_i32 = arith.constant 0 : i32
    %c0_i32_0 = arith.constant 0 : i32
    %c0_i32_1 = arith.constant 0 : i32
    return %c0_i32, %c0_i32_0 : i32, i32
  }
  func.func @transform_8(%arg0: i32) -> (i32, i32) {
    %c0_i32 = arith.constant 0 : i32
    %c0_i32_0 = arith.constant 0 : i32
    %c0_i32_1 = arith.constant 0 : i32
    return %c0_i32, %c0_i32_0 : i32, i32
  }
  func.func @transform_9(%arg0: i32) -> (i32, i32) {
    %c0_i32 = arith.constant 0 : i32
    %c0_i32_0 = arith.constant 0 : i32
    %c0_i32_1 = arith.constant 0 : i32
    return %c0_i32, %c0_i32_0 : i32, i32
  }
  func.func @transform_10(%arg0: i32) -> (i32, i32, i32) {
    %c0_i32 = arith.constant 0 : i32
    %c0_i32_0 = arith.constant 0 : i32
    %c0_i32_1 = arith.constant 0 : i32
    %c0_i32_2 = arith.constant 0 : i32
    return %c0_i32, %c0_i32_0, %c0_i32_1 : i32, i32, i32
  }
  func.func @transform_11(%arg0: i32) -> (i32, i32, i32) {
    %c0_i32 = arith.constant 0 : i32
    %c0_i32_0 = arith.constant 0 : i32
    %c0_i32_1 = arith.constant 0 : i32
    %c0_i32_2 = arith.constant 0 : i32
    return %c0_i32, %c0_i32_0, %c0_i32_1 : i32, i32, i32
  }
}

</mosaic_0001>

<bundles_post_ra>
// kernel: tpu_custom_call.1
= control target key start
LH: loop header
LB: loop body
LE: loop exit
PB: predicated region body
PF: predicated region fallthrough
CT: control target
= control target key end

     0   :  { %17 = vsyncpa [#allocation4], 0  ;;  %vm228_vm0 = vcmask 1041408   ;;  %vm179_vm1 = vcmask 31744   ;;  %v8939_v5 = vmov 0   ;;  %vm425_vm2 = vcmask 261120   ;;  %s11197_s0 = inlined_call_operand.vmem [shape: bf16[32,32], index: 0, kind: input, shape index: {}]   ;;  %s11198_s1 = inlined_call_operand.vmem [shape: bf16[256,4], index: 1, kind: input, shape index: {}]   ;;  %s11199_s2 = inlined_call_operand.vmem [shape: bf16[4,96], index: 2, kind: input, shape index: {}]   ;;  %s11200_s3 = inlined_call_operand.vmem [shape: bf16[32,64], index: 3, kind: input, shape index: {}]   ;;  %s11201_s4 = inlined_call_operand.vmem [shape: bf16[32,32], index: 4, kind: input, shape index: {}]   ;;  %s11202_s5 = inlined_call_operand.vmem [shape: f32[1,96], index: 5, kind: input, shape index: {}]   ;;  %s11203_s6 = inlined_call_operand.vmem [shape: bf16[32,96], index: 6, kind: input, shape index: {}]   ;;  %s11204_s7 = inlined_call_operand.vmem [shape: bf16[32,64], index: 7, kind: input, shape index: {}]   ;;  %s11205_s8 = inlined_call_operand.vmem [shape: bf16[32,32], index: 8, kind: input, shape index: {}]   ;;  %s11206_s9 = inlined_call_operand.vmem [shape: f32[1,96], index: 9, kind: input, shape index: {}]   ;;  %s11207_s10 = inlined_call_operand.hbm [shape: f32[2,32,32], index: 10, kind: output, shape index: {0}]   ;;  %s11208_s11 = inlined_call_operand.hbm [shape: f32[8,32,32], index: 11, kind: output, shape index: {1}]  }
   0x1   :  { %v98_v0 = vld [vmem:[%s11199_s2] sm:$0x3]  ;;  %v8439_v3 = vld [vmem:[%s11198_s1 + $0x8] sm:$0xff]   ;;  %v8440_v4 = vld [vmem:[%s11198_s1 + $0x10] sm:$0xff]  }
   0x2   :  { %v8438_v1 = vld [vmem:[%s11198_s1] sm:$0xff]   ;;  %8430 = vmatprep.subr.msk.bf16.mxu0 %vm228_vm0, %v98_v0  ;;  %v230_v2 = vsel %vm228_vm0, %v98_v0, 0  ;;  %v8441_v6 = vld [vmem:[%s11198_s1 + $0x18] sm:$0xff]   ;;  %v8443_v8 = vld [vmem:[%s11198_s1 + $0x28] sm:$0xff]  }
   0x3   :  { %7703 = vmatpush3.bf16.msra.mxu0 %v230_v2  ;;  %7704 = vmatprep.mubr.msk.bf16.mxu0 %vm179_vm1, %v8438_v1  ;;  %v8442_v7 = vld [vmem:[%s11198_s1 + $0x20] sm:$0xff]   ;;  %v8444_v10 = vld [vmem:[%s11198_s1 + $0x30] sm:$0xff]   ;;  %v8445_v11 = vld [vmem:[%s11198_s1 + $0x38] sm:$0xff]  }
   0x4   :  { %7800 = vmatprep.subr.bf16.mxu0 %v8939_v5  ;;  %v9035_v9 = vld [vmem:[%s11197_s0] sm:$0xff]  }
   0x5   :  { %7740 = vmatprep.mubr.msk.bf16.mxu1 %vm425_vm2, %v9035_v9 }
   0x6   :  { %7705 = vmatmul.mubr.msk.bf16.vlgmr.msra.gmra.mrb[0].mxu0 %vm179_vm1, %v8439_v3 }
   0x7   :  { %7708 = vmatprep.mubr.msk.bf16.mxu0 %vm179_vm1, %v8440_v4  ;;  %7801 = vmatpush3.bf16.msra.mxu0 %v8939_v5 }
   0xe   :  { %7709 = vmatmul.mubr.msk.bf16.gmra.mrb[4].mxu0 %vm179_vm1, %v8441_v6 }
   0xf   :  { %7712 = vmatprep.mubr.msk.bf16.mxu0 %vm179_vm1, %v8442_v7 }
  0x16   :  { %7713 = vmatmul.mubr.msk.bf16.gmra.mrb[8].mxu0 %vm179_vm1, %v8443_v8 }
  0x17   :  { %7716 = vmatprep.mubr.msk.bf16.mxu0 %vm179_vm1, %v8444_v10 }
  0x18   :  { %18 = vsyncpa [#allocation6], 0  ;;  %v8446_v12 = vld [vmem:[%s11198_s1 + $0x40] sm:$0xff]   ;;  %v8447_v13 = vld [vmem:[%s11198_s1 + $0x48] sm:$0xff]   ;;  %vm481_vm3 = vcmask 785408   ;;  %s8940_s23 = smov 64  }
  0x19   :  { %v8448_v14 = vld [vmem:[%s11198_s1 + $0x50] sm:$0xff]   ;;  %v8449_v15 = vld [vmem:[%s11198_s1 + $0x58] sm:$0xff]   ;;  %v8450_v16 = vld [vmem:[%s11198_s1 + $0x60] sm:$0xff]   ;;  %s8941_s24 = smov 96  }
  0x1a   :  { %v8451_v17 = vld [vmem:[%s11198_s1 + $0x68] sm:$0xff]   ;;  %v8452_v18 = vld [vmem:[%s11198_s1 + $0x70] sm:$0xff]   ;;  %v8453_v19 = vld [vmem:[%s11198_s1 + $0x78] sm:$0xff]  }
  0x1b   :  { %v9085_v20 = vld [vmem:[%s11197_s0 + $0x8] sm:$0xff]   ;;  %v9122_v6 = vld [vmem:[%s11200_s3] sm:$0xff]  }
  0x1e   :  { %7717 = vmatmul.mubr.msk.bf16.gmra.mrb[12].mxu0 %vm179_vm1, %v8445_v11 }
  0x1f   :  { %7720 = vmatprep.mubr.msk.bf16.mxu0 %vm179_vm1, %v8446_v12 }
  0x26   :  { %7721 = vmatmul.mubr.msk.bf16.gmra.mrb[16].mxu0 %vm179_vm1, %v8447_v13  ;;  %v9132_v13 = vld [vmem:[%s11200_s3 + $0x8] sm:$0xff]  }
  0x27   :  { %7724 = vmatprep.mubr.msk.bf16.mxu0 %vm179_vm1, %v8448_v14  ;;  %v9146_v14 = vld [vmem:[%s11201_s4] sm:$0xff]  }
  0x2e   :  { %7725 = vmatmul.mubr.msk.bf16.gmra.mrb[20].mxu0 %vm179_vm1, %v8449_v15  ;;  %v9153_v15 = vld [vmem:[%s11202_s5] ss:$0 sm:$0xff] }
  0x2f   :  { %7728 = vmatprep.mubr.msk.bf16.mxu0 %vm179_vm1, %v8450_v16 }
  0x36   :  { %7729 = vmatmul.mubr.msk.bf16.gmra.mrb[24].mxu0 %vm179_vm1, %v8451_v17 }
  0x37   :  { %7732 = vmatprep.mubr.msk.bf16.mxu0 %vm179_vm1, %v8452_v18 }
  0x3e   :  { %7733 = vmatmul.mubr.msk.bf16.gmra.mrb[28].mxu0 %vm179_vm1, %v8453_v19 }
  0x3f   :  { %7802 = vmatprep.mubr.msk.bf16.mxu0 %vm425_vm2, %v9035_v9 }
  0x46   :  { %7803 = vmatmul.mubr.msk.bf16.vlgmr.msra.gmra.mrb[32].mxu0 %vm425_vm2, %v9085_v20 }
  0x47   :  { %7818 = vmatprep.mubr.msk.bf16.mxu0 %vm425_vm2, %v9035_v9 }
  0xd9   :  { %v7706_v21 = vpop.f32.mrb[0].mxu0 }
  0xda   :  { %v266_v22 = vpop.f32.mrb[1].mxu0 }
  0xdb   :  { %v7707_v23 = vpop.f32.mrb[2].mxu0 }
  0xdc   :  { %v394_v24 = vpack.c.bf16 %v7707_v23, %v7706_v21  ;;  %v269_v25 = vpop.f32.mrb[3].mxu0 }
  0xdd   :  { %v393_v26 = vpack.c.bf16 %v269_v25, %v266_v22 }
  0xdf   :  { %7736 = vmatprep.subr.bf16.mxu1 %v393_v26 }
  0xe0   :  { %7737 = vmatpush3.bf16.msra.mxu1 %v393_v26 }
  0xe1   :  { %v7710_v27 = vpop.f32.mrb[4].mxu0  ;;  %7738 = vmatprep.subr.bf16.mxu1 %v394_v24 }
  0xe2   :  { %v282_v28 = vpop.f32.mrb[5].mxu0 }
  0xe3   :  { %v7711_v29 = vpop.f32.mrb[6].mxu0 }
  0xe4   :  { %v396_v30 = vpack.c.bf16 %v7711_v29, %v7710_v27  ;;  %v285_v31 = vpop.f32.mrb[7].mxu0  ;;  %7739 = vmatpush3.bf16.msra.mxu1 %v394_v24 }
  0xe5   :  { %v395_v32 = vpack.c.bf16 %v285_v31, %v282_v28 }
  0xe7   :  { %7741 = vmatmul.mubr.msk.bf16.vlgmr.msra.gmra.mrb[0].mxu1 %vm425_vm2, %v9085_v20  ;;  %7744 = vmatprep.subr.bf16.mxu1 %v395_v32 }
  0xe8   :  { %7745 = vmatpush3.bf16.msra.mxu1 %v395_v32  ;;  %7748 = vmatprep.mubr.msk.bf16.mxu1 %vm425_vm2, %v9035_v9 }
  0xe9   :  { %v7714_v33 = vpop.f32.mrb[8].mxu0  ;;  %7746 = vmatprep.subr.bf16.mxu1 %v396_v30 }
  0xea   :  { %v298_v34 = vpop.f32.mrb[9].mxu0 }
  0xeb   :  { %v7715_v35 = vpop.f32.mrb[10].mxu0 }
  0xec   :  { %v398_v36 = vpack.c.bf16 %v7715_v35, %v7714_v33  ;;  %v301_v37 = vpop.f32.mrb[11].mxu0  ;;  %7747 = vmatpush3.bf16.msra.mxu1 %v396_v30 }
  0xed   :  { %v397_v38 = vpack.c.bf16 %v301_v37, %v298_v34 }
  0xef   :  { %7749 = vmatmul.mubr.msk.bf16.vlgmr.msra.gmra.mrb[4].mxu1 %vm425_vm2, %v9085_v20  ;;  %7752 = vmatprep.subr.bf16.mxu1 %v397_v38 }
  0xf0   :  { %7753 = vmatpush3.bf16.msra.mxu1 %v397_v38  ;;  %7756 = vmatprep.mubr.msk.bf16.mxu1 %vm425_vm2, %v9035_v9 }
  0xf1   :  { %v7718_v39 = vpop.f32.mrb[12].mxu0  ;;  %7754 = vmatprep.subr.bf16.mxu1 %v398_v36 }
  0xf2   :  { %v314_v40 = vpop.f32.mrb[13].mxu0 }
  0xf3   :  { %v7719_v41 = vpop.f32.mrb[14].mxu0 }
  0xf4   :  { %v400_v42 = vpack.c.bf16 %v7719_v41, %v7718_v39  ;;  %v317_v43 = vpop.f32.mrb[15].mxu0  ;;  %7755 = vmatpush3.bf16.msra.mxu1 %v398_v36 }
  0xf5   :  { %v399_v44 = vpack.c.bf16 %v317_v43, %v314_v40 }
  0xf7   :  { %7757 = vmatmul.mubr.msk.bf16.vlgmr.msra.gmra.mrb[8].mxu1 %vm425_vm2, %v9085_v20  ;;  %7760 = vmatprep.subr.bf16.mxu1 %v399_v44 }
  0xf8   :  { %7761 = vmatpush3.bf16.msra.mxu1 %v399_v44  ;;  %7764 = vmatprep.mubr.msk.bf16.mxu1 %vm425_vm2, %v9035_v9 }
  0xf9   :  { %v7722_v45 = vpop.f32.mrb[16].mxu0  ;;  %7762 = vmatprep.subr.bf16.mxu1 %v400_v42 }
  0xfa   :  { %v330_v46 = vpop.f32.mrb[17].mxu0 }
  0xfb   :  { %v7723_v47 = vpop.f32.mrb[18].mxu0 }
  0xfc   :  { %v402_v48 = vpack.c.bf16 %v7723_v47, %v7722_v45  ;;  %v333_v49 = vpop.f32.mrb[19].mxu0  ;;  %7763 = vmatpush3.bf16.msra.mxu1 %v400_v42 }
  0xfd   :  { %v401_v50 = vpack.c.bf16 %v333_v49, %v330_v46 }
  0xff   :  { %7765 = vmatmul.mubr.msk.bf16.vlgmr.msra.gmra.mrb[12].mxu1 %vm425_vm2, %v9085_v20  ;;  %7768 = vmatprep.subr.bf16.mxu1 %v401_v50 }
 0x100   :  { %7769 = vmatpush3.bf16.msra.mxu1 %v401_v50  ;;  %7772 = vmatprep.mubr.msk.bf16.mxu1 %vm425_vm2, %v9035_v9 }
 0x101   :  { %v7726_v51 = vpop.f32.mrb[20].mxu0  ;;  %7770 = vmatprep.subr.bf16.mxu1 %v402_v48 }
 0x102   :  { %v346_v52 = vpop.f32.mrb[21].mxu0 }
 0x103   :  { %v7727_v53 = vpop.f32.mrb[22].mxu0 }
 0x104   :  { %v404_v54 = vpack.c.bf16 %v7727_v53, %v7726_v51  ;;  %v349_v55 = vpop.f32.mrb[23].mxu0  ;;  %7771 = vmatpush3.bf16.msra.mxu1 %v402_v48 }
 0x105   :  { %v403_v56 = vpack.c.bf16 %v349_v55, %v346_v52 }
 0x107   :  { %7773 = vmatmul.mubr.msk.bf16.vlgmr.msra.gmra.mrb[16].mxu1 %vm425_vm2, %v9085_v20  ;;  %7776 = vmatprep.subr.bf16.mxu1 %v403_v56 }
 0x108   :  { %7777 = vmatpush3.bf16.msra.mxu1 %v403_v56  ;;  %7780 = vmatprep.mubr.msk.bf16.mxu1 %vm425_vm2, %v9035_v9 }
 0x109   :  { %v7730_v57 = vpop.f32.mrb[24].mxu0  ;;  %7778 = vmatprep.subr.bf16.mxu1 %v404_v54 }
 0x10a   :  { %v362_v58 = vpop.f32.mrb[25].mxu0 }
 0x10b   :  { %v7731_v59 = vpop.f32.mrb[26].mxu0 }
 0x10c   :  { %v406_v60 = vpack.c.bf16 %v7731_v59, %v7730_v57  ;;  %v365_v61 = vpop.f32.mrb[27].mxu0  ;;  %7779 = vmatpush3.bf16.msra.mxu1 %v404_v54 }
 0x10d   :  { %v405_v62 = vpack.c.bf16 %v365_v61, %v362_v58 }
 0x10f   :  { %7781 = vmatmul.mubr.msk.bf16.vlgmr.msra.gmra.mrb[20].mxu1 %vm425_vm2, %v9085_v20  ;;  %7784 = vmatprep.subr.bf16.mxu1 %v405_v62 }
 0x110   :  { %7785 = vmatpush3.bf16.msra.mxu1 %v405_v62  ;;  %7788 = vmatprep.mubr.msk.bf16.mxu1 %vm425_vm2, %v9035_v9 }
 0x111   :  { %v7734_v63 = vpop.f32.mrb[28].mxu0  ;;  %7786 = vmatprep.subr.bf16.mxu1 %v406_v60 }
 0x112   :  { %v378_v0 = vpop.f32.mrb[29].mxu0 }
 0x113   :  { %v7735_v1 = vpop.f32.mrb[30].mxu0 }
 0x114   :  { %v408_v2 = vpack.c.bf16 %v7735_v1, %v7734_v63  ;;  %v381_v3 = vpop.f32.mrb[31].mxu0  ;;  %7787 = vmatpush3.bf16.msra.mxu1 %v406_v60 }
 0x115   :  { %v407_v4 = vpack.c.bf16 %v381_v3, %v378_v0 }
 0x117   :  { %7789 = vmatmul.mubr.msk.bf16.vlgmr.msra.gmra.mrb[24].mxu1 %vm425_vm2, %v9085_v20  ;;  %7792 = vmatprep.subr.bf16.mxu1 %v407_v4 }
 0x118   :  { %7793 = vmatpush3.bf16.msra.mxu1 %v407_v4  ;;  %7796 = vmatprep.mubr.msk.bf16.mxu1 %vm425_vm2, %v9035_v9 }
 0x119   :  { %7794 = vmatprep.subr.bf16.mxu1 %v408_v2  ;;  %v7804_v5 = vpop.f32.mrb[32].mxu0 }
 0x11a   :  { %v895_v7 = vpop.f32.mrb[33].mxu0 }
 0x11b   :  { %v7805_v8 = vpop.f32.mrb[34].mxu0 }
 0x11c   :  { %7795 = vmatpush3.bf16.msra.mxu1 %v408_v2  ;;  %v9124_v10 = vpack.c.bf16 %v7805_v8, %v7804_v5  ;;  %v898_v11 = vpop.f32.mrb[35].mxu0 }
 0x11d   :  { %7806 = vmatprep.subr.bf16.mxu1 %v9122_v6  ;;  %v9127_v12 = vpack.c.bf16 %v898_v11, %v895_v7 }
 0x11f   :  { %7797 = vmatmul.mubr.msk.bf16.vlgmr.msra.gmra.mrb[28].mxu1 %vm425_vm2, %v9085_v20 }
 0x120   :  { %7807 = vmatpush3.bf16.msra.mxu1 %v9122_v6  ;;  %7810 = vmatprep.mubr.msk.bf16.mxu1 %vm425_vm2, %v9127_v12 }
 0x121   :  { %7808 = vmatprep.subr.bf16.mxu1 %v9132_v13 }
 0x124   :  { %7809 = vmatpush3.bf16.msra.mxu1 %v9132_v13 }
 0x125   :  { %7822 = vmatprep.subr.bf16.mxu1 %v9146_v14 }
 0x127   :  { %7811 = vmatmul.mubr.msk.bf16.vlgmr.msra.gmra.mrb[32].mxu1 %vm425_vm2, %v9124_v10 }
 0x128   :  { %7823 = vmatpush3.bf16.msra.mxu1 %v9146_v14 }
 0x1ba   :  { %v7742_v16 = vpop.f32.mrb[0].mxu1 }
 0x1bb   :  { %v475_v17 = vadd.f32 %v7742_v16, %v9153_v15  ;;  %v466_v18 = vpop.f32.mrb[1].mxu1 }
 0x1bc   :  { %v467_v19 = vadd.f32 %v9153_v15, %v466_v18  ;;  %v7743_v21 = vpop.f32.mrb[2].mxu1 }
 0x1bd   :  { %484 = vst.msk [vmem:[#allocation2 + $0x10] sm:$0xff] %vm481_vm3, %v475_v17  ;;  %v478_v22 = vadd.f32 %v7743_v21, %v9153_v15  ;;  %v469_v23 = vpop.f32.mrb[3].mxu1 }
 0x1be   :  { %482 = vst.msk [vmem:[#allocation2] sm:$0xff] %vm481_vm3, %v467_v19  ;;  %v470_v24 = vadd.f32 %v9153_v15, %v469_v23 }
 0x1bf   :  { %485 = vst.msk [vmem:[#allocation2 + $0x18] sm:$0xff] %vm481_vm3, %v478_v22 }
 0x1c0   :  { %483 = vst.msk [vmem:[#allocation2 + $0x8] sm:$0xff] %vm481_vm3, %v470_v24 }
 0x1c2   :  { %v7750_v25 = vpop.f32.mrb[4].mxu1 }
 0x1c3   :  { %v529_v26 = vadd.f32 %v7750_v25, %v9153_v15  ;;  %v520_v27 = vpop.f32.mrb[5].mxu1 }
 0x1c4   :  { %v521_v28 = vadd.f32 %v9153_v15, %v520_v27  ;;  %v7751_v29 = vpop.f32.mrb[6].mxu1  ;;  %v9219_v25 = vld [vmem:[#allocation2 + $0x10] sm:$0xff] }
 0x1c5   :  { %537 = vst.msk [vmem:[#allocation2 + $0x30] sm:$0xff] %vm481_vm3, %v529_v26  ;;  %v532_v30 = vadd.f32 %v7751_v29, %v9153_v15  ;;  %v523_v31 = vpop.f32.mrb[7].mxu1 }
 0x1c6   :  { %535 = vst.msk [vmem:[#allocation2 + $0x20] sm:$0xff] %vm481_vm3, %v521_v28  ;;  %v524_v32 = vadd.f32 %v9153_v15, %v523_v31  ;;  %v9222_v28 = vld [vmem:[#allocation2] sm:$0xff]  ;;  %v9225_v31 = vld [vmem:[#allocation2 + $0x18] sm:$0xff] }
 0x1c7   :  { %538 = vst.msk [vmem:[#allocation2 + $0x38] sm:$0xff] %vm481_vm3, %v532_v30 }
 0x1c8   :  { %536 = vst.msk [vmem:[#allocation2 + $0x28] sm:$0xff] %vm481_vm3, %v524_v32 }
 0x1ca   :  { %v7758_v33 = vpop.f32.mrb[8].mxu1 }
 0x1cb   :  { %v582_v34 = vadd.f32 %v7758_v33, %v9153_v15  ;;  %v573_v35 = vpop.f32.mrb[9].mxu1 }
 0x1cc   :  { %v574_v36 = vadd.f32 %v9153_v15, %v573_v35  ;;  %v7759_v37 = vpop.f32.mrb[10].mxu1 }
 0x1cd   :  { %590 = vst.msk [vmem:[#allocation2 + $0x50] sm:$0xff] %vm481_vm3, %v582_v34  ;;  %v585_v38 = vadd.f32 %v7759_v37, %v9153_v15  ;;  %v576_v39 = vpop.f32.mrb[11].mxu1  ;;  %v9228_v34 = vld [vmem:[#allocation2 + $0x8] sm:$0xff] }
 0x1ce   :  { %588 = vst.msk [vmem:[#allocation2 + $0x40] sm:$0xff] %vm481_vm3, %v574_v36  ;;  %v577_v40 = vadd.f32 %v9153_v15, %v576_v39 }
 0x1cf   :  { %591 = vst.msk [vmem:[#allocation2 + $0x58] sm:$0xff] %vm481_vm3, %v585_v38 }
 0x1d0   :  { %589 = vst.msk [vmem:[#allocation2 + $0x48] sm:$0xff] %vm481_vm3, %v577_v40 }
 0x1d2   :  { %v7766_v41 = vpop.f32.mrb[12].mxu1 }
 0x1d3   :  { %v635_v42 = vadd.f32 %v7766_v41, %v9153_v15  ;;  %v626_v43 = vpop.f32.mrb[13].mxu1 }
 0x1d4   :  { %v627_v44 = vadd.f32 %v9153_v15, %v626_v43  ;;  %v7767_v45 = vpop.f32.mrb[14].mxu1 }
 0x1d5   :  { %643 = vst.msk [vmem:[#allocation2 + $0x70] sm:$0xff] %vm481_vm3, %v635_v42  ;;  %v638_v46 = vadd.f32 %v7767_v45, %v9153_v15  ;;  %v629_v47 = vpop.f32.mrb[15].mxu1 }
 0x1d6   :  { %641 = vst.msk [vmem:[#allocation2 + $0x60] sm:$0xff] %vm481_vm3, %v627_v44  ;;  %v630_v48 = vadd.f32 %v9153_v15, %v629_v47 }
 0x1d7   :  { %644 = vst.msk [vmem:[#allocation2 + $0x78] sm:$0xff] %vm481_vm3, %v638_v46 }
 0x1d8   :  { %642 = vst.msk [vmem:[#allocation2 + $0x68] sm:$0xff] %vm481_vm3, %v630_v48 }
 0x1da   :  { %v7774_v49 = vpop.f32.mrb[16].mxu1 }
 0x1db   :  { %v688_v50 = vadd.f32 %v7774_v49, %v9153_v15  ;;  %v679_v51 = vpop.f32.mrb[17].mxu1 }
 0x1dc   :  { %v680_v52 = vadd.f32 %v9153_v15, %v679_v51  ;;  %v7775_v53 = vpop.f32.mrb[18].mxu1 }
 0x1dd   :  { %696 = vst.msk [vmem:[#allocation2 + $0x90] sm:$0xff] %vm481_vm3, %v688_v50  ;;  %v691_v54 = vadd.f32 %v7775_v53, %v9153_v15  ;;  %v682_v55 = vpop.f32.mrb[19].mxu1 }
 0x1de   :  { %694 = vst.msk [vmem:[#allocation2 + $0x80] sm:$0xff] %vm481_vm3, %v680_v52  ;;  %v683_v56 = vadd.f32 %v9153_v15, %v682_v55 }
 0x1df   :  { %697 = vst.msk [vmem:[#allocation2 + $0x98] sm:$0xff] %vm481_vm3, %v691_v54 }
 0x1e0   :  { %695 = vst.msk [vmem:[#allocation2 + $0x88] sm:$0xff] %vm481_vm3, %v683_v56 }
 0x1e2   :  { %v7782_v57 = vpop.f32.mrb[20].mxu1 }
 0x1e3   :  { %v741_v58 = vadd.f32 %v7782_v57, %v9153_v15  ;;  %v732_v59 = vpop.f32.mrb[21].mxu1 }
 0x1e4   :  { %v733_v60 = vadd.f32 %v9153_v15, %v732_v59  ;;  %v7783_v61 = vpop.f32.mrb[22].mxu1 }
 0x1e5   :  { %749 = vst.msk [vmem:[#allocation2 + $0xb0] sm:$0xff] %vm481_vm3, %v741_v58  ;;  %v744_v62 = vadd.f32 %v7783_v61, %v9153_v15  ;;  %v735_v63 = vpop.f32.mrb[23].mxu1  ;;  %v9260_v58 = vld [vmem:[%s11201_s4 + $0x8] sm:$0xff]  }
 0x1e6   :  { %747 = vst.msk [vmem:[#allocation2 + $0xa0] sm:$0xff] %vm481_vm3, %v733_v60  ;;  %v736_v0 = vadd.f32 %v9153_v15, %v735_v63  ;;  %7824 = vmatprep.subr.bf16.mxu1 %v9260_v58 }
 0x1e7   :  { %750 = vst.msk [vmem:[#allocation2 + $0xb8] sm:$0xff] %vm481_vm3, %v744_v62  ;;  %7825 = vmatpush3.bf16.msra.mxu1 %v9260_v58 }
 0x1e8   :  { %748 = vst.msk [vmem:[#allocation2 + $0xa8] sm:$0xff] %vm481_vm3, %v736_v0 }
 0x1ea   :  { %v7790_v1 = vpop.f32.mrb[24].mxu1 }
 0x1eb   :  { %v794_v2 = vadd.f32 %v7790_v1, %v9153_v15  ;;  %v785_v3 = vpop.f32.mrb[25].mxu1 }
 0x1ec   :  { %v786_v4 = vadd.f32 %v9153_v15, %v785_v3  ;;  %v7791_v5 = vpop.f32.mrb[26].mxu1 }
 0x1ed   :  { %802 = vst.msk [vmem:[#allocation2 + $0xd0] sm:$0xff] %vm481_vm3, %v794_v2  ;;  %v797_v7 = vadd.f32 %v7791_v5, %v9153_v15  ;;  %v788_v8 = vpop.f32.mrb[27].mxu1 }
 0x1ee   :  { %800 = vst.msk [vmem:[#allocation2 + $0xc0] sm:$0xff] %vm481_vm3, %v786_v4  ;;  %v789_v11 = vadd.f32 %v9153_v15, %v788_v8 }
 0x1ef   :  { %803 = vst.msk [vmem:[#allocation2 + $0xd8] sm:$0xff] %vm481_vm3, %v797_v7 }
 0x1f0   :  { %801 = vst.msk [vmem:[#allocation2 + $0xc8] sm:$0xff] %vm481_vm3, %v789_v11 }
 0x1f2   :  { %v7798_v16 = vpop.f32.mrb[28].mxu1 }
 0x1f3   :  { %v847_v17 = vadd.f32 %v7798_v16, %v9153_v15  ;;  %v838_v18 = vpop.f32.mrb[29].mxu1 }
 0x1f4   :  { %v839_v19 = vadd.f32 %v9153_v15, %v838_v18  ;;  %v7799_v21 = vpop.f32.mrb[30].mxu1 }
 0x1f5   :  { %855 = vst.msk [vmem:[#allocation2 + $0xf0] sm:$0xff] %vm481_vm3, %v847_v17  ;;  %v850_v22 = vadd.f32 %v7799_v21, %v9153_v15  ;;  %v841_v23 = vpop.f32.mrb[31].mxu1 }
 0x1f6   :  { %853 = vst.msk [vmem:[#allocation2 + $0xe0] sm:$0xff] %vm481_vm3, %v839_v19  ;;  %v842_v24 = vadd.f32 %v9153_v15, %v841_v23 }
 0x1f7   :  { %856 = vst.msk [vmem:[#allocation2 + $0xf8] sm:$0xff] %vm481_vm3, %v850_v22 }
 0x1f8   :  { %854 = vst.msk [vmem:[#allocation2 + $0xe8] sm:$0xff] %vm481_vm3, %v842_v24 }
 0x1fa   :  { %v7812_v26 = vpop.f32.mrb[32].mxu1 }
 0x1fb   :  { %v981_v27 = vadd.f32 %v7812_v26, %v9219_v25  ;;  %v964_v29 = vpop.f32.mrb[33].mxu1  ;;  %v9288_v26 = vld [vmem:[%s11203_s6 + $0x8] sm:$0xff]  }
 0x1fc   :  { %v979_v30 = vadd.f32 %v964_v29, %v9222_v28  ;;  %v7813_v32 = vpop.f32.mrb[34].mxu1 }
 0x1fd   :  { %v7113_v33 = vmul.f32 -1.442695, %v981_v27  ;;  %v982_v15 = vadd.f32 %v7813_v32, %v9225_v31  ;;  %v967_v35 = vpop.f32.mrb[35].mxu1 }
 0x1fe   :  { %v7111_v36 = vmul.f32 -1.442695, %v979_v30  ;;  %v980_v37 = vadd.f32 %v967_v35, %v9228_v34 }
 0x1ff   :  { %8466 = vpow2.f32 %v7113_v33  ;;  %v7114_v38 = vmul.f32 -1.442695, %v982_v15 }
 0x200   :  { %8468 = vpow2.f32 %v7111_v36  ;;  %v7112_v39 = vmul.f32 -1.442695, %v980_v37 }
 0x201   :  { %8470 = vpow2.f32 %v7114_v38 }
 0x202   :  { %8472 = vpow2.f32 %v7112_v39 }
 0x209   :  { %v8467_v40 = vpop.eup %8466 }
 0x20a   :  { %v8469_v41 = vpop.eup %8468  ;;  %v997_v42 = vadd.f32 1.0, %v8467_v40 }
 0x20b   :  { %v8471_v43 = vpop.eup %8470  ;;  %v995_v44 = vadd.f32 1.0, %v8469_v41 }
 0x20c   :  { %v8473_v45 = vpop.eup %8472  ;;  %8474 = vrcp.f32 %v997_v42  ;;  %v998_v46 = vadd.f32 1.0, %v8471_v43 }
 0x20d   :  { %8476 = vrcp.f32 %v995_v44  ;;  %v996_v47 = vadd.f32 1.0, %v8473_v45 }
 0x20e   :  { %8478 = vrcp.f32 %v998_v46 }
 0x20f   :  { %8480 = vrcp.f32 %v996_v47 }
 0x216   :  { %v9231_v48 = vpop.eup %8474 }
 0x217   :  { %v9233_v49 = vpop.eup %8476  ;;  %v9251_v56 = vmul.f32 0.0, %v9231_v48  ;;  %v1157_v15 = vsub.f32 1.0, %v9231_v48 }
 0x218   :  { %v9235_v50 = vpop.eup %8478  ;;  %v9240_v52 = vmul.f32 0.0, %v9233_v49 }
 0x219   :  { %v9237_v51 = vpop.eup %8480  ;;  %v9246_v54 = vmul.f32 0.0, %v9235_v50  ;;  %v1158_v37 = vsub.f32 1.0, %v9235_v50 }
 0x21a   :  { %v9243_v53 = vmul.f32 0.0, %v9237_v51  ;;  %v1156_v30 = vsub.f32 1.0, %v9237_v51 }
 0x21b   :  { %v1012_v57 = vpack.c.bf16 %v9246_v54, %v9251_v56 }
 0x21c   :  { %v1011_v55 = vpack.c.bf16 %v9243_v53, %v9240_v52 }
 0x21e   :  { %7814 = vmatprep.subr.bf16.mxu0 %v1011_v55 }
 0x21f   :  { %7815 = vmatpush3.bf16.msra.mxu0 %v1011_v55 }
 0x220   :  { %7816 = vmatprep.subr.bf16.mxu0 %v1012_v57 }
 0x223   :  { %7817 = vmatpush3.bf16.msra.mxu0 %v1012_v57 }
 0x226   :  { %7819 = vmatmul.mubr.msk.bf16.vlgmr.msra.gmra.mrb[36].mxu0 %vm425_vm2, %v9085_v20 }
 0x2f9   :  { %v7820_v59 = vpop.f32.mrb[36].mxu0 }
 0x2fa   :  { %v1047_v60 = vpop.f32.mrb[37].mxu0 }
 0x2fb   :  { %v7821_v61 = vpop.f32.mrb[38].mxu0 }
 0x2fc   :  { %v1063_v62 = vpack.c.bf16 %v7821_v61, %v7820_v59  ;;  %v1050_v63 = vpop.f32.mrb[39].mxu0 }
 0x2fd   :  { %v1062_v0 = vpack.c.bf16 %v1050_v63, %v1047_v60 }
 0x2ff   :  { %7826 = vmatprep.mubr.msk.bf16.mxu1 %vm425_vm2, %v1062_v0  ;;  %v9355_v0 = vld [vmem:[#allocation2 + $0x20] sm:$0xff] }
 0x300   :  { %7827 = vmatmul.mubr.msk.bf16.vlgmr.msra.gmra.mrb[36].mxu1 %vm425_vm2, %v1063_v62  ;;  %v9352_v62 = vld [vmem:[#allocation2 + $0x30] sm:$0xff] }
 0x301   :  { %7842 = vmatprep.mubr.msk.bf16.mxu1 %vm425_vm2, %v9035_v9 }
 0x3d3   :  { %v7828_v1 = vpop.f32.mrb[36].mxu1 }
 0x3d4   :  { %1139 = vrot.lane.b32.xlu1 %v7828_v1, %s8940_s23  ;;  %v1116_v2 = vpop.f32.mrb[37].mxu1 }
 0x3d5   :  { %1135 = vrot.lane.b32.xlu0 %v1116_v2, %s8940_s23  ;;  %v7829_v3 = vpop.f32.mrb[38].mxu1  ;;  %v9358_v2 = vld [vmem:[#allocation2 + $0x38] sm:$0xff] }
 0x3d6   :  { %v1119_v4 = vpop.f32.mrb[39].mxu1 }
 0x3d8   :  { %1141 = vrot.lane.b32.xlu1 %v7829_v3, %s8940_s23 }
 0x3d9   :  { %1137 = vrot.lane.b32.xlu0 %v1119_v4, %s8940_s23 }
 0x446   :  { %v1140_v5 = vpop.permute.xlu1 %1139 }
 0x447   :  { %v1136_v7 = vpop.permute.xlu0 %1135  ;;  %v1149_v11 = vadd.f32 %v1140_v5, %v9219_v25  ;;  %v9283_v25 = vld [vmem:[%s11203_s6] sm:$0xff]  }
 0x448   :  { %v1147_v8 = vadd.f32 %v1136_v7, %v9222_v28  ;;  %7830 = vmatprep.subr.bf16.mxu0 %v9283_v25  ;;  %v1155_v28 = vsub.f32 1.0, %v9233_v49  ;;  %v9361_v7 = vld [vmem:[#allocation2 + $0x28] sm:$0xff] }
 0x449   :  { %7831 = vmatpush3.bf16.msra.mxu0 %v9283_v25 }
 0x44a   :  { %8482 = vtanh.f32 %v1147_v8  ;;  %v1142_v16 = vpop.permute.xlu1 %1141  ;;  %7832 = vmatprep.subr.bf16.mxu0 %v9288_v26 }
 0x44b   :  { %v1138_v17 = vpop.permute.xlu0 %1137  ;;  %8484 = vtanh.f32 %v1149_v11  ;;  %v1150_v19 = vadd.f32 %v1142_v16, %v9225_v31 }
 0x44c   :  { %v1148_v18 = vadd.f32 %v1138_v17, %v9228_v34 }
 0x44d   :  { %7833 = vmatpush3.bf16.msra.mxu0 %v9288_v26 }
 0x44e   :  { %8486 = vtanh.f32 %v1148_v18 }
 0x44f   :  { %8488 = vtanh.f32 %v1150_v19 }
 0x454   :  { %v8483_v21 = vpop.eup %8482 }
 0x455   :  { %1163 = vrot.lane.b32.xlu0 %v8483_v21, %s8941_s24  ;;  %v8485_v22 = vpop.eup %8484 }
 0x458   :  { %v8487_v23 = vpop.eup %8486 }
 0x459   :  { %1167 = vrot.lane.b32.xlu0 %v8485_v22, %s8941_s24  ;;  %1165 = vrot.lane.b32.xlu1 %v8487_v23, %s8941_s24  ;;  %v8489_v24 = vpop.eup %8488 }
 0x45d   :  { %1169 = vrot.lane.b32.xlu1 %v8489_v24, %s8941_s24 }
 0x4c7   :  { %v1164_v27 = vpop.permute.xlu0 %1163 }
 0x4c8   :  { %v1175_v29 = vmul.f32 %v1164_v27, %v1155_v28 }
 0x4ca   :  { %v9298_v34 = vadd.f32 %v1175_v29, %v9240_v52 }
 0x4cb   :  { %v1166_v31 = vpop.permute.xlu1 %1165  ;;  %v1168_v32 = vpop.permute.xlu0 %1167 }
 0x4cc   :  { %v1176_v33 = vmul.f32 %v1166_v31, %v1156_v30  ;;  %v1177_v36 = vmul.f32 %v1168_v32, %v1157_v15 }
 0x4ce   :  { %v9301_v35 = vadd.f32 %v1176_v33, %v9243_v53  ;;  %v9307_v41 = vadd.f32 %v1177_v36, %v9251_v56 }
 0x4cf   :  { %v1170_v38 = vpop.permute.xlu1 %1169 }
 0x4d0   :  { %v1178_v39 = vmul.f32 %v1170_v38, %v1158_v37  ;;  %v1183_v40 = vpack.c.bf16 %v9301_v35, %v9298_v34 }
 0x4d2   :  { %v9310_v42 = vadd.f32 %v1178_v39, %v9246_v54  ;;  %1187 = vrot.lane.b32.xlu0 %v1183_v40, %s8941_s24 }
 0x4d4   :  { %v1184_v43 = vpack.c.bf16 %v9310_v42, %v9307_v41 }
 0x4d6   :  { %1459 = vrot.lane.b32.xlu0 %v9298_v34, %s8941_s24  ;;  %1189 = vrot.lane.b32.xlu1 %v1184_v43, %s8941_s24 }
 0x4da   :  { %1463 = vrot.lane.b32.xlu0 %v9307_v41, %s8941_s24  ;;  %1461 = vrot.lane.b32.xlu1 %v9301_v35, %s8941_s24 }
 0x4de   :  { %1465 = vrot.lane.b32.xlu1 %v9310_v42, %s8941_s24 }
 0x544   :  { %v1188_v44 = vpop.permute.xlu0 %1187 }
 0x545   :  { %7834 = vmatprep.mubr.msk.bf16.mxu0 %vm425_vm2, %v1188_v44  ;;  %7846 = vmatprep.subr.bf16.mxu0 %v1188_v44 }
 0x548   :  { %v1190_v45 = vpop.permute.xlu1 %1189  ;;  %v1460_v30 = vpop.permute.xlu0 %1459 }
 0x549   :  { %7835 = vmatmul.mubr.msk.bf16.vlgmr.msra.gmra.mrb[40].mxu0 %vm425_vm2, %v1190_v45 }
 0x54a   :  { %7847 = vmatpush3.bf16.msra.mxu0 %v1188_v44  ;;  %7850 = vmatprep.mubr.msk.bf16.mxu0 %vm425_vm2, %v9035_v9 }
 0x54b   :  { %7848 = vmatprep.subr.bf16.mxu0 %v1190_v45 }
 0x54c   :  { %v1462_v31 = vpop.permute.xlu1 %1461  ;;  %v1464_v36 = vpop.permute.xlu0 %1463 }
 0x54e   :  { %7849 = vmatpush3.bf16.msra.mxu0 %v1190_v45 }
 0x550   :  { %v1466_v37 = vpop.permute.xlu1 %1465 }
 0x551   :  { %7851 = vmatmul.mubr.msk.bf16.vlgmr.msra.gmra.mrb[44].mxu0 %vm425_vm2, %v9085_v20 }
 0x552   :  { %7866 = vmatprep.mubr.msk.bf16.mxu0 %vm425_vm2, %v9035_v9 }
 0x61c   :  { %v7836_v46 = vpop.f32.mrb[40].mxu0 }
 0x61d   :  { %v1243_v47 = vpop.f32.mrb[41].mxu0 }
 0x61e   :  { %v7837_v48 = vpop.f32.mrb[42].mxu0 }
 0x61f   :  { %v1259_v49 = vpack.c.bf16 %v7837_v48, %v7836_v46  ;;  %v1246_v50 = vpop.f32.mrb[43].mxu0  ;;  %v9385_v48 = vld [vmem:[%s11204_s7 + $0x8] sm:$0xff]  }
 0x620   :  { %v1258_v51 = vpack.c.bf16 %v1246_v50, %v1243_v47  ;;  %v9379_v47 = vld [vmem:[%s11204_s7] sm:$0xff]  }
 0x622   :  { %7838 = vmatprep.subr.bf16.mxu1 %v1258_v51 }
 0x623   :  { %7839 = vmatpush3.bf16.msra.mxu1 %v1258_v51 }
 0x624   :  { %7840 = vmatprep.subr.bf16.mxu1 %v1259_v49  ;;  %v7852_v52 = vpop.f32.mrb[44].mxu0 }
 0x625   :  { %v1355_v53 = vpop.f32.mrb[45].mxu0 }
 0x626   :  { %v7853_v54 = vpop.f32.mrb[46].mxu0 }
 0x627   :  { %7841 = vmatpush3.bf16.msra.mxu1 %v1259_v49  ;;  %v1371_v55 = vpack.c.bf16 %v7853_v54, %v7852_v52  ;;  %v1358_v56 = vpop.f32.mrb[47].mxu0  ;;  %v9399_v54 = vld [vmem:[%s11206_s9] ss:$0 sm:$0xff] }
 0x628   :  { %7854 = vmatprep.subr.bf16.mxu1 %v9122_v6  ;;  %v1370_v57 = vpack.c.bf16 %v1358_v56, %v1355_v53 }
 0x62a   :  { %7843 = vmatmul.mubr.msk.bf16.vlgmr.msra.gmra.mrb[40].mxu1 %vm425_vm2, %v9085_v20 }
 0x62b   :  { %7855 = vmatpush3.bf16.msra.mxu1 %v9122_v6  ;;  %7858 = vmatprep.mubr.msk.bf16.mxu1 %vm425_vm2, %v1370_v57 }
 0x62c   :  { %7856 = vmatprep.subr.bf16.mxu1 %v9132_v13 }
 0x62f   :  { %7857 = vmatpush3.bf16.msra.mxu1 %v9132_v13 }
 0x630   :  { %7870 = vmatprep.subr.bf16.mxu1 %v9146_v14 }
 0x632   :  { %7859 = vmatmul.mubr.msk.bf16.vlgmr.msra.gmra.mrb[44].mxu1 %vm425_vm2, %v1371_v55 }
 0x633   :  { %7871 = vmatpush3.bf16.msra.mxu1 %v9146_v14 }
 0x634   :  { %7872 = vmatprep.subr.bf16.mxu1 %v9260_v58 }
 0x637   :  { %7873 = vmatpush3.bf16.msra.mxu1 %v9260_v58 }
 0x6fd   :  { %v9344_v59 = vpop.f32.mrb[40].mxu1 }
 0x6fe   :  { %v9346_v60 = vpop.f32.mrb[41].mxu1 }
 0x6ff   :  { %v9348_v6 = vpop.f32.mrb[42].mxu1 }
 0x700   :  { %v9350_v61 = vpop.f32.mrb[43].mxu1  ;;  %v9415_v57 = vadd.f32 %v9348_v6, %v9399_v54 }
 0x705   :  { %v7860_v13 = vpop.f32.mrb[44].mxu1 }
 0x706   :  { %v1429_v63 = vadd.f32 %v7860_v13, %v9352_v62  ;;  %v1412_v14 = vpop.f32.mrb[45].mxu1 }
 0x707   :  { %v1427_v1 = vadd.f32 %v1412_v14, %v9355_v0  ;;  %v7861_v3 = vpop.f32.mrb[46].mxu1 }
 0x708   :  { %v7134_v4 = vmul.f32 -1.442695, %v1429_v63  ;;  %v1430_v5 = vadd.f32 %v7861_v3, %v9358_v2  ;;  %v1415_v8 = vpop.f32.mrb[47].mxu1 }
 0x709   :  { %v7132_v11 = vmul.f32 -1.442695, %v1427_v1  ;;  %v1428_v16 = vadd.f32 %v1415_v8, %v9361_v7 }
 0x70a   :  { %8490 = vpow2.f32 %v7134_v4  ;;  %v7135_v17 = vmul.f32 -1.442695, %v1430_v5 }
 0x70b   :  { %8492 = vpow2.f32 %v7132_v11  ;;  %v7133_v18 = vmul.f32 -1.442695, %v1428_v16 }
 0x70c   :  { %8494 = vpow2.f32 %v7135_v17 }
 0x70d   :  { %8496 = vpow2.f32 %v7133_v18 }
 0x714   :  { %v8491_v19 = vpop.eup %8490 }
 0x715   :  { %v8493_v21 = vpop.eup %8492  ;;  %v1445_v22 = vadd.f32 1.0, %v8491_v19 }
 0x716   :  { %v8495_v23 = vpop.eup %8494  ;;  %v1443_v24 = vadd.f32 1.0, %v8493_v21 }
 0x717   :  { %v8497_v27 = vpop.eup %8496  ;;  %8498 = vrcp.f32 %v1445_v22  ;;  %v1446_v28 = vadd.f32 1.0, %v8495_v23 }
 0x718   :  { %8500 = vrcp.f32 %v1443_v24  ;;  %v1444_v29 = vadd.f32 1.0, %v8497_v27 }
 0x719   :  { %8502 = vrcp.f32 %v1446_v28 }
 0x71a   :  { %8504 = vrcp.f32 %v1444_v29 }
 0x721   :  { %v9364_v32 = vpop.eup %8498 }
 0x722   :  { %v9366_v33 = vpop.eup %8500  ;;  %v1473_v39 = vmul.f32 %v9364_v32, %v1464_v36 }
 0x723   :  { %v9368_v15 = vpop.eup %8502  ;;  %v1471_v43 = vmul.f32 %v9366_v33, %v1460_v30 }
 0x724   :  { %v9370_v38 = vpop.eup %8504  ;;  %v1474_v40 = vmul.f32 %v9368_v15, %v1466_v37 }
 0x725   :  { %v1472_v44 = vmul.f32 %v9370_v38, %v1462_v31 }
 0x726   :  { %v1476_v45 = vpack.c.bf16 %v1474_v40, %v1473_v39  ;;  %v9458_v40 = vld [vmem:[%s11205_s8] sm:$0xff]  }
 0x727   :  { %v1475_v46 = vpack.c.bf16 %v1472_v44, %v1471_v43  ;;  %v9465_v43 = vld [vmem:[%s11205_s8 + $0x8] sm:$0xff]  }
 0x729   :  { %7862 = vmatprep.subr.bf16.mxu0 %v1475_v46 }
 0x72a   :  { %7863 = vmatpush3.bf16.msra.mxu0 %v1475_v46 }
 0x72b   :  { %7864 = vmatprep.subr.bf16.mxu0 %v1476_v45 }
 0x72e   :  { %7865 = vmatpush3.bf16.msra.mxu0 %v1476_v45 }
 0x72f   :  { %7878 = vmatprep.subr.bf16.mxu0 %v9379_v47 }
 0x731   :  { %7867 = vmatmul.mubr.msk.bf16.vlgmr.msra.gmra.mrb[48].mxu0 %vm425_vm2, %v9085_v20 }
 0x732   :  { %7879 = vmatpush3.bf16.msra.mxu0 %v9379_v47  ;;  %7882 = vmatprep.mubr.msk.bf16.mxu0 %vm425_vm2, %v9127_v12  ;;  %v9404_v12 = vadd.f32 %v9344_v59, %v9399_v54  ;;  %v9420_v59 = vadd.f32 %v9399_v54, %v9350_v61 }
 0x733   :  { %7880 = vmatprep.subr.bf16.mxu0 %v9385_v48 }
 0x736   :  { %7881 = vmatpush3.bf16.msra.mxu0 %v9385_v48 }
 0x737   :  { %7894 = vmatprep.subr.bf16.mxu0 %v9458_v40 }
 0x739   :  { %7883 = vmatmul.mubr.msk.bf16.vlgmr.msra.gmra.mrb[52].mxu0 %vm425_vm2, %v9124_v10  ;;  %v9409_v10 = vadd.f32 %v9399_v54, %v9346_v60 }
 0x73a   :  { %7895 = vmatpush3.bf16.msra.mxu0 %v9458_v40 }
 0x73b   :  { %7896 = vmatprep.subr.bf16.mxu0 %v9465_v43 }
 0x73e   :  { %7897 = vmatpush3.bf16.msra.mxu0 %v9465_v43 }
 0x804   :  { %v7868_v49 = vpop.f32.mrb[48].mxu0 }
 0x805   :  { %v1511_v50 = vpop.f32.mrb[49].mxu0 }
 0x806   :  { %v7869_v51 = vpop.f32.mrb[50].mxu0 }
 0x807   :  { %v1527_v52 = vpack.c.bf16 %v7869_v51, %v7868_v49  ;;  %v1514_v53 = vpop.f32.mrb[51].mxu0 }
 0x808   :  { %v1526_v55 = vpack.c.bf16 %v1514_v53, %v1511_v50  ;;  %v9478_v53 = vld [vmem:[%s11197_s0] sm:$0xff]  }
 0x80a   :  { %7874 = vmatprep.mubr.msk.bf16.mxu1 %vm425_vm2, %v1526_v55 }
 0x80b   :  { %7875 = vmatmul.mubr.msk.bf16.vlgmr.msra.gmra.mrb[48].mxu1 %vm425_vm2, %v1527_v52 }
 0x80c   :  { %v7884_v56 = vpop.f32.mrb[52].mxu0  ;;  %7890 = vmatprep.mubr.msk.bf16.mxu1 %vm425_vm2, %v9035_v9 }
 0x80d   :  { %v1702_v13 = vadd.f32 %v7884_v56, %v9404_v12  ;;  %v1685_v63 = vpop.f32.mrb[53].mxu0 }
 0x80e   :  { %v1700_v14 = vadd.f32 %v1685_v63, %v9409_v10  ;;  %v7885_v1 = vpop.f32.mrb[54].mxu0 }
 0x80f   :  { %v7146_v60 = vmul.f32 -1.442695, %v1702_v13  ;;  %v1703_v3 = vadd.f32 %v7885_v1, %v9415_v57  ;;  %v1688_v4 = vpop.f32.mrb[55].mxu0 }
 0x810   :  { %v7144_v5 = vmul.f32 -1.442695, %v1700_v14  ;;  %v1701_v9 = vadd.f32 %v1688_v4, %v9420_v59 }
 0x811   :  { %8506 = vpow2.f32 %v7146_v60  ;;  %v7147_v6 = vmul.f32 -1.442695, %v1703_v3 }
 0x812   :  { %8508 = vpow2.f32 %v7144_v5  ;;  %v7145_v8 = vmul.f32 -1.442695, %v1701_v9 }
 0x813   :  { %8510 = vpow2.f32 %v7147_v6 }
 0x814   :  { %8512 = vpow2.f32 %v7145_v8  ;;  %v1612_v8 = vsub.f32 1.0, %v9370_v38 }
 0x81b   :  { %v8507_v11 = vpop.eup %8506 }
 0x81c   :  { %v8509_v16 = vpop.eup %8508  ;;  %v1718_v61 = vadd.f32 1.0, %v8507_v11  ;;  %v1607_v11 = vmul.f32 %v9366_v33, %v9298_v34  ;;  %v1610_v34 = vmul.f32 %v9368_v15, %v9310_v42 }
 0x81d   :  { %v8511_v17 = vpop.eup %8510  ;;  %v1716_v18 = vadd.f32 1.0, %v8509_v16  ;;  %v1608_v16 = vmul.f32 %v9370_v38, %v9301_v35 }
 0x81e   :  { %v8513_v19 = vpop.eup %8512  ;;  %8514 = vrcp.f32 %v1718_v61  ;;  %v1719_v21 = vadd.f32 1.0, %v8511_v17  ;;  %v1613_v17 = vsub.f32 1.0, %v9364_v32 }
 0x81f   :  { %8516 = vrcp.f32 %v1716_v18  ;;  %v1717_v22 = vadd.f32 1.0, %v8513_v19 }
 0x820   :  { %8518 = vrcp.f32 %v1719_v21 }
 0x821   :  { %8520 = vrcp.f32 %v1717_v22 }
 0x828   :  { %v9425_v23 = vpop.eup %8514 }
 0x829   :  { %v9427_v24 = vpop.eup %8516  ;;  %v9445_v37 = vmul.f32 0.0, %v9425_v23 }
 0x82a   :  { %v9429_v27 = vpop.eup %8518  ;;  %v9434_v29 = vmul.f32 0.0, %v9427_v24 }
 0x82b   :  { %v9431_v28 = vpop.eup %8520  ;;  %v9440_v31 = vmul.f32 0.0, %v9429_v27 }
 0x82c   :  { %v9437_v30 = vmul.f32 0.0, %v9431_v28 }
 0x82d   :  { %v1733_v39 = vpack.c.bf16 %v9440_v31, %v9445_v37 }
 0x82e   :  { %v1732_v36 = vpack.c.bf16 %v9437_v30, %v9434_v29 }
 0x830   :  { %7886 = vmatprep.subr.bf16.mxu1 %v1732_v36 }
 0x831   :  { %7887 = vmatpush3.bf16.msra.mxu1 %v1732_v36  ;;  %v1614_v36 = vsub.f32 1.0, %v9368_v15 }
 0x832   :  { %7888 = vmatprep.subr.bf16.mxu1 %v1733_v39 }
 0x835   :  { %7889 = vmatpush3.bf16.msra.mxu1 %v1733_v39 }
 0x836   :  { %7902 = vmatprep.subr.bf16.mxu1 %v9283_v25 }
 0x838   :  { %7891 = vmatmul.mubr.msk.bf16.vlgmr.msra.gmra.mrb[52].mxu1 %vm425_vm2, %v9085_v20 }
 0x839   :  { %7903 = vmatpush3.bf16.msra.mxu1 %v9283_v25 }
 0x83a   :  { %7904 = vmatprep.subr.bf16.mxu1 %v9288_v26 }
 0x83d   :  { %7905 = vmatpush3.bf16.msra.mxu1 %v9288_v26 }
 0x8de   :  { %v7876_v20 = vpop.f32.mrb[48].mxu1 }
 0x8df   :  { %v1568_v25 = vpop.f32.mrb[49].mxu1 }
 0x8e0   :  { %1587 = vrot.lane.b32.xlu0 %v1568_v25, %s8940_s23  ;;  %v7877_v26 = vpop.f32.mrb[50].mxu1 }
 0x8e1   :  { %v1571_v44 = vpop.f32.mrb[51].mxu1 }
 0x8e2   :  { %1589 = vrot.lane.b32.xlu1 %v1571_v44, %s8940_s23 }
 0x8e4   :  { %1591 = vrot.lane.b32.xlu0 %v7876_v20, %s8940_s23  ;;  %v1609_v20 = vmul.f32 %v9364_v32, %v9307_v41 }
 0x8e6   :  { %1593 = vrot.lane.b32.xlu1 %v7877_v26, %s8940_s23 }
 0x90b   :  { %v7892_v45 = vpop.f32.mrb[52].mxu1 }
 0x90c   :  { %v1768_v46 = vpop.f32.mrb[53].mxu1 }
 0x90d   :  { %v7893_v49 = vpop.f32.mrb[54].mxu1 }
 0x90e   :  { %v1784_v50 = vpack.c.bf16 %v7893_v49, %v7892_v45  ;;  %v1771_v51 = vpop.f32.mrb[55].mxu1 }
 0x90f   :  { %v1783_v52 = vpack.c.bf16 %v1771_v51, %v1768_v46 }
 0x911   :  { %7898 = vmatprep.mubr.msk.bf16.mxu0 %vm425_vm2, %v1783_v52 }
 0x912   :  { %7899 = vmatmul.mubr.msk.bf16.vlgmr.msra.gmra.mrb[56].mxu0 %vm425_vm2, %v1784_v50  ;;  %v9528_v50 = vld [vmem:[%s11197_s0 + $0x8] sm:$0xff]  }
 0x913   :  { %7914 = vmatprep.mubr.msk.bf16.mxu0 %vm425_vm2, %v9478_v53 }
 0x952   :  { %v1588_v55 = vpop.permute.xlu0 %1587 }
 0x953   :  { %v1599_v56 = vadd.f32 %v1588_v55, %v9355_v0 }
 0x954   :  { %v1590_v13 = vpop.permute.xlu1 %1589 }
 0x955   :  { %8522 = vtanh.f32 %v1599_v56  ;;  %v1600_v63 = vadd.f32 %v1590_v13, %v9361_v7  ;;  %v1611_v7 = vsub.f32 1.0, %v9366_v33 }
 0x956   :  { %v1592_v14 = vpop.permute.xlu0 %1591 }
 0x957   :  { %8524 = vtanh.f32 %v1600_v63  ;;  %v1601_v1 = vadd.f32 %v1592_v14, %v9352_v62 }
 0x958   :  { %v1594_v60 = vpop.permute.xlu1 %1593 }
 0x959   :  { %8526 = vtanh.f32 %v1601_v1  ;;  %v1602_v3 = vadd.f32 %v1594_v60, %v9358_v2 }
 0x95b   :  { %8528 = vtanh.f32 %v1602_v3  ;;  %v1877_v3 = vsub.f32 1.0, %v9431_v28 }
 0x95f   :  { %v8523_v4 = vpop.eup %8522 }
 0x960   :  { %1619 = vrot.lane.b32.xlu0 %v8523_v4, %s8941_s24 }
 0x961   :  { %v8525_v5 = vpop.eup %8524 }
 0x962   :  { %1621 = vrot.lane.b32.xlu1 %v8525_v5, %s8941_s24 }
 0x963   :  { %v8527_v0 = vpop.eup %8526 }
 0x964   :  { %1623 = vrot.lane.b32.xlu0 %v8527_v0, %s8941_s24  ;;  %v1878_v0 = vsub.f32 1.0, %v9425_v23 }
 0x965   :  { %v8529_v9 = vpop.eup %8528 }
 0x966   :  { %1625 = vrot.lane.b32.xlu1 %v8529_v9, %s8941_s24 }
 0x9d2   :  { %v1620_v62 = vpop.permute.xlu0 %1619 }
 0x9d3   :  { %v1631_v6 = vmul.f32 %v1620_v62, %v1611_v7 }
 0x9d4   :  { %v1622_v2 = vpop.permute.xlu1 %1621 }
 0x9d5   :  { %v1632_v61 = vmul.f32 %v1622_v2, %v1612_v8  ;;  %v9497_v19 = vadd.f32 %v1631_v6, %v1607_v11  ;;  %v1879_v8 = vsub.f32 1.0, %v9429_v27 }
 0x9d6   :  { %v1624_v18 = vpop.permute.xlu0 %1623 }
 0x9d7   :  { %v9499_v21 = vadd.f32 %v1632_v61, %v1608_v16  ;;  %v1633_v22 = vmul.f32 %v1624_v18, %v1613_v17 }
 0x9d8   :  { %v1626_v39 = vpop.permute.xlu1 %1625 }
 0x9d9   :  { %v1634_v33 = vmul.f32 %v1626_v39, %v1614_v36  ;;  %v1924_v35 = vpack.c.bf16 %v9499_v21, %v9497_v19  ;;  %v9508_v38 = vadd.f32 %v1633_v22, %v1609_v20  ;;  %v9574_v20 = vld [vmem:[%s11200_s3] sm:$0xff]  }
 0x9db   :  { %v9510_v25 = vadd.f32 %v1634_v33, %v1610_v34  ;;  %1928 = vrot.lane.b32.xlu0 %v1924_v35, %s8941_s24  ;;  %v9584_v33 = vld [vmem:[%s11200_s3 + $0x8] sm:$0xff]   ;;  %v9591_v35 = vld [vmem:[%s11201_s4] sm:$0xff]  }
 0x9dd   :  { %v1925_v26 = vpack.c.bf16 %v9510_v25, %v9508_v38 }
 0x9df   :  { %1930 = vrot.lane.b32.xlu1 %v1925_v26, %s8941_s24 }
 0x9e5   :  { %v7900_v44 = vpop.f32.mrb[56].mxu0 }
 0x9e6   :  { %v1837_v41 = vpop.f32.mrb[57].mxu0 }
 0x9e7   :  { %1856 = vrot.lane.b32.xlu0 %v1837_v41, %s8940_s23  ;;  %v7901_v42 = vpop.f32.mrb[58].mxu0 }
 0x9e8   :  { %v1840_v32 = vpop.f32.mrb[59].mxu0 }
 0x9e9   :  { %1858 = vrot.lane.b32.xlu1 %v1840_v32, %s8940_s23  ;;  %v9607_v32 = vld [vmem:[#allocation2 + $0x50] sm:$0xff] }
 0x9eb   :  { %1860 = vrot.lane.b32.xlu0 %v7900_v44, %s8940_s23 }
 0x9ed   :  { %1862 = vrot.lane.b32.xlu1 %v7901_v42, %s8940_s23 }
 0xa4d   :  { %v1929_v15 = vpop.permute.xlu0 %1928 }
 0xa4e   :  { %7906 = vmatprep.mubr.msk.bf16.mxu1 %vm425_vm2, %v1929_v15  ;;  %7918 = vmatprep.subr.bf16.mxu1 %v1929_v15 }
 0xa51   :  { %v1931_v45 = vpop.permute.xlu1 %1930 }
 0xa52   :  { %7907 = vmatmul.mubr.msk.bf16.vlgmr.msra.gmra.mrb[56].mxu1 %vm425_vm2, %v1931_v45 }
 0xa53   :  { %7919 = vmatpush3.bf16.msra.mxu1 %v1929_v15  ;;  %7922 = vmatprep.mubr.msk.bf16.mxu1 %vm425_vm2, %v9478_v53 }
 0xa54   :  { %7920 = vmatprep.subr.bf16.mxu1 %v1931_v45 }
 0xa57   :  { %7921 = vmatpush3.bf16.msra.mxu1 %v1931_v45 }
 0xa59   :  { %v1857_v46 = vpop.permute.xlu0 %1856 }
 0xa5a   :  { %v1868_v49 = vadd.f32 %v1857_v46, %v9409_v10  ;;  %7923 = vmatmul.mubr.msk.bf16.vlgmr.msra.gmra.mrb[60].mxu1 %vm425_vm2, %v9528_v50  ;;  %v9610_v46 = vld [vmem:[#allocation2 + $0x40] sm:$0xff] }
 0xa5b   :  { %v1859_v51 = vpop.permute.xlu1 %1858  ;;  %7938 = vmatprep.mubr.msk.bf16.mxu1 %vm425_vm2, %v9478_v53 }
 0xa5c   :  { %8530 = vtanh.f32 %v1868_v49  ;;  %v1869_v52 = vadd.f32 %v1859_v51, %v9420_v59  ;;  %v9613_v51 = vld [vmem:[#allocation2 + $0x58] sm:$0xff] }
 0xa5d   :  { %v1861_v55 = vpop.permute.xlu0 %1860 }
 0xa5e   :  { %8532 = vtanh.f32 %v1869_v52  ;;  %v1870_v56 = vadd.f32 %v1861_v55, %v9404_v12  ;;  %v1876_v12 = vsub.f32 1.0, %v9427_v24 }
 0xa5f   :  { %v1863_v10 = vpop.permute.xlu1 %1862 }
 0xa60   :  { %8534 = vtanh.f32 %v1870_v56  ;;  %v1871_v13 = vadd.f32 %v1863_v10, %v9415_v57  ;;  %v9616_v10 = vld [vmem:[#allocation2 + $0x48] sm:$0xff] }
 0xa62   :  { %8536 = vtanh.f32 %v1871_v13 }
 0xa66   :  { %v8531_v63 = vpop.eup %8530 }
 0xa67   :  { %1884 = vrot.lane.b32.xlu0 %v8531_v63, %s8941_s24 }
 0xa68   :  { %v8533_v14 = vpop.eup %8532 }
 0xa69   :  { %1886 = vrot.lane.b32.xlu1 %v8533_v14, %s8941_s24 }
 0xa6a   :  { %v8535_v1 = vpop.eup %8534 }
 0xa6b   :  { %1888 = vrot.lane.b32.xlu0 %v8535_v1, %s8941_s24 }
 0xa6c   :  { %v8537_v60 = vpop.eup %8536 }
 0xa6d   :  { %1890 = vrot.lane.b32.xlu1 %v8537_v60, %s8941_s24 }
 0xa6f   :  { %2182 = vrot.lane.b32.xlu0 %v9497_v19, %s8941_s24 }
 0xa71   :  { %2184 = vrot.lane.b32.xlu1 %v9499_v21, %s8941_s24 }
 0xa73   :  { %2186 = vrot.lane.b32.xlu0 %v9508_v38, %s8941_s24 }
 0xa75   :  { %2188 = vrot.lane.b32.xlu1 %v9510_v25, %s8941_s24 }
 0xad9   :  { %v1885_v57 = vpop.permute.xlu0 %1884 }
 0xada   :  { %v1896_v59 = vmul.f32 %v1885_v57, %v1876_v12 }
 0xadb   :  { %v1887_v4 = vpop.permute.xlu1 %1886 }
 0xadc   :  { %v1897_v5 = vmul.f32 %v1887_v4, %v1877_v3  ;;  %v9553_v7 = vadd.f32 %v1896_v59, %v9434_v29 }
 0xadd   :  { %v1889_v9 = vpop.permute.xlu0 %1888 }
 0xade   :  { %v9556_v62 = vadd.f32 %v1897_v5, %v9437_v30  ;;  %v1898_v6 = vmul.f32 %v1889_v9, %v1878_v0 }
 0xadf   :  { %v1891_v2 = vpop.permute.xlu1 %1890 }
 0xae0   :  { %v1899_v24 = vmul.f32 %v1891_v2, %v1879_v8  ;;  %v2362_v11 = vpack.c.bf16 %v9556_v62, %v9553_v7  ;;  %v9562_v28 = vadd.f32 %v1898_v6, %v9445_v37 }
 0xae1   :  { %v2183_v6 = vpop.permute.xlu0 %2182 }
 0xae2   :  { %v9565_v23 = vadd.f32 %v1899_v24, %v9440_v31  ;;  %2366 = vrot.lane.b32.xlu0 %v2362_v11, %s8941_s24 }
 0xae3   :  { %v2185_v8 = vpop.permute.xlu1 %2184 }
 0xae4   :  { %v2363_v29 = vpack.c.bf16 %v9565_v23, %v9562_v28 }
 0xae6   :  { %2368 = vrot.lane.b32.xlu1 %v2363_v29, %s8941_s24  ;;  %v2187_v29 = vpop.permute.xlu0 %2186 }
 0xb25   :  { %v7908_v30 = vpop.f32.mrb[56].mxu1 }
 0xb26   :  { %v1972_v27 = vpop.f32.mrb[57].mxu1 }
 0xb27   :  { %v7909_v16 = vpop.f32.mrb[58].mxu1 }
 0xb28   :  { %v1988_v61 = vpack.c.bf16 %v7909_v16, %v7908_v30  ;;  %v1975_v17 = vpop.f32.mrb[59].mxu1  ;;  %v2189_v30 = vpop.permute.xlu1 %2188 }
 0xb29   :  { %v1987_v18 = vpack.c.bf16 %v1975_v17, %v1972_v27 }
 0xb2b   :  { %7910 = vmatprep.subr.bf16.mxu0 %v1987_v18 }
 0xb2c   :  { %7911 = vmatpush3.bf16.msra.mxu0 %v1987_v18 }
 0xb2d   :  { %7912 = vmatprep.subr.bf16.mxu0 %v1988_v61  ;;  %v7924_v37 = vpop.f32.mrb[60].mxu1 }
 0xb2e   :  { %v2078_v22 = vpop.f32.mrb[61].mxu1 }
 0xb2f   :  { %v7925_v31 = vpop.f32.mrb[62].mxu1 }
 0xb30   :  { %7913 = vmatpush3.bf16.msra.mxu0 %v1988_v61  ;;  %v2094_v36 = vpack.c.bf16 %v7925_v31, %v7924_v37  ;;  %v2081_v39 = vpop.f32.mrb[63].mxu1 }
 0xb31   :  { %7926 = vmatprep.subr.bf16.mxu0 %v9574_v20  ;;  %v2093_v34 = vpack.c.bf16 %v2081_v39, %v2078_v22 }
 0xb33   :  { %7915 = vmatmul.mubr.msk.bf16.vlgmr.msra.gmra.mrb[60].mxu0 %vm425_vm2, %v9528_v50 }
 0xb34   :  { %7927 = vmatpush3.bf16.msra.mxu0 %v9574_v20  ;;  %7930 = vmatprep.mubr.msk.bf16.mxu0 %vm425_vm2, %v2093_v34 }
 0xb35   :  { %7928 = vmatprep.subr.bf16.mxu0 %v9584_v33 }
 0xb38   :  { %7929 = vmatpush3.bf16.msra.mxu0 %v9584_v33 }
 0xb39   :  { %7942 = vmatprep.subr.bf16.mxu0 %v9591_v35 }
 0xb3b   :  { %7931 = vmatmul.mubr.msk.bf16.vlgmr.msra.gmra.mrb[64].mxu0 %vm425_vm2, %v2094_v36 }
 0xb3c   :  { %7943 = vmatpush3.bf16.msra.mxu0 %v9591_v35 }
 0xb3d   :  { %7944 = vmatprep.subr.bf16.mxu0 %v9260_v58 }
 0xb40   :  { %7945 = vmatpush3.bf16.msra.mxu0 %v9260_v58 }
 0xb41   :  { %7958 = vmatprep.subr.bf16.mxu0 %v9379_v47 }
 0xb54   :  { %v2367_v31 = vpop.permute.xlu0 %2366 }
 0xb58   :  { %v2369_v36 = vpop.permute.xlu1 %2368 }
 0xc06   :  { %v9599_v26 = vpop.f32.mrb[60].mxu0 }
 0xc07   :  { %v9601_v44 = vpop.f32.mrb[61].mxu0 }
 0xc08   :  { %v9603_v41 = vpop.f32.mrb[62].mxu0 }
 0xc09   :  { %v9605_v42 = vpop.f32.mrb[63].mxu0 }
 0xc0e   :  { %v7932_v15 = vpop.f32.mrb[64].mxu0 }
 0xc0f   :  { %v2152_v45 = vadd.f32 %v7932_v15, %v9607_v32  ;;  %v2135_v49 = vpop.f32.mrb[65].mxu0 }
 0xc10   :  { %v2150_v58 = vadd.f32 %v2135_v49, %v9610_v46  ;;  %v7933_v52 = vpop.f32.mrb[66].mxu0 }
 0xc11   :  { %v7164_v55 = vmul.f32 -1.442695, %v2152_v45  ;;  %v2153_v56 = vadd.f32 %v7933_v52, %v9613_v51  ;;  %v2138_v13 = vpop.f32.mrb[67].mxu0 }
 0xc12   :  { %v7162_v63 = vmul.f32 -1.442695, %v2150_v58  ;;  %v2151_v14 = vadd.f32 %v2138_v13, %v9616_v10 }
 0xc13   :  { %8538 = vpow2.f32 %v7164_v55  ;;  %v7165_v1 = vmul.f32 -1.442695, %v2153_v56 }
 0xc14   :  { %8540 = vpow2.f32 %v7162_v63  ;;  %v7163_v60 = vmul.f32 -1.442695, %v2151_v14 }
 0xc15   :  { %8542 = vpow2.f32 %v7165_v1 }
 0xc16   :  { %8544 = vpow2.f32 %v7163_v60 }
 0xc1d   :  { %v8539_v12 = vpop.eup %8538 }
 0xc1e   :  { %v8541_v57 = vpop.eup %8540  ;;  %v2168_v59 = vadd.f32 1.0, %v8539_v12 }
 0xc1f   :  { %v8543_v3 = vpop.eup %8542  ;;  %v2166_v4 = vadd.f32 1.0, %v8541_v57 }
 0xc20   :  { %v8545_v5 = vpop.eup %8544  ;;  %8546 = vrcp.f32 %v2168_v59  ;;  %v2169_v0 = vadd.f32 1.0, %v8543_v3 }
 0xc21   :  { %8548 = vrcp.f32 %v2166_v4  ;;  %v2167_v9 = vadd.f32 1.0, %v8545_v5  ;;  %v9668_v4 = vadd.f32 %v9399_v54, %v9605_v42 }
 0xc22   :  { %8550 = vrcp.f32 %v2169_v0  ;;  %v9673_v0 = vadd.f32 %v9599_v26, %v9399_v54 }
 0xc23   :  { %8552 = vrcp.f32 %v2167_v9 }
 0xc2a   :  { %v9619_v2 = vpop.eup %8546 }
 0xc2b   :  { %v9621_v24 = vpop.eup %8548  ;;  %v2196_v16 = vmul.f32 %v9619_v2, %v2187_v29 }
 0xc2c   :  { %v9623_v11 = vpop.eup %8550  ;;  %v2194_v17 = vmul.f32 %v9621_v24, %v2183_v6  ;;  %v9678_v6 = vadd.f32 %v9603_v41, %v9399_v54 }
 0xc2d   :  { %v9625_v27 = vpop.eup %8552  ;;  %v2197_v61 = vmul.f32 %v9623_v11, %v2189_v30 }
 0xc2e   :  { %v2195_v18 = vmul.f32 %v9625_v27, %v2185_v8 }
 0xc2f   :  { %v2199_v37 = vpack.c.bf16 %v2197_v61, %v2196_v16 }
 0xc30   :  { %v2198_v22 = vpack.c.bf16 %v2195_v18, %v2194_v17 }
 0xc32   :  { %7934 = vmatprep.subr.bf16.mxu1 %v2198_v22 }
 0xc33   :  { %7935 = vmatpush3.bf16.msra.mxu1 %v2198_v22 }
 0xc34   :  { %7936 = vmatprep.subr.bf16.mxu1 %v2199_v37 }
 0xc37   :  { %7937 = vmatpush3.bf16.msra.mxu1 %v2199_v37 }
 0xc38   :  { %7950 = vmatprep.subr.bf16.mxu1 %v2367_v31 }
 0xc3a   :  { %7939 = vmatmul.mubr.msk.bf16.vlgmr.msra.gmra.mrb[64].mxu1 %vm425_vm2, %v9528_v50 }
 0xc3b   :  { %7951 = vmatpush3.bf16.msra.mxu1 %v2367_v31  ;;  %7954 = vmatprep.mubr.msk.bf16.mxu1 %vm425_vm2, %v9478_v53 }
 0xc3c   :  { %7952 = vmatprep.subr.bf16.mxu1 %v2369_v36 }
 0xc3f   :  { %7953 = vmatpush3.bf16.msra.mxu1 %v2369_v36 }
 0xc42   :  { %7955 = vmatmul.mubr.msk.bf16.vlgmr.msra.gmra.mrb[68].mxu1 %vm425_vm2, %v9528_v50 }
 0xc43   :  { %7970 = vmatprep.mubr.msk.bf16.mxu1 %vm425_vm2, %v9478_v53 }
 0xd0d   :  { %v7940_v39 = vpop.f32.mrb[64].mxu1 }
 0xd0e   :  { %v2234_v34 = vpop.f32.mrb[65].mxu1 }
 0xd0f   :  { %v7941_v15 = vpop.f32.mrb[66].mxu1 }
 0xd10   :  { %v2250_v45 = vpack.c.bf16 %v7941_v15, %v7940_v39  ;;  %v2237_v49 = vpop.f32.mrb[67].mxu1 }
 0xd11   :  { %v2249_v58 = vpack.c.bf16 %v2237_v49, %v2234_v34 }
 0xd13   :  { %7946 = vmatprep.mubr.msk.bf16.mxu0 %vm425_vm2, %v2249_v58 }
 0xd14   :  { %7947 = vmatmul.mubr.msk.bf16.vlgmr.msra.gmra.mrb[68].mxu0 %vm425_vm2, %v2250_v45 }
 0xd15   :  { %v7956_v52 = vpop.f32.mrb[68].mxu1  ;;  %7959 = vmatpush3.bf16.msra.mxu0 %v9379_v47 }
 0xd16   :  { %v2406_v55 = vpop.f32.mrb[69].mxu1  ;;  %7960 = vmatprep.subr.bf16.mxu0 %v9385_v48 }
 0xd17   :  { %v7957_v56 = vpop.f32.mrb[70].mxu1 }
 0xd18   :  { %v2422_v13 = vpack.c.bf16 %v7957_v56, %v7956_v52  ;;  %v2409_v63 = vpop.f32.mrb[71].mxu1 }
 0xd19   :  { %v2421_v14 = vpack.c.bf16 %v2409_v63, %v2406_v55  ;;  %7961 = vmatpush3.bf16.msra.mxu0 %v9385_v48 }
 0xd1a   :  { %7974 = vmatprep.subr.bf16.mxu0 %v9458_v40 }
 0xd1b   :  { %7962 = vmatprep.mubr.msk.bf16.mxu0 %vm425_vm2, %v2421_v14 }
 0xd1c   :  { %7963 = vmatmul.mubr.msk.bf16.vlgmr.msra.gmra.mrb[72].mxu0 %vm425_vm2, %v2422_v13 }
 0xd1d   :  { %7975 = vmatpush3.bf16.msra.mxu0 %v9458_v40 }
 0xd1e   :  { %7976 = vmatprep.subr.bf16.mxu0 %v9465_v43 }
 0xd21   :  { %7977 = vmatpush3.bf16.msra.mxu0 %v9465_v43  ;;  %v9664_v43 = vadd.f32 %v9399_v54, %v9601_v44 }
 0xde7   :  { %v7948_v1 = vpop.f32.mrb[68].mxu0 }
 0xde8   :  { %v2291_v60 = vpop.f32.mrb[69].mxu0 }
 0xde9   :  { %2310 = vrot.lane.b32.xlu0 %v2291_v60, %s8940_s23  ;;  %v7949_v12 = vpop.f32.mrb[70].mxu0 }
 0xdea   :  { %v2294_v57 = vpop.f32.mrb[71].mxu0 }
 0xdeb   :  { %2312 = vrot.lane.b32.xlu1 %v2294_v57, %s8940_s23 }
 0xded   :  { %2314 = vrot.lane.b32.xlu0 %v7948_v1, %s8940_s23 }
 0xdef   :  { %2316 = vrot.lane.b32.xlu1 %v7949_v12, %s8940_s23  ;;  %v7964_v48 = vpop.f32.mrb[72].mxu0 }
 0xdf0   :  { %v2463_v59 = vpop.f32.mrb[73].mxu0  ;;  %v2480_v8 = vadd.f32 %v7964_v48, %v9673_v0 }
 0xdf1   :  { %1908 = vrot.lane.b32.xlu0 %v9553_v7, %s8941_s24  ;;  %v7965_v40 = vpop.f32.mrb[74].mxu0  ;;  %v2478_v5 = vadd.f32 %v2463_v59, %v9664_v43 }
 0xdf2   :  { %v2466_v3 = vpop.f32.mrb[75].mxu0  ;;  %v2481_v29 = vadd.f32 %v7965_v40, %v9678_v6  ;;  %v7176_v42 = vmul.f32 -1.442695, %v2480_v8  ;;  %v2334_v8 = vsub.f32 1.0, %v9621_v24 }
 0xdf3   :  { %1910 = vrot.lane.b32.xlu1 %v9556_v62, %s8941_s24  ;;  %v2479_v9 = vadd.f32 %v2466_v3, %v9668_v4  ;;  %v7174_v44 = vmul.f32 -1.442695, %v2478_v5  ;;  %v9709_v5 = vld [vmem:[%s11203_s6] sm:$0xff]  }
 0xdf4   :  { %v7177_v16 = vmul.f32 -1.442695, %v2481_v29 }
 0xdf5   :  { %1912 = vrot.lane.b32.xlu0 %v9562_v28, %s8941_s24  ;;  %v7175_v30 = vmul.f32 -1.442695, %v2479_v9  ;;  %8554 = vpow2.f32 %v7174_v44  ;;  %v9718_v9 = vld [vmem:[%s11203_s6 + $0x8] sm:$0xff]  }
 0xdf7   :  { %1914 = vrot.lane.b32.xlu1 %v9565_v23, %s8941_s24  ;;  %8556 = vpow2.f32 %v7175_v30  ;;  %v2335_v30 = vsub.f32 1.0, %v9625_v27 }
 0xdf8   :  { %8558 = vpow2.f32 %v7176_v42 }
 0xdf9   :  { %8560 = vpow2.f32 %v7177_v16  ;;  %v2330_v16 = vmul.f32 %v9621_v24, %v9497_v19  ;;  %v2333_v19 = vmul.f32 %v9623_v11, %v9510_v25 }
 0xdff   :  { %v8555_v26 = vpop.eup %8554 }
 0xe00   :  { %v2494_v18 = vadd.f32 1.0, %v8555_v26  ;;  %v2331_v26 = vmul.f32 %v9625_v27, %v9499_v21 }
 0xe01   :  { %v8557_v61 = vpop.eup %8556 }
 0xe02   :  { %v8559_v17 = vpop.eup %8558  ;;  %v2495_v37 = vadd.f32 1.0, %v8557_v61  ;;  %8562 = vrcp.f32 %v2494_v18 }
 0xe03   :  { %v8561_v22 = vpop.eup %8560  ;;  %v2496_v54 = vadd.f32 1.0, %v8559_v17  ;;  %v2336_v17 = vsub.f32 1.0, %v9619_v2 }
 0xe04   :  { %v2497_v41 = vadd.f32 1.0, %v8561_v22  ;;  %8564 = vrcp.f32 %v2495_v37 }
 0xe05   :  { %8566 = vrcp.f32 %v2496_v54 }
 0xe0c   :  { %v9686_v55 = vpop.eup %8562 }
 0xe5b   :  { %v2311_v31 = vpop.permute.xlu0 %2310 }
 0xe5c   :  { %v2322_v36 = vadd.f32 %v2311_v31, %v9610_v46  ;;  %v9689_v46 = vpop.eup %8564 }
 0xe5d   :  { %v2313_v39 = vpop.permute.xlu1 %2312 }
 0xe5e   :  { %8568 = vtanh.f32 %v2322_v36  ;;  %v2323_v34 = vadd.f32 %v2313_v39, %v9616_v10  ;;  %v2332_v36 = vmul.f32 %v9619_v2, %v9508_v38 }
 0xe5f   :  { %8570 = vrcp.f32 %v2497_v41  ;;  %v2315_v15 = vpop.permute.xlu0 %2314  ;;  %v2337_v41 = vsub.f32 1.0, %v9623_v11 }
 0xe60   :  { %8572 = vtanh.f32 %v2323_v34  ;;  %v2324_v45 = vadd.f32 %v2315_v15, %v9607_v32  ;;  %v9694_v32 = vpop.eup %8566 }
 0xe61   :  { %v2317_v49 = vpop.permute.xlu1 %2316 }
 0xe62   :  { %8574 = vtanh.f32 %v2324_v45  ;;  %v2325_v58 = vadd.f32 %v2317_v49, %v9613_v51 }
 0xe63   :  { %v1909_v52 = vpop.permute.xlu0 %1908 }
 0xe64   :  { %8576 = vtanh.f32 %v2325_v58  ;;  %1920 = vst.msk [vmem:[#allocation5] sm:$0xff] %vm425_vm2, %v1909_v52  ;;  %v2506_v10 = vmul.f32 %v9686_v55, %v1909_v52 }
 0xe65   :  { %v1911_v56 = vpop.permute.xlu1 %1910 }
 0xe66   :  { %1921 = vst.msk [vmem:[#allocation5 + $0x8] sm:$0xff] %vm425_vm2, %v1911_v56  ;;  %v2507_v13 = vmul.f32 %v9689_v46, %v1911_v56 }
 0xe67   :  { %v1913_v63 = vpop.permute.xlu0 %1912 }
 0xe68   :  { %v8569_v14 = vpop.eup %8568  ;;  %1922 = vst.msk [vmem:[#allocation5 + $0x10] sm:$0xff] %vm425_vm2, %v1913_v63  ;;  %v2510_v51 = vpack.c.bf16 %v2507_v13, %v2506_v10  ;;  %v2508_v57 = vmul.f32 %v9694_v32, %v1913_v63 }
 0xe69   :  { %v9697_v1 = vpop.eup %8570  ;;  %2342 = vrot.lane.b32.xlu0 %v8569_v14, %s8941_s24  ;;  %v1915_v60 = vpop.permute.xlu1 %1914 }
 0xe6a   :  { %v8573_v12 = vpop.eup %8572  ;;  %1923 = vst.msk [vmem:[#allocation5 + $0x18] sm:$0xff] %vm425_vm2, %v1915_v60  ;;  %v2509_v48 = vmul.f32 %v9697_v1, %v1915_v60  ;;  %7966 = vmatprep.subr.bf16.mxu1 %v2510_v51 }
 0xe6b   :  { %2344 = vrot.lane.b32.xlu1 %v8573_v12, %s8941_s24  ;;  %7967 = vmatpush3.bf16.msra.mxu1 %v2510_v51 }
 0xe6c   :  { %v8575_v59 = vpop.eup %8574  ;;  %v2511_v40 = vpack.c.bf16 %v2509_v48, %v2508_v57 }
 0xe6d   :  { %2346 = vrot.lane.b32.xlu0 %v8575_v59, %s8941_s24 }
 0xe6e   :  { %v8577_v3 = vpop.eup %8576  ;;  %7968 = vmatprep.subr.bf16.mxu1 %v2511_v40 }
 0xe6f   :  { %2348 = vrot.lane.b32.xlu1 %v8577_v3, %s8941_s24  ;;  %7969 = vmatpush3.bf16.msra.mxu1 %v2511_v40 }
 0xe70   :  { %7982 = vmatprep.subr.bf16.mxu1 %v9709_v5 }
 0xe72   :  { %7971 = vmatmul.mubr.msk.bf16.vlgmr.msra.gmra.mrb[72].mxu1 %vm425_vm2, %v9528_v50 }
 0xe73   :  { %7983 = vmatpush3.bf16.msra.mxu1 %v9709_v5 }
 0xe74   :  { %7984 = vmatprep.subr.bf16.mxu1 %v9718_v9 }
 0xe77   :  { %7985 = vmatpush3.bf16.msra.mxu1 %v9718_v9 }
 0xedb   :  { %v2343_v44 = vpop.permute.xlu0 %2342 }
 0xedc   :  { %v2354_v29 = vmul.f32 %v2343_v44, %v2334_v8 }
 0xedd   :  { %v2345_v42 = vpop.permute.xlu1 %2344 }
 0xede   :  { %v2355_v61 = vmul.f32 %v2345_v42, %v2335_v30  ;;  %v9729_v37 = vadd.f32 %v2354_v29, %v2330_v16  ;;  %v9777_v29 = vld [vmem:[%s11201_s4 + $0x8] sm:$0xff]  }
 0xedf   :  { %v2347_v18 = vpop.permute.xlu0 %2346 }
 0xee0   :  { %v9731_v22 = vadd.f32 %v2355_v61, %v2331_v26  ;;  %v2356_v54 = vmul.f32 %v2347_v18, %v2336_v17 }
 0xee1   :  { %v2349_v31 = vpop.permute.xlu1 %2348 }
 0xee2   :  { %v2357_v24 = vmul.f32 %v2349_v31, %v2337_v41  ;;  %v2695_v21 = vpack.c.bf16 %v9731_v22, %v9729_v37  ;;  %v9740_v27 = vadd.f32 %v2356_v54, %v2332_v36  ;;  %v2646_v41 = vsub.f32 1.0, %v9686_v55 }
 0xee3   :  { %v2647_v36 = vsub.f32 1.0, %v9689_v46 }
 0xee4   :  { %v9742_v39 = vadd.f32 %v2357_v24, %v2333_v19  ;;  %2699 = vrot.lane.b32.xlu0 %v2695_v21, %s8941_s24  ;;  %v2643_v21 = vmul.f32 %v9689_v46, %v9556_v62  ;;  %v2649_v62 = vsub.f32 1.0, %v9697_v1 }
 0xee6   :  { %v2696_v34 = vpack.c.bf16 %v9742_v39, %v9740_v27 }
 0xee8   :  { %2701 = vrot.lane.b32.xlu1 %v2696_v34, %s8941_s24 }
 0xf45   :  { %v7972_v15 = vpop.f32.mrb[72].mxu1 }
 0xf46   :  { %v2546_v38 = vpop.f32.mrb[73].mxu1 }
 0xf47   :  { %v7973_v2 = vpop.f32.mrb[74].mxu1 }
 0xf48   :  { %v2562_v45 = vpack.c.bf16 %v7973_v2, %v7972_v15  ;;  %v2549_v25 = vpop.f32.mrb[75].mxu1  ;;  %v2648_v15 = vsub.f32 1.0, %v9694_v32 }
 0xf49   :  { %v2561_v11 = vpack.c.bf16 %v2549_v25, %v2546_v38  ;;  %v2642_v38 = vmul.f32 %v9686_v55, %v9553_v7 }
 0xf4b   :  { %7978 = vmatprep.mubr.msk.bf16.mxu0 %vm425_vm2, %v2561_v11 }
 0xf4c   :  { %7979 = vmatmul.mubr.msk.bf16.vlgmr.msra.gmra.mrb[76].mxu0 %vm425_vm2, %v2562_v45  ;;  %v9813_v45 = vld [vmem:[#allocation2 + $0x70] sm:$0xff] }
 0xf4d   :  { %7994 = vmatprep.mubr.msk.bf16.mxu0 %vm425_vm2, %v9478_v53 }
 0xf56   :  { %v2700_v49 = vpop.permute.xlu0 %2699 }
 0xf57   :  { %7986 = vmatprep.mubr.msk.bf16.mxu1 %vm425_vm2, %v2700_v49  ;;  %7998 = vmatprep.subr.bf16.mxu1 %v2700_v49 }
 0xf5a   :  { %v2702_v58 = vpop.permute.xlu1 %2701 }
 0xf5b   :  { %7987 = vmatmul.mubr.msk.bf16.vlgmr.msra.gmra.mrb[76].mxu1 %vm425_vm2, %v2702_v58 }
 0xf5c   :  { %7999 = vmatpush3.bf16.msra.mxu1 %v2700_v49  ;;  %8002 = vmatprep.mubr.msk.bf16.mxu1 %vm425_vm2, %v9478_v53 }
 0xf5d   :  { %8000 = vmatprep.subr.bf16.mxu1 %v2702_v58 }
 0xf60   :  { %8001 = vmatpush3.bf16.msra.mxu1 %v2702_v58 }
 0xf63   :  { %8003 = vmatmul.mubr.msk.bf16.vlgmr.msra.gmra.mrb[80].mxu1 %vm425_vm2, %v9528_v50 }
 0xf64   :  { %8018 = vmatprep.mubr.msk.bf16.mxu1 %vm425_vm2, %v9478_v53 }
0x101f   :  { %v7980_v52 = vpop.f32.mrb[76].mxu0 }
0x1020   :  { %v2603_v56 = vpop.f32.mrb[77].mxu0 }
0x1021   :  { %2622 = vrot.lane.b32.xlu0 %v2603_v56, %s8940_s23  ;;  %v7981_v10 = vpop.f32.mrb[78].mxu0 }
0x1022   :  { %v2606_v13 = vpop.f32.mrb[79].mxu0 }
0x1023   :  { %2624 = vrot.lane.b32.xlu1 %v2606_v13, %s8940_s23  ;;  %v9826_v13 = vld [vmem:[#allocation2 + $0x78] sm:$0xff] }
0x1025   :  { %2626 = vrot.lane.b32.xlu0 %v7980_v52, %s8940_s23  ;;  %v9818_v52 = vld [vmem:[#allocation2 + $0x60] sm:$0xff] }
0x1027   :  { %2628 = vrot.lane.b32.xlu1 %v7981_v10, %s8940_s23  ;;  %v2644_v10 = vmul.f32 %v9694_v32, %v9562_v28 }
0x102e   :  { %v7988_v63 = vpop.f32.mrb[76].mxu1 }
0x102f   :  { %v2743_v14 = vpop.f32.mrb[77].mxu1 }
0x1030   :  { %v7989_v51 = vpop.f32.mrb[78].mxu1 }
0x1031   :  { %v2759_v60 = vpack.c.bf16 %v7989_v51, %v7988_v63  ;;  %v2746_v12 = vpop.f32.mrb[79].mxu1  ;;  %v2645_v51 = vmul.f32 %v9697_v1, %v9565_v23 }
0x1032   :  { %v2758_v57 = vpack.c.bf16 %v2746_v12, %v2743_v14 }
0x1034   :  { %7990 = vmatprep.subr.bf16.mxu0 %v2758_v57 }
0x1035   :  { %7991 = vmatpush3.bf16.msra.mxu0 %v2758_v57  ;;  %v9831_v57 = vld [vmem:[#allocation2 + $0x68] sm:$0xff] }
0x1036   :  { %7992 = vmatprep.subr.bf16.mxu0 %v2759_v60  ;;  %v8004_v48 = vpop.f32.mrb[80].mxu1 }
0x1037   :  { %v2849_v59 = vpop.f32.mrb[81].mxu1 }
0x1038   :  { %v8005_v40 = vpop.f32.mrb[82].mxu1 }
0x1039   :  { %7993 = vmatpush3.bf16.msra.mxu0 %v2759_v60  ;;  %v2865_v3 = vpack.c.bf16 %v8005_v40, %v8004_v48  ;;  %v2852_v8 = vpop.f32.mrb[83].mxu1 }
0x103a   :  { %8006 = vmatprep.subr.bf16.mxu0 %v9574_v20  ;;  %v2864_v44 = vpack.c.bf16 %v2852_v8, %v2849_v59 }
0x103c   :  { %7995 = vmatmul.mubr.msk.bf16.vlgmr.msra.gmra.mrb[80].mxu0 %vm425_vm2, %v9528_v50 }
0x103d   :  { %8007 = vmatpush3.bf16.msra.mxu0 %v9574_v20  ;;  %8010 = vmatprep.mubr.msk.bf16.mxu0 %vm425_vm2, %v2864_v44 }
0x103e   :  { %8008 = vmatprep.subr.bf16.mxu0 %v9584_v33 }
0x1041   :  { %8009 = vmatpush3.bf16.msra.mxu0 %v9584_v33 }
0x1042   :  { %8022 = vmatprep.subr.bf16.mxu0 %v9591_v35 }
0x1044   :  { %8011 = vmatmul.mubr.msk.bf16.vlgmr.msra.gmra.mrb[84].mxu0 %vm425_vm2, %v2865_v3 }
0x1045   :  { %8023 = vmatpush3.bf16.msra.mxu0 %v9591_v35 }
0x1046   :  { %8024 = vmatprep.subr.bf16.mxu0 %v9777_v29 }
0x1049   :  { %8025 = vmatpush3.bf16.msra.mxu0 %v9777_v29 }
0x104a   :  { %8038 = vmatprep.subr.bf16.mxu0 %v9379_v47 }
0x1093   :  { %v2623_v20 = vpop.permute.xlu0 %2622 }
0x1094   :  { %v2634_v33 = vadd.f32 %v2623_v20, %v9664_v43 }
0x1095   :  { %v2625_v30 = vpop.permute.xlu1 %2624 }
0x1096   :  { %8578 = vtanh.f32 %v2634_v33  ;;  %v2635_v42 = vadd.f32 %v2625_v30, %v9668_v4 }
0x1097   :  { %v2627_v16 = vpop.permute.xlu0 %2626 }
0x1098   :  { %8580 = vtanh.f32 %v2635_v42  ;;  %v2636_v35 = vadd.f32 %v2627_v16, %v9673_v0 }
0x1099   :  { %v2629_v26 = vpop.permute.xlu1 %2628 }
0x109a   :  { %8582 = vtanh.f32 %v2636_v35  ;;  %v2637_v61 = vadd.f32 %v2629_v26, %v9678_v6 }
0x109c   :  { %8584 = vtanh.f32 %v2637_v61 }
0x10a0   :  { %v8579_v17 = vpop.eup %8578 }
0x10a1   :  { %2654 = vrot.lane.b32.xlu0 %v8579_v17, %s8941_s24 }
0x10a2   :  { %v8581_v47 = vpop.eup %8580 }
0x10a3   :  { %2656 = vrot.lane.b32.xlu1 %v8581_v47, %s8941_s24 }
0x10a4   :  { %v8583_v43 = vpop.eup %8582 }
0x10a5   :  { %2658 = vrot.lane.b32.xlu0 %v8583_v43, %s8941_s24 }
0x10a6   :  { %v8585_v18 = vpop.eup %8584 }
0x10a7   :  { %2660 = vrot.lane.b32.xlu1 %v8585_v18, %s8941_s24 }
0x10a9   :  { %2953 = vrot.lane.b32.xlu0 %v9729_v37, %s8941_s24 }
0x10ab   :  { %2955 = vrot.lane.b32.xlu1 %v9731_v22, %s8941_s24 }
0x10ad   :  { %2957 = vrot.lane.b32.xlu0 %v9740_v27, %s8941_s24 }
0x10af   :  { %2959 = vrot.lane.b32.xlu1 %v9742_v39, %s8941_s24 }
0x110f   :  { %v9798_v4 = vpop.f32.mrb[80].mxu0 }
0x1110   :  { %v9800_v0 = vpop.f32.mrb[81].mxu0 }
0x1111   :  { %v9802_v6 = vpop.f32.mrb[82].mxu0 }
0x1112   :  { %v9804_v54 = vpop.f32.mrb[83].mxu0 }
0x1113   :  { %v2655_v31 = vpop.permute.xlu0 %2654 }
0x1114   :  { %v2666_v19 = vmul.f32 %v2655_v31, %v2646_v41 }
0x1115   :  { %v2657_v24 = vpop.permute.xlu1 %2656 }
0x1116   :  { %v2667_v34 = vmul.f32 %v2657_v24, %v2647_v36  ;;  %v9821_v46 = vadd.f32 %v2666_v19, %v2642_v38 }
0x1117   :  { %v2659_v2 = vpop.permute.xlu0 %2658  ;;  %v8012_v25 = vpop.f32.mrb[84].mxu0 }
0x1118   :  { %v9815_v11 = vadd.f32 %v2667_v34, %v2643_v21  ;;  %v2668_v49 = vmul.f32 %v2659_v2, %v2648_v15  ;;  %v2923_v58 = vadd.f32 %v8012_v25, %v9813_v45  ;;  %v2906_v56 = vpop.f32.mrb[85].mxu0 }
0x1119   :  { %v2921_v7 = vadd.f32 %v2906_v56, %v9818_v52  ;;  %v2661_v55 = vpop.permute.xlu1 %2660  ;;  %v8013_v63 = vpop.f32.mrb[86].mxu0 }
0x111a   :  { %v7192_v14 = vmul.f32 -1.442695, %v2923_v58  ;;  %v2669_v60 = vmul.f32 %v2661_v55, %v2649_v62  ;;  %v2924_v12 = vadd.f32 %v8013_v63, %v9826_v13  ;;  %v2909_v48 = vpop.f32.mrb[87].mxu0  ;;  %v3133_v28 = vpack.c.bf16 %v9815_v11, %v9821_v46  ;;  %v9869_v55 = vld [vmem:[%s11204_s7] sm:$0xff]  }
0x111b   :  { %v7190_v59 = vmul.f32 -1.442695, %v2921_v7  ;;  %v2922_v40 = vadd.f32 %v2909_v48, %v9831_v57  ;;  %v9836_v32 = vadd.f32 %v2668_v49, %v2644_v10  ;;  %v2954_v61 = vpop.permute.xlu0 %2953 }
0x111c   :  { %8586 = vpow2.f32 %v7192_v14  ;;  %v9838_v3 = vadd.f32 %v2669_v60, %v2645_v51  ;;  %v7193_v8 = vmul.f32 -1.442695, %v2924_v12  ;;  %3137 = vrot.lane.b32.xlu0 %v3133_v28, %s8941_s24 }
0x111d   :  { %8588 = vpow2.f32 %v7190_v59  ;;  %v7191_v23 = vmul.f32 -1.442695, %v2922_v40  ;;  %v2956_v17 = vpop.permute.xlu1 %2955  ;;  %v9891_v59 = vld [vmem:[%s11205_s8 + $0x8] sm:$0xff]  }
0x111e   :  { %8590 = vpow2.f32 %v7193_v8  ;;  %v3134_v1 = vpack.c.bf16 %v9838_v3, %v9836_v32 }
0x111f   :  { %8592 = vpow2.f32 %v7191_v23  ;;  %v2958_v41 = vpop.permute.xlu0 %2957 }
0x1120   :  { %3139 = vrot.lane.b32.xlu1 %v3134_v1, %s8941_s24 }
0x1121   :  { %v2960_v31 = vpop.permute.xlu1 %2959 }
0x1126   :  { %v8587_v44 = vpop.eup %8586 }
0x1127   :  { %v8589_v20 = vpop.eup %8588  ;;  %v2939_v33 = vadd.f32 1.0, %v8587_v44 }
0x1128   :  { %v8591_v30 = vpop.eup %8590  ;;  %v2937_v42 = vadd.f32 1.0, %v8589_v20 }
0x1129   :  { %v8593_v16 = vpop.eup %8592  ;;  %8594 = vrcp.f32 %v2939_v33  ;;  %v2940_v35 = vadd.f32 1.0, %v8591_v30  ;;  %v9910_v33 = vld [vmem:[%s11206_s9] ss:$0 sm:$0xff] }
0x112a   :  { %8596 = vrcp.f32 %v2937_v42  ;;  %v2938_v26 = vadd.f32 1.0, %v8593_v16  ;;  %v9914_v30 = vadd.f32 %v9910_v33, %v9800_v0  ;;  %v9918_v16 = vadd.f32 %v9910_v33, %v9804_v54 }
0x112b   :  { %8598 = vrcp.f32 %v2940_v35 }
0x112c   :  { %8600 = vrcp.f32 %v2938_v26  ;;  %v9923_v26 = vadd.f32 %v9910_v33, %v9798_v4 }
0x1133   :  { %v9844_v47 = vpop.eup %8594 }
0x1134   :  { %v9846_v43 = vpop.eup %8596  ;;  %v2967_v19 = vmul.f32 %v9844_v47, %v2958_v41 }
0x1135   :  { %v9848_v18 = vpop.eup %8598  ;;  %v2965_v21 = vmul.f32 %v9846_v43, %v2954_v61 }
0x1136   :  { %v9850_v36 = vpop.eup %8600  ;;  %v2968_v24 = vmul.f32 %v9848_v18, %v2960_v31 }
0x1137   :  { %v2966_v34 = vmul.f32 %v9850_v36, %v2956_v17  ;;  %v9928_v17 = vadd.f32 %v9910_v33, %v9802_v6 }
0x1138   :  { %v2970_v15 = vpack.c.bf16 %v2968_v24, %v2967_v19 }
0x1139   :  { %v2969_v38 = vpack.c.bf16 %v2966_v34, %v2965_v21 }
0x113b   :  { %8014 = vmatprep.subr.bf16.mxu1 %v2969_v38 }
0x113c   :  { %8015 = vmatpush3.bf16.msra.mxu1 %v2969_v38 }
0x113d   :  { %8016 = vmatprep.subr.bf16.mxu1 %v2970_v15 }
0x1140   :  { %8017 = vmatpush3.bf16.msra.mxu1 %v2970_v15 }
0x1143   :  { %8019 = vmatmul.mubr.msk.bf16.vlgmr.msra.gmra.mrb[84].mxu1 %vm425_vm2, %v9528_v50 }
0x1144   :  { %8034 = vmatprep.mubr.msk.bf16.mxu1 %vm425_vm2, %v9478_v53 }
0x118e   :  { %v3138_v2 = vpop.permute.xlu0 %3137 }
0x118f   :  { %8030 = vmatprep.subr.bf16.mxu1 %v3138_v2 }
0x1190   :  { %8031 = vmatpush3.bf16.msra.mxu1 %v3138_v2 }
0x1192   :  { %v3140_v25 = vpop.permute.xlu1 %3139 }
0x1193   :  { %8032 = vmatprep.subr.bf16.mxu1 %v3140_v25 }
0x1194   :  { %8033 = vmatpush3.bf16.msra.mxu1 %v3140_v25 }
0x1197   :  { %8035 = vmatmul.mubr.msk.bf16.vlgmr.msra.gmra.mrb[88].mxu1 %vm425_vm2, %v9528_v50  ;;  %v9882_v50 = vld [vmem:[%s11205_s8] sm:$0xff]  }
0x1198   :  { %8050 = vmatprep.mubr.msk.bf16.mxu1 %vm425_vm2, %v9478_v53  ;;  %v9875_v53 = vld [vmem:[%s11204_s7 + $0x8] sm:$0xff]  }
0x1216   :  { %v8020_v49 = vpop.f32.mrb[84].mxu1 }
0x1217   :  { %v3005_v58 = vpop.f32.mrb[85].mxu1 }
0x1218   :  { %v8021_v56 = vpop.f32.mrb[86].mxu1 }
0x1219   :  { %v3021_v62 = vpack.c.bf16 %v8021_v56, %v8020_v49  ;;  %v3008_v10 = vpop.f32.mrb[87].mxu1 }
0x121a   :  { %v3020_v7 = vpack.c.bf16 %v3008_v10, %v3005_v58 }
0x121c   :  { %8026 = vmatprep.mubr.msk.bf16.mxu0 %vm425_vm2, %v3020_v7 }
0x121d   :  { %8027 = vmatmul.mubr.msk.bf16.vlgmr.msra.gmra.mrb[88].mxu0 %vm425_vm2, %v3021_v62 }
0x121e   :  { %8039 = vmatpush3.bf16.msra.mxu0 %v9869_v55 }
0x121f   :  { %8040 = vmatprep.subr.bf16.mxu0 %v9875_v53 }
0x1222   :  { %8041 = vmatpush3.bf16.msra.mxu0 %v9875_v53 }
0x1223   :  { %8054 = vmatprep.subr.bf16.mxu0 %v9882_v50 }
0x126a   :  { %v8036_v63 = vpop.f32.mrb[88].mxu1 }
0x126b   :  { %v3177_v14 = vpop.f32.mrb[89].mxu1 }
0x126c   :  { %v8037_v51 = vpop.f32.mrb[90].mxu1 }
0x126d   :  { %v3193_v60 = vpack.c.bf16 %v8037_v51, %v8036_v63  ;;  %v3180_v12 = vpop.f32.mrb[91].mxu1 }
0x126e   :  { %v3192_v48 = vpack.c.bf16 %v3180_v12, %v3177_v14 }
0x1270   :  { %8042 = vmatprep.mubr.msk.bf16.mxu0 %vm425_vm2, %v3192_v48 }
0x1271   :  { %8043 = vmatmul.mubr.msk.bf16.vlgmr.msra.gmra.mrb[92].mxu0 %vm425_vm2, %v3193_v60 }
0x1272   :  { %8055 = vmatpush3.bf16.msra.mxu0 %v9882_v50 }
0x1273   :  { %8056 = vmatprep.subr.bf16.mxu0 %v9891_v59 }
0x1276   :  { %8057 = vmatpush3.bf16.msra.mxu0 %v9891_v59 }
0x12f0   :  { %v8028_v40 = vpop.f32.mrb[88].mxu0 }
0x12f1   :  { %v3062_v28 = vpop.f32.mrb[89].mxu0 }
0x12f2   :  { %3081 = vrot.lane.b32.xlu0 %v3062_v28, %s8940_s23  ;;  %v8029_v8 = vpop.f32.mrb[90].mxu0 }
0x12f3   :  { %v3065_v23 = vpop.f32.mrb[91].mxu0 }
0x12f4   :  { %3083 = vrot.lane.b32.xlu1 %v3065_v23, %s8940_s23 }
0x12f6   :  { %3085 = vrot.lane.b32.xlu0 %v8028_v40, %s8940_s23 }
0x12f8   :  { %3087 = vrot.lane.b32.xlu1 %v8029_v8, %s8940_s23 }
0x12fa   :  { %2678 = vrot.lane.b32.xlu0 %v9821_v46, %s8941_s24 }
0x12fc   :  { %2680 = vrot.lane.b32.xlu1 %v9815_v11, %s8941_s24 }
0x12fe   :  { %2682 = vrot.lane.b32.xlu0 %v9836_v32, %s8941_s24 }
0x1300   :  { %2684 = vrot.lane.b32.xlu1 %v9838_v3, %s8941_s24 }
0x1344   :  { %v8044_v1 = vpop.f32.mrb[92].mxu0 }
0x1345   :  { %v3234_v44 = vpop.f32.mrb[93].mxu0  ;;  %v3251_v0 = vadd.f32 %v8044_v1, %v9923_v26 }
0x1346   :  { %v8045_v20 = vpop.f32.mrb[94].mxu0  ;;  %v3249_v35 = vadd.f32 %v3234_v44, %v9914_v30 }
0x1347   :  { %v3237_v42 = vpop.f32.mrb[95].mxu0  ;;  %v3252_v31 = vadd.f32 %v8045_v20, %v9928_v17  ;;  %v7204_v54 = vmul.f32 -1.442695, %v3251_v0  ;;  %v9960_v0 = vld [vmem:[%s11197_s0 + $0x8] sm:$0xff]  }
0x1348   :  { %v3250_v61 = vadd.f32 %v3237_v42, %v9918_v16  ;;  %v7202_v41 = vmul.f32 -1.442695, %v3249_v35 }
0x1349   :  { %v7205_v24 = vmul.f32 -1.442695, %v3252_v31 }
0x134a   :  { %v7203_v19 = vmul.f32 -1.442695, %v3250_v61  ;;  %8602 = vpow2.f32 %v7202_v41  ;;  %v3105_v41 = vsub.f32 1.0, %v9846_v43 }
0x134c   :  { %8604 = vpow2.f32 %v7203_v19 }
0x134d   :  { %8606 = vpow2.f32 %v7204_v54  ;;  %v3106_v54 = vsub.f32 1.0, %v9850_v36 }
0x134e   :  { %8608 = vpow2.f32 %v7205_v24 }
0x1354   :  { %v8603_v4 = vpop.eup %8602 }
0x1355   :  { %v3265_v15 = vadd.f32 1.0, %v8603_v4  ;;  %v3101_v4 = vmul.f32 %v9846_v43, %v9729_v37  ;;  %v3104_v37 = vmul.f32 %v9848_v18, %v9742_v39 }
0x1356   :  { %v8605_v21 = vpop.eup %8604 }
0x1357   :  { %v8607_v34 = vpop.eup %8606  ;;  %v3266_v38 = vadd.f32 1.0, %v8605_v21  ;;  %8610 = vrcp.f32 %v3265_v15  ;;  %v3102_v21 = vmul.f32 %v9850_v36, %v9731_v22 }
0x1358   :  { %v8609_v2 = vpop.eup %8608  ;;  %v3267_v6 = vadd.f32 1.0, %v8607_v34 }
0x1359   :  { %v3268_v25 = vadd.f32 1.0, %v8609_v2  ;;  %8612 = vrcp.f32 %v3266_v38 }
0x135a   :  { %8614 = vrcp.f32 %v3267_v6  ;;  %v3108_v6 = vsub.f32 1.0, %v9848_v18 }
0x1361   :  { %v9936_v60 = vpop.eup %8610 }
0x1364   :  { %v3082_v49 = vpop.permute.xlu0 %3081 }
0x1365   :  { %v3093_v58 = vadd.f32 %v3082_v49, %v9818_v52  ;;  %v9939_v52 = vpop.eup %8612  ;;  %v3103_v49 = vmul.f32 %v9844_v47, %v9740_v27 }
0x1366   :  { %v3084_v56 = vpop.permute.xlu1 %3083 }
0x1367   :  { %8616 = vtanh.f32 %v3093_v58  ;;  %v3094_v62 = vadd.f32 %v3084_v56, %v9831_v57 }
0x1368   :  { %8618 = vrcp.f32 %v3268_v25  ;;  %v3086_v10 = vpop.permute.xlu0 %3085 }
0x1369   :  { %8620 = vtanh.f32 %v3094_v62  ;;  %v3095_v7 = vadd.f32 %v3086_v10, %v9813_v45  ;;  %v9944_v45 = vpop.eup %8614 }
0x136a   :  { %v3088_v63 = vpop.permute.xlu1 %3087 }
0x136b   :  { %8622 = vtanh.f32 %v3095_v7  ;;  %v3096_v14 = vadd.f32 %v3088_v63, %v9826_v13  ;;  %v9998_v7 = vld [vmem:[%s11197_s0] sm:$0xff]  }
0x136c   :  { %v2679_v51 = vpop.permute.xlu0 %2678 }
0x136d   :  { %8624 = vtanh.f32 %v3096_v14  ;;  %2691 = vst.msk [vmem:[#allocation5 + $0x20] sm:$0xff] %vm425_vm2, %v2679_v51  ;;  %v3277_v57 = vmul.f32 %v9936_v60, %v2679_v51 }
0x136e   :  { %v2681_v12 = vpop.permute.xlu1 %2680 }
0x136f   :  { %2692 = vst.msk [vmem:[#allocation5 + $0x28] sm:$0xff] %vm425_vm2, %v2681_v12  ;;  %v3278_v48 = vmul.f32 %v9939_v52, %v2681_v12 }
0x1370   :  { %v2683_v40 = vpop.permute.xlu0 %2682 }
0x1371   :  { %v8617_v28 = vpop.eup %8616  ;;  %2693 = vst.msk [vmem:[#allocation5 + $0x30] sm:$0xff] %vm425_vm2, %v2683_v40  ;;  %v3281_v13 = vpack.c.bf16 %v3278_v48, %v3277_v57  ;;  %v3279_v44 = vmul.f32 %v9944_v45, %v2683_v40 }
0x1372   :  { %v9947_v8 = vpop.eup %8618  ;;  %3113 = vrot.lane.b32.xlu0 %v8617_v28, %s8941_s24  ;;  %v2685_v23 = vpop.permute.xlu1 %2684 }
0x1373   :  { %v8621_v1 = vpop.eup %8620  ;;  %2694 = vst.msk [vmem:[#allocation5 + $0x38] sm:$0xff] %vm425_vm2, %v2685_v23  ;;  %v3280_v20 = vmul.f32 %v9947_v8, %v2685_v23  ;;  %8046 = vmatprep.subr.bf16.mxu1 %v3281_v13 }
0x1374   :  { %3115 = vrot.lane.b32.xlu1 %v8621_v1, %s8941_s24  ;;  %8047 = vmatpush3.bf16.msra.mxu1 %v3281_v13 }
0x1375   :  { %v8623_v42 = vpop.eup %8622  ;;  %v3282_v35 = vpack.c.bf16 %v3280_v20, %v3279_v44 }
0x1376   :  { %3117 = vrot.lane.b32.xlu0 %v8623_v42, %s8941_s24 }
0x1377   :  { %v8625_v61 = vpop.eup %8624  ;;  %8048 = vmatprep.subr.bf16.mxu1 %v3282_v35 }
0x1378   :  { %3119 = vrot.lane.b32.xlu1 %v8625_v61, %s8941_s24  ;;  %8049 = vmatpush3.bf16.msra.mxu1 %v3282_v35 }
0x1379   :  { %8062 = vmatprep.subr.bf16.mxu1 %v9709_v5 }
0x137b   :  { %8051 = vmatmul.mubr.msk.bf16.vlgmr.msra.gmra.mrb[92].mxu1 %vm425_vm2, %v9960_v0 }
0x137c   :  { %8063 = vmatpush3.bf16.msra.mxu1 %v9709_v5  ;;  %v3107_v5 = vsub.f32 1.0, %v9844_v47 }
0x137d   :  { %8064 = vmatprep.subr.bf16.mxu1 %v9718_v9 }
0x1380   :  { %8065 = vmatpush3.bf16.msra.mxu1 %v9718_v9 }
0x13e4   :  { %v3114_v31 = vpop.permute.xlu0 %3113 }
0x13e5   :  { %v3125_v19 = vmul.f32 %v3114_v31, %v3105_v41  ;;  %v10017_v31 = vld [vmem:[%s11200_s3] sm:$0xff]  }
0x13e6   :  { %v3116_v24 = vpop.permute.xlu1 %3115 }
0x13e7   :  { %v3126_v34 = vmul.f32 %v3116_v24, %v3106_v54  ;;  %v9974_v38 = vadd.f32 %v3125_v19, %v3101_v4  ;;  %v10027_v54 = vld [vmem:[%s11200_s3 + $0x8] sm:$0xff]   ;;  %v10034_v24 = vld [vmem:[%s11201_s4] sm:$0xff]  }
0x13e8   :  { %v3118_v15 = vpop.permute.xlu0 %3117 }
0x13e9   :  { %v9976_v9 = vadd.f32 %v3126_v34, %v3102_v21  ;;  %v3127_v2 = vmul.f32 %v3118_v15, %v3107_v5 }
0x13ea   :  { %v3120_v25 = vpop.permute.xlu1 %3119 }
0x13eb   :  { %v3128_v43 = vmul.f32 %v3120_v25, %v3108_v6  ;;  %v3466_v22 = vpack.c.bf16 %v9976_v9, %v9974_v38  ;;  %v9985_v36 = vadd.f32 %v3127_v2, %v3103_v49 }
0x13ed   :  { %v9987_v58 = vadd.f32 %v3128_v43, %v3104_v37  ;;  %3470 = vrot.lane.b32.xlu0 %v3466_v22, %s8941_s24  ;;  %v3417_v22 = vsub.f32 1.0, %v9936_v60 }
0x13ef   :  { %v3467_v56 = vpack.c.bf16 %v9987_v58, %v9985_v36 }
0x13f1   :  { %3472 = vrot.lane.b32.xlu1 %v3467_v56, %s8941_s24 }
0x144e   :  { %v8052_v62 = vpop.f32.mrb[92].mxu1 }
0x144f   :  { %v3317_v27 = vpop.f32.mrb[93].mxu1 }
0x1450   :  { %v8053_v47 = vpop.f32.mrb[94].mxu1 }
0x1451   :  { %v3333_v10 = vpack.c.bf16 %v8053_v47, %v8052_v62  ;;  %v3320_v39 = vpop.f32.mrb[95].mxu1  ;;  %v3418_v62 = vsub.f32 1.0, %v9939_v52 }
0x1452   :  { %v3332_v18 = vpack.c.bf16 %v3320_v39, %v3317_v27 }
0x1454   :  { %8058 = vmatprep.mubr.msk.bf16.mxu0 %vm425_vm2, %v3332_v18  ;;  %v3419_v18 = vsub.f32 1.0, %v9944_v45 }
0x1455   :  { %8059 = vmatmul.mubr.msk.bf16.vlgmr.msra.gmra.mrb[96].mxu0 %vm425_vm2, %v3333_v10  ;;  %v3414_v10 = vmul.f32 %v9939_v52, %v9815_v11  ;;  %v3420_v11 = vsub.f32 1.0, %v9947_v8 }
0x1456   :  { %8074 = vmatprep.mubr.msk.bf16.mxu0 %vm425_vm2, %v9998_v7 }
0x145f   :  { %v3471_v63 = vpop.permute.xlu0 %3470 }
0x1460   :  { %8066 = vmatprep.mubr.msk.bf16.mxu1 %vm425_vm2, %v3471_v63  ;;  %8078 = vmatprep.subr.bf16.mxu1 %v3471_v63 }
0x1463   :  { %v3473_v14 = vpop.permute.xlu1 %3472 }
0x1464   :  { %8067 = vmatmul.mubr.msk.bf16.vlgmr.msra.gmra.mrb[96].mxu1 %vm425_vm2, %v3473_v14 }
0x1465   :  { %8079 = vmatpush3.bf16.msra.mxu1 %v3471_v63  ;;  %8082 = vmatprep.mubr.msk.bf16.mxu1 %vm425_vm2, %v9998_v7  ;;  %v3413_v63 = vmul.f32 %v9936_v60, %v9821_v46 }
0x1466   :  { %8080 = vmatprep.subr.bf16.mxu1 %v3473_v14 }
0x1469   :  { %8081 = vmatpush3.bf16.msra.mxu1 %v3473_v14 }
0x146c   :  { %8083 = vmatmul.mubr.msk.bf16.vlgmr.msra.gmra.mrb[100].mxu1 %vm425_vm2, %v9960_v0 }
0x146d   :  { %8098 = vmatprep.mubr.msk.bf16.mxu1 %vm425_vm2, %v9998_v7 }
0x1528   :  { %v8060_v51 = vpop.f32.mrb[96].mxu0 }
0x1529   :  { %v3374_v12 = vpop.f32.mrb[97].mxu0 }
0x152a   :  { %3393 = vrot.lane.b32.xlu0 %v3374_v12, %s8940_s23  ;;  %v8061_v57 = vpop.f32.mrb[98].mxu0 }
0x152b   :  { %v3377_v48 = vpop.f32.mrb[99].mxu0 }
0x152c   :  { %3395 = vrot.lane.b32.xlu1 %v3377_v48, %s8940_s23 }
0x152e   :  { %3397 = vrot.lane.b32.xlu0 %v8060_v51, %s8940_s23  ;;  %v10073_v51 = vld [vmem:[#allocation2 + $0x90] sm:$0xff] }
0x1530   :  { %3399 = vrot.lane.b32.xlu1 %v8061_v57, %s8940_s23 }
0x1537   :  { %v8068_v40 = vpop.f32.mrb[96].mxu1 }
0x1538   :  { %v3514_v28 = vpop.f32.mrb[97].mxu1 }
0x1539   :  { %v8069_v13 = vpop.f32.mrb[98].mxu1 }
0x153a   :  { %v3530_v23 = vpack.c.bf16 %v8069_v13, %v8068_v40  ;;  %v3517_v1 = vpop.f32.mrb[99].mxu1 }
0x153b   :  { %v3529_v44 = vpack.c.bf16 %v3517_v1, %v3514_v28  ;;  %v10078_v28 = vld [vmem:[#allocation2 + $0x80] sm:$0xff]  ;;  %v10086_v1 = vld [vmem:[#allocation2 + $0x98] sm:$0xff] }
0x153d   :  { %8070 = vmatprep.subr.bf16.mxu0 %v3529_v44 }
0x153e   :  { %8071 = vmatpush3.bf16.msra.mxu0 %v3529_v44 }
0x153f   :  { %8072 = vmatprep.subr.bf16.mxu0 %v3530_v23  ;;  %v8084_v20 = vpop.f32.mrb[100].mxu1 }
0x1540   :  { %v3620_v42 = vpop.f32.mrb[101].mxu1 }
0x1541   :  { %v8085_v35 = vpop.f32.mrb[102].mxu1 }
0x1542   :  { %8073 = vmatpush3.bf16.msra.mxu0 %v3530_v23  ;;  %v3636_v61 = vpack.c.bf16 %v8085_v35, %v8084_v20  ;;  %v3623_v41 = vpop.f32.mrb[103].mxu1  ;;  %v3415_v23 = vmul.f32 %v9944_v45, %v9836_v32 }
0x1543   :  { %8086 = vmatprep.subr.bf16.mxu0 %v10017_v31  ;;  %v3635_v19 = vpack.c.bf16 %v3623_v41, %v3620_v42  ;;  %v3416_v42 = vmul.f32 %v9947_v8, %v9838_v3  ;;  %v10091_v41 = vld [vmem:[#allocation2 + $0x88] sm:$0xff] }
0x1545   :  { %8075 = vmatmul.mubr.msk.bf16.vlgmr.msra.gmra.mrb[100].mxu0 %vm425_vm2, %v9960_v0 }
0x1546   :  { %8087 = vmatpush3.bf16.msra.mxu0 %v10017_v31  ;;  %8090 = vmatprep.mubr.msk.bf16.mxu0 %vm425_vm2, %v3635_v19 }
0x1547   :  { %8088 = vmatprep.subr.bf16.mxu0 %v10027_v54 }
0x154a   :  { %8089 = vmatpush3.bf16.msra.mxu0 %v10027_v54 }
0x154b   :  { %8102 = vmatprep.subr.bf16.mxu0 %v10034_v24 }
0x154d   :  { %8091 = vmatmul.mubr.msk.bf16.vlgmr.msra.gmra.mrb[104].mxu0 %vm425_vm2, %v3636_v61 }
0x154e   :  { %8103 = vmatpush3.bf16.msra.mxu0 %v10034_v24 }
0x154f   :  { %8104 = vmatprep.subr.bf16.mxu0 %v9777_v29 }
0x1552   :  { %8105 = vmatpush3.bf16.msra.mxu0 %v9777_v29 }
0x1553   :  { %8118 = vmatprep.subr.bf16.mxu0 %v9869_v55 }
0x159c   :  { %v3394_v4 = vpop.permute.xlu0 %3393 }
0x159d   :  { %v3405_v21 = vadd.f32 %v3394_v4, %v9914_v30 }
0x159e   :  { %v3396_v34 = vpop.permute.xlu1 %3395 }
0x159f   :  { %8626 = vtanh.f32 %v3405_v21  ;;  %v3406_v5 = vadd.f32 %v3396_v34, %v9918_v16 }
0x15a0   :  { %v3398_v15 = vpop.permute.xlu0 %3397 }
0x15a1   :  { %8628 = vtanh.f32 %v3406_v5  ;;  %v3407_v2 = vadd.f32 %v3398_v15, %v9923_v26 }
0x15a2   :  { %v3400_v6 = vpop.permute.xlu1 %3399 }
0x15a3   :  { %8630 = vtanh.f32 %v3407_v2  ;;  %v3408_v25 = vadd.f32 %v3400_v6, %v9928_v17 }
0x15a5   :  { %8632 = vtanh.f32 %v3408_v25 }
0x15a9   :  { %v8627_v49 = vpop.eup %8626 }
0x15aa   :  { %3425 = vrot.lane.b32.xlu0 %v8627_v49, %s8941_s24 }
0x15ab   :  { %v8629_v29 = vpop.eup %8628 }
0x15ac   :  { %3427 = vrot.lane.b32.xlu1 %v8629_v29, %s8941_s24 }
0x15ad   :  { %v8631_v30 = vpop.eup %8630 }
0x15ae   :  { %3429 = vrot.lane.b32.xlu0 %v8631_v30, %s8941_s24 }
0x15af   :  { %v8633_v37 = vpop.eup %8632 }
0x15b0   :  { %3431 = vrot.lane.b32.xlu1 %v8633_v37, %s8941_s24 }
0x15b2   :  { %3724 = vrot.lane.b32.xlu0 %v9974_v38, %s8941_s24 }
0x15b4   :  { %3726 = vrot.lane.b32.xlu1 %v9976_v9, %s8941_s24 }
0x15b6   :  { %3728 = vrot.lane.b32.xlu0 %v9985_v36, %s8941_s24 }
0x15b8   :  { %3730 = vrot.lane.b32.xlu1 %v9987_v58, %s8941_s24 }
0x1618   :  { %v10058_v16 = vpop.f32.mrb[100].mxu0 }
0x1619   :  { %v10060_v26 = vpop.f32.mrb[101].mxu0 }
0x161a   :  { %v10062_v17 = vpop.f32.mrb[102].mxu0 }
0x161b   :  { %v10064_v43 = vpop.f32.mrb[103].mxu0 }
0x161c   :  { %v3426_v56 = vpop.permute.xlu0 %3425 }
0x161d   :  { %v3437_v27 = vmul.f32 %v3426_v56, %v3417_v22 }
0x161e   :  { %v3428_v47 = vpop.permute.xlu1 %3427 }
0x161f   :  { %v3438_v39 = vmul.f32 %v3428_v47, %v3418_v62  ;;  %v10081_v52 = vadd.f32 %v3437_v27, %v3413_v63 }
0x1620   :  { %v3430_v14 = vpop.permute.xlu0 %3429  ;;  %v8092_v12 = vpop.f32.mrb[104].mxu0 }
0x1621   :  { %v10075_v57 = vadd.f32 %v3438_v39, %v3414_v10  ;;  %v3439_v48 = vmul.f32 %v3430_v14, %v3419_v18  ;;  %v3694_v40 = vadd.f32 %v8092_v12, %v10073_v51  ;;  %v3677_v13 = vpop.f32.mrb[105].mxu0 }
0x1622   :  { %v3692_v46 = vadd.f32 %v3677_v13, %v10078_v28  ;;  %v3432_v60 = vpop.permute.xlu1 %3431  ;;  %v8093_v44 = vpop.f32.mrb[106].mxu0 }
0x1623   :  { %v7220_v20 = vmul.f32 -1.442695, %v3694_v40  ;;  %v3440_v35 = vmul.f32 %v3432_v60, %v3420_v11  ;;  %v3695_v61 = vadd.f32 %v8093_v44, %v10086_v1  ;;  %v3680_v19 = vpop.f32.mrb[107].mxu0  ;;  %v3904_v32 = vpack.c.bf16 %v10075_v57, %v10081_v52 }
0x1624   :  { %v7218_v4 = vmul.f32 -1.442695, %v3692_v46  ;;  %v3693_v21 = vadd.f32 %v3680_v19, %v10091_v41  ;;  %v10096_v45 = vadd.f32 %v3439_v48, %v3415_v23  ;;  %v3725_v22 = vpop.permute.xlu0 %3724 }
0x1625   :  { %8634 = vpow2.f32 %v7220_v20  ;;  %v10098_v34 = vadd.f32 %v3440_v35, %v3416_v42  ;;  %v7221_v5 = vmul.f32 -1.442695, %v3695_v61  ;;  %3908 = vrot.lane.b32.xlu0 %v3904_v32, %s8941_s24 }
0x1626   :  { %8636 = vpow2.f32 %v7218_v4  ;;  %v7219_v3 = vmul.f32 -1.442695, %v3693_v21  ;;  %v3727_v56 = vpop.permute.xlu1 %3726 }
0x1627   :  { %8638 = vpow2.f32 %v7221_v5  ;;  %v3905_v8 = vpack.c.bf16 %v10098_v34, %v10096_v45 }
0x1628   :  { %8640 = vpow2.f32 %v7219_v3  ;;  %v3729_v10 = vpop.permute.xlu0 %3728 }
0x1629   :  { %3910 = vrot.lane.b32.xlu1 %v3905_v8, %s8941_s24 }
0x162a   :  { %v3731_v39 = vpop.permute.xlu1 %3730 }
0x162f   :  { %v8635_v15 = vpop.eup %8634 }
0x1630   :  { %v8637_v2 = vpop.eup %8636  ;;  %v3710_v6 = vadd.f32 1.0, %v8635_v15 }
0x1631   :  { %v8639_v25 = vpop.eup %8638  ;;  %v3708_v49 = vadd.f32 1.0, %v8637_v2  ;;  %v10149_v2 = vadd.f32 %v9910_v33, %v10060_v26 }
0x1632   :  { %v8641_v29 = vpop.eup %8640  ;;  %8642 = vrcp.f32 %v3710_v6  ;;  %v3711_v30 = vadd.f32 1.0, %v8639_v25  ;;  %v10153_v25 = vadd.f32 %v9910_v33, %v10064_v43 }
0x1633   :  { %8644 = vrcp.f32 %v3708_v49  ;;  %v3709_v37 = vadd.f32 1.0, %v8641_v29 }
0x1634   :  { %8646 = vrcp.f32 %v3711_v30 }
0x1635   :  { %8648 = vrcp.f32 %v3709_v37  ;;  %v10159_v37 = vadd.f32 %v9910_v33, %v10058_v16 }
0x163c   :  { %v10104_v62 = vpop.eup %8642 }
0x163d   :  { %v10106_v27 = vpop.eup %8644  ;;  %v3738_v63 = vmul.f32 %v10104_v62, %v3729_v10 }
0x163e   :  { %v10108_v47 = vpop.eup %8646  ;;  %v3736_v12 = vmul.f32 %v10106_v27, %v3725_v22  ;;  %v10163_v22 = vadd.f32 %v9910_v33, %v10062_v17 }
0x163f   :  { %v10110_v18 = vpop.eup %8648  ;;  %v3739_v14 = vmul.f32 %v10108_v47, %v3731_v39 }
0x1640   :  { %v3737_v48 = vmul.f32 %v10110_v18, %v3727_v56 }
0x1641   :  { %v3741_v40 = vpack.c.bf16 %v3739_v14, %v3738_v63 }
0x1642   :  { %v3740_v13 = vpack.c.bf16 %v3737_v48, %v3736_v12 }
0x1644   :  { %8094 = vmatprep.subr.bf16.mxu1 %v3740_v13 }
0x1645   :  { %8095 = vmatpush3.bf16.msra.mxu1 %v3740_v13 }
0x1646   :  { %8096 = vmatprep.subr.bf16.mxu1 %v3741_v40 }
0x1649   :  { %8097 = vmatpush3.bf16.msra.mxu1 %v3741_v40 }
0x164c   :  { %8099 = vmatmul.mubr.msk.bf16.vlgmr.msra.gmra.mrb[104].mxu1 %vm425_vm2, %v9960_v0 }
0x164d   :  { %8114 = vmatprep.mubr.msk.bf16.mxu1 %vm425_vm2, %v9998_v7 }
0x1697   :  { %v3909_v11 = vpop.permute.xlu0 %3908 }
0x1698   :  { %8110 = vmatprep.subr.bf16.mxu1 %v3909_v11 }
0x1699   :  { %8111 = vmatpush3.bf16.msra.mxu1 %v3909_v11 }
0x169b   :  { %v3911_v23 = vpop.permute.xlu1 %3910 }
0x169c   :  { %8112 = vmatprep.subr.bf16.mxu1 %v3911_v23 }
0x169d   :  { %8113 = vmatpush3.bf16.msra.mxu1 %v3911_v23 }
0x16a0   :  { %8115 = vmatmul.mubr.msk.bf16.vlgmr.msra.gmra.mrb[108].mxu1 %vm425_vm2, %v9960_v0 }
0x16a1   :  { %8130 = vmatprep.mubr.msk.bf16.mxu1 %vm425_vm2, %v9998_v7 }
0x171f   :  { %v8100_v46 = vpop.f32.mrb[104].mxu1 }
0x1720   :  { %v3776_v60 = vpop.f32.mrb[105].mxu1 }
0x1721   :  { %v8101_v44 = vpop.f32.mrb[106].mxu1 }
0x1722   :  { %v3792_v20 = vpack.c.bf16 %v8101_v44, %v8100_v46  ;;  %v3779_v42 = vpop.f32.mrb[107].mxu1 }
0x1723   :  { %v3791_v35 = vpack.c.bf16 %v3779_v42, %v3776_v60 }
0x1725   :  { %8106 = vmatprep.mubr.msk.bf16.mxu0 %vm425_vm2, %v3791_v35 }
0x1726   :  { %8107 = vmatmul.mubr.msk.bf16.vlgmr.msra.gmra.mrb[108].mxu0 %vm425_vm2, %v3792_v20 }
0x1727   :  { %8119 = vmatpush3.bf16.msra.mxu0 %v9869_v55 }
0x1728   :  { %8120 = vmatprep.subr.bf16.mxu0 %v9875_v53 }
0x172b   :  { %8121 = vmatpush3.bf16.msra.mxu0 %v9875_v53 }
0x172c   :  { %8134 = vmatprep.subr.bf16.mxu0 %v9882_v50 }
0x1773   :  { %v8116_v61 = vpop.f32.mrb[108].mxu1 }
0x1774   :  { %v3948_v19 = vpop.f32.mrb[109].mxu1 }
0x1775   :  { %v8117_v4 = vpop.f32.mrb[110].mxu1 }
0x1776   :  { %v3964_v21 = vpack.c.bf16 %v8117_v4, %v8116_v61  ;;  %v3951_v32 = vpop.f32.mrb[111].mxu1 }
0x1777   :  { %v3963_v5 = vpack.c.bf16 %v3951_v32, %v3948_v19 }
0x1779   :  { %8122 = vmatprep.mubr.msk.bf16.mxu0 %vm425_vm2, %v3963_v5 }
0x177a   :  { %8123 = vmatmul.mubr.msk.bf16.vlgmr.msra.gmra.mrb[112].mxu0 %vm425_vm2, %v3964_v21 }
0x177b   :  { %8135 = vmatpush3.bf16.msra.mxu0 %v9882_v50 }
0x177c   :  { %8136 = vmatprep.subr.bf16.mxu0 %v9891_v59 }
0x177f   :  { %8137 = vmatpush3.bf16.msra.mxu0 %v9891_v59 }
0x17f9   :  { %v8108_v3 = vpop.f32.mrb[108].mxu0 }
0x17fa   :  { %3856 = vrot.lane.b32.xlu0 %v8108_v3, %s8940_s23  ;;  %v3833_v53 = vpop.f32.mrb[109].mxu0 }
0x17fb   :  { %v8109_v8 = vpop.f32.mrb[110].mxu0 }
0x17fc   :  { %3858 = vrot.lane.b32.xlu1 %v8109_v8, %s8940_s23  ;;  %v3836_v15 = vpop.f32.mrb[111].mxu0 }
0x17fe   :  { %3852 = vrot.lane.b32.xlu0 %v3833_v53, %s8940_s23 }
0x1800   :  { %3854 = vrot.lane.b32.xlu1 %v3836_v15, %s8940_s23 }
0x1802   :  { %3449 = vrot.lane.b32.xlu0 %v10081_v52, %s8941_s24 }
0x1804   :  { %3451 = vrot.lane.b32.xlu1 %v10075_v57, %s8941_s24 }
0x1806   :  { %3453 = vrot.lane.b32.xlu0 %v10096_v45, %s8941_s24 }
0x1808   :  { %3455 = vrot.lane.b32.xlu1 %v10098_v34, %s8941_s24 }
0x184d   :  { %v8124_v50 = vpop.f32.mrb[112].mxu0 }
0x184e   :  { %v4005_v59 = vpop.f32.mrb[113].mxu0  ;;  %v4022_v26 = vadd.f32 %v8124_v50, %v10159_v37 }
0x184f   :  { %v8125_v6 = vpop.f32.mrb[114].mxu0  ;;  %v4020_v29 = vadd.f32 %v4005_v59, %v10149_v2 }
0x1850   :  { %v4008_v49 = vpop.f32.mrb[115].mxu0  ;;  %v4023_v10 = vadd.f32 %v8125_v6, %v10163_v22  ;;  %v7232_v39 = vmul.f32 -1.442695, %v4022_v26  ;;  %v3876_v26 = vsub.f32 1.0, %v10106_v27 }
0x1851   :  { %v4021_v30 = vadd.f32 %v4008_v49, %v10153_v25  ;;  %v7230_v56 = vmul.f32 -1.442695, %v4020_v29  ;;  %v10192_v49 = vld [vmem:[%s11203_s6] sm:$0xff]  }
0x1852   :  { %v7233_v63 = vmul.f32 -1.442695, %v4023_v10 }
0x1853   :  { %v7231_v43 = vmul.f32 -1.442695, %v4021_v30  ;;  %8650 = vpow2.f32 %v7230_v56  ;;  %v10203_v30 = vld [vmem:[%s11203_s6 + $0x8] sm:$0xff]  }
0x1855   :  { %8652 = vpow2.f32 %v7231_v43  ;;  %v3877_v43 = vsub.f32 1.0, %v10110_v18 }
0x1856   :  { %8654 = vpow2.f32 %v7232_v39 }
0x1857   :  { %8656 = vpow2.f32 %v7233_v63  ;;  %v3872_v63 = vmul.f32 %v10106_v27, %v9974_v38  ;;  %v3875_v38 = vmul.f32 %v10108_v47, %v9987_v58 }
0x185d   :  { %v8651_v14 = vpop.eup %8650 }
0x185e   :  { %v4036_v16 = vadd.f32 1.0, %v8651_v14  ;;  %v3873_v14 = vmul.f32 %v10110_v18, %v9976_v9 }
0x185f   :  { %v8653_v12 = vpop.eup %8652 }
0x1860   :  { %v8655_v48 = vpop.eup %8654  ;;  %v4037_v40 = vadd.f32 1.0, %v8653_v12  ;;  %8658 = vrcp.f32 %v4036_v16  ;;  %v3878_v16 = vsub.f32 1.0, %v10104_v62 }
0x1861   :  { %v8657_v13 = vpop.eup %8656  ;;  %v4038_v33 = vadd.f32 1.0, %v8655_v48 }
0x1862   :  { %v4039_v17 = vadd.f32 1.0, %v8657_v13  ;;  %8660 = vrcp.f32 %v4037_v40 }
0x1863   :  { %8662 = vrcp.f32 %v4038_v33 }
0x1864   :  { %8664 = vrcp.f32 %v4039_v17  ;;  %v3879_v17 = vsub.f32 1.0, %v10108_v47 }
0x186a   :  { %v10170_v61 = vpop.eup %8658 }
0x186c   :  { %v3857_v11 = vpop.permute.xlu0 %3856  ;;  %v10174_v4 = vpop.eup %8660 }
0x186d   :  { %v3866_v20 = vadd.f32 %v3857_v11, %v10073_v51 }
0x186e   :  { %v3859_v23 = vpop.permute.xlu1 %3858 }
0x186f   :  { %v3867_v19 = vadd.f32 %v3859_v23, %v10086_v1  ;;  %v3874_v23 = vmul.f32 %v10104_v62, %v9985_v36 }
0x1870   :  { %v3853_v46 = vpop.permute.xlu0 %3852 }
0x1871   :  { %v3864_v60 = vadd.f32 %v3853_v46, %v10078_v28 }
0x1872   :  { %v3855_v44 = vpop.permute.xlu1 %3854 }
0x1873   :  { %8666 = vtanh.f32 %v3864_v60  ;;  %v3865_v42 = vadd.f32 %v3855_v44, %v10091_v41  ;;  %v10179_v41 = vpop.eup %8662 }
0x1874   :  { %v3450_v35 = vpop.permute.xlu0 %3449  ;;  %v10182_v5 = vpop.eup %8664 }
0x1875   :  { %8668 = vtanh.f32 %v3865_v42  ;;  %3462 = vst.msk [vmem:[#allocation5 + $0x40] sm:$0xff] %vm425_vm2, %v3450_v35  ;;  %v4048_v28 = vmul.f32 %v10170_v61, %v3450_v35 }
0x1876   :  { %v3452_v21 = vpop.permute.xlu1 %3451  ;;  %8670 = vtanh.f32 %v3866_v20 }
0x1877   :  { %3463 = vst.msk [vmem:[#allocation5 + $0x48] sm:$0xff] %vm425_vm2, %v3452_v21  ;;  %v4049_v51 = vmul.f32 %v10174_v4, %v3452_v21  ;;  %8672 = vtanh.f32 %v3867_v19 }
0x1878   :  { %v3454_v32 = vpop.permute.xlu0 %3453 }
0x1879   :  { %3464 = vst.msk [vmem:[#allocation5 + $0x50] sm:$0xff] %vm425_vm2, %v3454_v32  ;;  %v4052_v1 = vpack.c.bf16 %v4049_v51, %v4048_v28  ;;  %v4050_v53 = vmul.f32 %v10179_v41, %v3454_v32 }
0x187a   :  { %v3456_v3 = vpop.permute.xlu1 %3455 }
0x187b   :  { %3465 = vst.msk [vmem:[#allocation5 + $0x58] sm:$0xff] %vm425_vm2, %v3456_v3  ;;  %v4051_v8 = vmul.f32 %v10182_v5, %v3456_v3  ;;  %8126 = vmatprep.subr.bf16.mxu1 %v4052_v1 }
0x187c   :  { %8127 = vmatpush3.bf16.msra.mxu1 %v4052_v1 }
0x187d   :  { %v8667_v15 = vpop.eup %8666  ;;  %v4053_v50 = vpack.c.bf16 %v4051_v8, %v4050_v53 }
0x187e   :  { %3884 = vrot.lane.b32.xlu0 %v8667_v15, %s8941_s24 }
0x187f   :  { %v8669_v59 = vpop.eup %8668  ;;  %8128 = vmatprep.subr.bf16.mxu1 %v4053_v50 }
0x1880   :  { %3886 = vrot.lane.b32.xlu1 %v8669_v59, %s8941_s24  ;;  %8129 = vmatpush3.bf16.msra.mxu1 %v4053_v50  ;;  %v8671_v6 = vpop.eup %8670 }
0x1881   :  { %8142 = vmatprep.subr.bf16.mxu1 %v10192_v49  ;;  %v8673_v29 = vpop.eup %8672 }
0x1882   :  { %3888 = vrot.lane.b32.xlu0 %v8671_v6, %s8941_s24 }
0x1883   :  { %8131 = vmatmul.mubr.msk.bf16.vlgmr.msra.gmra.mrb[112].mxu1 %vm425_vm2, %v9960_v0 }
0x1884   :  { %3890 = vrot.lane.b32.xlu1 %v8673_v29, %s8941_s24  ;;  %8143 = vmatpush3.bf16.msra.mxu1 %v10192_v49 }
0x1885   :  { %8144 = vmatprep.subr.bf16.mxu1 %v10203_v30 }
0x1888   :  { %8145 = vmatpush3.bf16.msra.mxu1 %v10203_v30 }
0x18f0   :  { %v3885_v56 = vpop.permute.xlu0 %3884 }
0x18f1   :  { %v3896_v10 = vmul.f32 %v3885_v56, %v3876_v26 }
0x18f2   :  { %v3887_v39 = vpop.permute.xlu1 %3886 }
0x18f3   :  { %v3897_v12 = vmul.f32 %v3887_v39, %v3877_v43  ;;  %v10214_v40 = vadd.f32 %v3896_v10, %v3872_v63  ;;  %v10262_v10 = vld [vmem:[%s11201_s4 + $0x8] sm:$0xff]  }
0x18f4   :  { %v3889_v48 = vpop.permute.xlu0 %3888 }
0x18f5   :  { %v10216_v13 = vadd.f32 %v3897_v12, %v3873_v14  ;;  %v3898_v33 = vmul.f32 %v3889_v48, %v3878_v16 }
0x18f6   :  { %v3891_v11 = vpop.permute.xlu1 %3890 }
0x18f7   :  { %v3899_v27 = vmul.f32 %v3891_v11, %v3879_v17  ;;  %v4237_v9 = vpack.c.bf16 %v10216_v13, %v10214_v40  ;;  %v10225_v18 = vadd.f32 %v3898_v33, %v3874_v23  ;;  %v4189_v17 = vsub.f32 1.0, %v10174_v4 }
0x18f9   :  { %v10227_v46 = vadd.f32 %v3899_v27, %v3875_v38  ;;  %4241 = vrot.lane.b32.xlu0 %v4237_v9, %s8941_s24  ;;  %v4184_v27 = vmul.f32 %v10170_v61, %v10081_v52  ;;  %v4185_v9 = vmul.f32 %v10174_v4, %v10075_v57  ;;  %v4186_v52 = vmul.f32 %v10179_v41, %v10096_v45 }
0x18fa   :  { %v4187_v57 = vmul.f32 %v10182_v5, %v10098_v34 }
0x18fb   :  { %v4238_v60 = vpack.c.bf16 %v10227_v46, %v10225_v18 }
0x18fd   :  { %4243 = vrot.lane.b32.xlu1 %v4238_v60, %s8941_s24 }
0x1956   :  { %v8132_v44 = vpop.f32.mrb[112].mxu1 }
0x1957   :  { %v4088_v36 = vpop.f32.mrb[113].mxu1 }
0x1958   :  { %v8133_v62 = vpop.f32.mrb[114].mxu1 }
0x1959   :  { %v4104_v20 = vpack.c.bf16 %v8133_v62, %v8132_v44  ;;  %v4091_v58 = vpop.f32.mrb[115].mxu1  ;;  %v4190_v44 = vsub.f32 1.0, %v10179_v41  ;;  %v10320_v41 = vld [vmem:[#allocation2 + $0xb8] sm:$0xff] }
0x195a   :  { %v4103_v47 = vpack.c.bf16 %v4091_v58, %v4088_v36 }
0x195c   :  { %8138 = vmatprep.mubr.msk.bf16.mxu0 %vm425_vm2, %v4103_v47 }
0x195d   :  { %8139 = vmatmul.mubr.msk.bf16.vlgmr.msra.gmra.mrb[116].mxu0 %vm425_vm2, %v4104_v20 }
0x195e   :  { %8154 = vmatprep.mubr.msk.bf16.mxu0 %vm425_vm2, %v9998_v7 }
0x196b   :  { %v4242_v42 = vpop.permute.xlu0 %4241 }
0x196c   :  { %8146 = vmatprep.mubr.msk.bf16.mxu1 %vm425_vm2, %v4242_v42  ;;  %8158 = vmatprep.subr.bf16.mxu1 %v4242_v42 }
0x196f   :  { %v4244_v35 = vpop.permute.xlu1 %4243 }
0x1970   :  { %8147 = vmatmul.mubr.msk.bf16.vlgmr.msra.gmra.mrb[116].mxu1 %vm425_vm2, %v4244_v35 }
0x1971   :  { %8159 = vmatpush3.bf16.msra.mxu1 %v4242_v42  ;;  %8162 = vmatprep.mubr.msk.bf16.mxu1 %vm425_vm2, %v9998_v7  ;;  %v4191_v42 = vsub.f32 1.0, %v10182_v5 }
0x1972   :  { %8160 = vmatprep.subr.bf16.mxu1 %v4244_v35 }
0x1975   :  { %8161 = vmatpush3.bf16.msra.mxu1 %v4244_v35 }
0x1978   :  { %8163 = vmatmul.mubr.msk.bf16.vlgmr.msra.gmra.mrb[120].mxu1 %vm425_vm2, %v9960_v0 }
0x1979   :  { %8178 = vmatprep.mubr.msk.bf16.mxu1 %vm425_vm2, %v9998_v7 }
0x1a30   :  { %v8140_v19 = vpop.f32.mrb[116].mxu0 }
0x1a31   :  { %v4145_v21 = vpop.f32.mrb[117].mxu0 }
0x1a32   :  { %4164 = vrot.lane.b32.xlu0 %v4145_v21, %s8940_s23  ;;  %v8141_v28 = vpop.f32.mrb[118].mxu0 }
0x1a33   :  { %v4148_v51 = vpop.f32.mrb[119].mxu0 }
0x1a34   :  { %4166 = vrot.lane.b32.xlu1 %v4148_v51, %s8940_s23 }
0x1a36   :  { %4168 = vrot.lane.b32.xlu0 %v8140_v19, %s8940_s23  ;;  %v10309_v19 = vld [vmem:[#allocation2 + $0xb0] sm:$0xff] }
0x1a38   :  { %4170 = vrot.lane.b32.xlu1 %v8141_v28, %s8940_s23 }
0x1a43   :  { %v8148_v32 = vpop.f32.mrb[116].mxu1 }
0x1a44   :  { %v4285_v1 = vpop.f32.mrb[117].mxu1 }
0x1a45   :  { %v8149_v3 = vpop.f32.mrb[118].mxu1 }
0x1a46   :  { %v4301_v53 = vpack.c.bf16 %v8149_v3, %v8148_v32  ;;  %v4288_v8 = vpop.f32.mrb[119].mxu1 }
0x1a47   :  { %v4300_v15 = vpack.c.bf16 %v4288_v8, %v4285_v1  ;;  %v10317_v1 = vld [vmem:[#allocation2 + $0xa0] sm:$0xff]  ;;  %v10323_v8 = vld [vmem:[#allocation2 + $0xa8] sm:$0xff] }
0x1a49   :  { %8150 = vmatprep.subr.bf16.mxu0 %v4300_v15 }
0x1a4a   :  { %8151 = vmatpush3.bf16.msra.mxu0 %v4300_v15 }
0x1a4b   :  { %8152 = vmatprep.subr.bf16.mxu0 %v4301_v53  ;;  %v8164_v50 = vpop.f32.mrb[120].mxu1 }
0x1a4c   :  { %v4391_v59 = vpop.f32.mrb[121].mxu1 }
0x1a4d   :  { %v8165_v6 = vpop.f32.mrb[122].mxu1 }
0x1a4e   :  { %8153 = vmatpush3.bf16.msra.mxu0 %v4301_v53  ;;  %v4407_v29 = vpack.c.bf16 %v8165_v6, %v8164_v50  ;;  %v4394_v26 = vpop.f32.mrb[123].mxu1 }
0x1a4f   :  { %8166 = vmatprep.subr.bf16.mxu0 %v10017_v31  ;;  %v4406_v56 = vpack.c.bf16 %v4394_v26, %v4391_v59 }
0x1a51   :  { %8155 = vmatmul.mubr.msk.bf16.vlgmr.msra.gmra.mrb[120].mxu0 %vm425_vm2, %v9960_v0 }
0x1a52   :  { %8167 = vmatpush3.bf16.msra.mxu0 %v10017_v31  ;;  %8170 = vmatprep.mubr.msk.bf16.mxu0 %vm425_vm2, %v4406_v56 }
0x1a53   :  { %8168 = vmatprep.subr.bf16.mxu0 %v10027_v54 }
0x1a56   :  { %8169 = vmatpush3.bf16.msra.mxu0 %v10027_v54 }
0x1a57   :  { %8182 = vmatprep.subr.bf16.mxu0 %v10034_v24 }
0x1a59   :  { %8171 = vmatmul.mubr.msk.bf16.vlgmr.msra.gmra.mrb[124].mxu0 %vm425_vm2, %v4407_v29 }
0x1a5a   :  { %8183 = vmatpush3.bf16.msra.mxu0 %v10034_v24 }
0x1a5b   :  { %8184 = vmatprep.subr.bf16.mxu0 %v10262_v10 }
0x1a5e   :  { %8185 = vmatpush3.bf16.msra.mxu0 %v10262_v10 }
0x1a5f   :  { %8198 = vmatprep.subr.bf16.mxu0 %v9869_v55 }
0x1aa4   :  { %v4165_v31 = vpop.permute.xlu0 %4164 }
0x1aa5   :  { %v4176_v54 = vadd.f32 %v4165_v31, %v10149_v2 }
0x1aa6   :  { %v4167_v43 = vpop.permute.xlu1 %4166 }
0x1aa7   :  { %8674 = vtanh.f32 %v4176_v54  ;;  %v4177_v39 = vadd.f32 %v4167_v43, %v10153_v25  ;;  %v4188_v25 = vsub.f32 1.0, %v10170_v61 }
0x1aa8   :  { %v4169_v63 = vpop.permute.xlu0 %4168 }
0x1aa9   :  { %8676 = vtanh.f32 %v4177_v39  ;;  %v4178_v24 = vadd.f32 %v4169_v63, %v10159_v37 }
0x1aaa   :  { %v4171_v14 = vpop.permute.xlu1 %4170 }
0x1aab   :  { %8678 = vtanh.f32 %v4178_v24  ;;  %v4179_v12 = vadd.f32 %v4171_v14, %v10163_v22 }
0x1aad   :  { %8680 = vtanh.f32 %v4179_v12 }
0x1ab1   :  { %v8675_v16 = vpop.eup %8674 }
0x1ab2   :  { %4196 = vrot.lane.b32.xlu0 %v8675_v16, %s8941_s24 }
0x1ab3   :  { %v8677_v55 = vpop.eup %8676 }
0x1ab4   :  { %4198 = vrot.lane.b32.xlu1 %v8677_v55, %s8941_s24 }
0x1ab5   :  { %v8679_v2 = vpop.eup %8678 }
0x1ab6   :  { %4200 = vrot.lane.b32.xlu0 %v8679_v2, %s8941_s24 }
0x1ab7   :  { %v8681_v48 = vpop.eup %8680 }
0x1ab8   :  { %4202 = vrot.lane.b32.xlu1 %v8681_v48, %s8941_s24 }
0x1aba   :  { %4495 = vrot.lane.b32.xlu0 %v10214_v40, %s8941_s24 }
0x1abc   :  { %4497 = vrot.lane.b32.xlu1 %v10216_v13, %s8941_s24 }
0x1abe   :  { %4499 = vrot.lane.b32.xlu0 %v10225_v18, %s8941_s24 }
0x1ac0   :  { %4501 = vrot.lane.b32.xlu1 %v10227_v46, %s8941_s24 }
0x1b24   :  { %v4197_v37 = vpop.permute.xlu0 %4196  ;;  %v10284_v22 = vpop.f32.mrb[120].mxu0 }
0x1b25   :  { %v4208_v33 = vmul.f32 %v4197_v37, %v4188_v25  ;;  %v10287_v11 = vpop.f32.mrb[121].mxu0 }
0x1b26   :  { %v4199_v23 = vpop.permute.xlu1 %4198  ;;  %v10289_v38 = vpop.f32.mrb[122].mxu0 }
0x1b27   :  { %v4209_v60 = vmul.f32 %v4199_v23, %v4189_v17  ;;  %v10296_v36 = vpop.f32.mrb[123].mxu0  ;;  %v10298_v20 = vadd.f32 %v4208_v33, %v4184_v27 }
0x1b28   :  { %v4201_v62 = vpop.permute.xlu0 %4200 }
0x1b29   :  { %v10300_v58 = vadd.f32 %v4209_v60, %v4185_v9  ;;  %v4210_v47 = vmul.f32 %v4201_v62, %v4190_v44 }
0x1b2a   :  { %v4203_v35 = vpop.permute.xlu1 %4202 }
0x1b2b   :  { %v4211_v61 = vmul.f32 %v4203_v35, %v4191_v42  ;;  %v4675_v4 = vpack.c.bf16 %v10300_v58, %v10298_v20  ;;  %v10311_v28 = vadd.f32 %v4210_v47, %v4186_v52 }
0x1b2c   :  { %v8172_v21 = vpop.f32.mrb[124].mxu0  ;;  %v4496_v12 = vpop.permute.xlu0 %4495 }
0x1b2d   :  { %v10313_v51 = vadd.f32 %v4211_v61, %v4187_v57  ;;  %v4465_v32 = vadd.f32 %v8172_v21, %v10309_v19  ;;  %4679 = vrot.lane.b32.xlu0 %v4675_v4, %s8941_s24  ;;  %v4448_v45 = vpop.f32.mrb[125].mxu0 }
0x1b2e   :  { %v4463_v34 = vadd.f32 %v4448_v45, %v10317_v1  ;;  %v8173_v5 = vpop.f32.mrb[126].mxu0  ;;  %v4498_v16 = vpop.permute.xlu1 %4497 }
0x1b2f   :  { %v7248_v3 = vmul.f32 -1.442695, %v4465_v32  ;;  %v4466_v53 = vadd.f32 %v8173_v5, %v10320_v41  ;;  %v4451_v15 = vpop.f32.mrb[127].mxu0  ;;  %v4676_v50 = vpack.c.bf16 %v10313_v51, %v10311_v28  ;;  %v10391_v5 = vld [vmem:[%s11205_s8] sm:$0xff]  }
0x1b30   :  { %v7246_v59 = vmul.f32 -1.442695, %v4463_v34  ;;  %v4464_v6 = vadd.f32 %v4451_v15, %v10323_v8  ;;  %v4500_v25 = vpop.permute.xlu0 %4499 }
0x1b31   :  { %8682 = vpow2.f32 %v7248_v3  ;;  %v7249_v29 = vmul.f32 -1.442695, %v4466_v53  ;;  %4220 = vrot.lane.b32.xlu0 %v10298_v20, %s8941_s24  ;;  %4681 = vrot.lane.b32.xlu1 %v4676_v50, %s8941_s24 }
0x1b32   :  { %8684 = vpow2.f32 %v7246_v59  ;;  %v7247_v26 = vmul.f32 -1.442695, %v4464_v6  ;;  %v4502_v37 = vpop.permute.xlu1 %4501 }
0x1b33   :  { %8686 = vpow2.f32 %v7249_v29  ;;  %v10400_v29 = vld [vmem:[%s11205_s8 + $0x8] sm:$0xff]  }
0x1b34   :  { %8688 = vpow2.f32 %v7247_v26 }
0x1b35   :  { %4224 = vrot.lane.b32.xlu0 %v10311_v28, %s8941_s24  ;;  %4222 = vrot.lane.b32.xlu1 %v10300_v58, %s8941_s24 }
0x1b39   :  { %4226 = vrot.lane.b32.xlu1 %v10313_v51, %s8941_s24 }
0x1b3b   :  { %v8683_v56 = vpop.eup %8682 }
0x1b3c   :  { %v8685_v31 = vpop.eup %8684  ;;  %v4481_v54 = vadd.f32 1.0, %v8683_v56 }
0x1b3d   :  { %v8687_v43 = vpop.eup %8686  ;;  %v4479_v39 = vadd.f32 1.0, %v8685_v31 }
0x1b3e   :  { %v8689_v63 = vpop.eup %8688  ;;  %8690 = vrcp.f32 %v4481_v54  ;;  %v4482_v24 = vadd.f32 1.0, %v8687_v43  ;;  %v10411_v43 = vld [vmem:[%s11206_s9] ss:$0 sm:$0xff] }
0x1b3f   :  { %8692 = vrcp.f32 %v4479_v39  ;;  %v4480_v14 = vadd.f32 1.0, %v8689_v63  ;;  %v10415_v39 = vadd.f32 %v10411_v43, %v10284_v22  ;;  %v10419_v63 = vadd.f32 %v10411_v43, %v10287_v11 }
0x1b40   :  { %8694 = vrcp.f32 %v4482_v24 }
0x1b41   :  { %8696 = vrcp.f32 %v4480_v14  ;;  %v10423_v14 = vadd.f32 %v10411_v43, %v10289_v38 }
0x1b48   :  { %v10337_v55 = vpop.eup %8690 }
0x1b49   :  { %v10339_v2 = vpop.eup %8692  ;;  %v4509_v17 = vmul.f32 %v10337_v55, %v4500_v25  ;;  %v10428_v25 = vadd.f32 %v10411_v43, %v10296_v36 }
0x1b4a   :  { %v10341_v48 = vpop.eup %8694  ;;  %v4507_v27 = vmul.f32 %v10339_v2, %v4496_v12 }
0x1b4b   :  { %v10343_v33 = vpop.eup %8696  ;;  %v4510_v23 = vmul.f32 %v10341_v48, %v4502_v37 }
0x1b4c   :  { %v4508_v9 = vmul.f32 %v10343_v33, %v4498_v16 }
0x1b4d   :  { %v4512_v60 = vpack.c.bf16 %v4510_v23, %v4509_v17 }
0x1b4e   :  { %v4511_v44 = vpack.c.bf16 %v4508_v9, %v4507_v27 }
0x1b50   :  { %8174 = vmatprep.subr.bf16.mxu1 %v4511_v44 }
0x1b51   :  { %8175 = vmatpush3.bf16.msra.mxu1 %v4511_v44 }
0x1b52   :  { %8176 = vmatprep.subr.bf16.mxu1 %v4512_v60 }
0x1b55   :  { %8177 = vmatpush3.bf16.msra.mxu1 %v4512_v60 }
0x1b58   :  { %8179 = vmatmul.mubr.msk.bf16.vlgmr.msra.gmra.mrb[124].mxu1 %vm425_vm2, %v9960_v0 }
0x1b59   :  { %8194 = vmatprep.mubr.msk.bf16.mxu1 %vm425_vm2, %v9998_v7 }
0x1b9f   :  { %v4680_v62 = vpop.permute.xlu0 %4679 }
0x1ba0   :  { %8190 = vmatprep.subr.bf16.mxu1 %v4680_v62 }
0x1ba1   :  { %8191 = vmatpush3.bf16.msra.mxu1 %v4680_v62 }
0x1ba3   :  { %v10353_v47 = vpop.permute.xlu0 %4220  ;;  %v4682_v42 = vpop.permute.xlu1 %4681 }
0x1ba4   :  { %4233 = vst.msk [vmem:[#allocation5 + $0x60] sm:$0xff] %vm425_vm2, %v10353_v47  ;;  %8192 = vmatprep.subr.bf16.mxu1 %v4682_v42 }
0x1ba5   :  { %8193 = vmatpush3.bf16.msra.mxu1 %v4682_v42 }
0x1ba7   :  { %v10357_v35 = vpop.permute.xlu0 %4224  ;;  %v10359_v52 = vpop.permute.xlu1 %4222 }
0x1ba8   :  { %4235 = vst.msk [vmem:[#allocation5 + $0x70] sm:$0xff] %vm425_vm2, %v10357_v35  ;;  %4234 = vst.msk [vmem:[#allocation5 + $0x68] sm:$0xff] %vm425_vm2, %v10359_v52  ;;  %8195 = vmatmul.mubr.msk.bf16.vlgmr.msra.gmra.mrb[128].mxu1 %vm425_vm2, %v9960_v0  ;;  %v10378_v0 = vld [vmem:[%s11204_s7] sm:$0xff]  }
0x1ba9   :  { %8210 = vmatprep.mubr.msk.bf16.mxu1 %vm425_vm2, %v9998_v7  ;;  %v10384_v7 = vld [vmem:[%s11204_s7 + $0x8] sm:$0xff]  }
0x1bab   :  { %v10369_v57 = vpop.permute.xlu1 %4226 }
0x1bac   :  { %4236 = vst.msk [vmem:[#allocation5 + $0x78] sm:$0xff] %vm425_vm2, %v10369_v57 }
0x1c2b   :  { %v8180_v61 = vpop.f32.mrb[124].mxu1 }
0x1c2c   :  { %v4547_v4 = vpop.f32.mrb[125].mxu1 }
0x1c2d   :  { %v8181_v21 = vpop.f32.mrb[126].mxu1 }
0x1c2e   :  { %v4563_v32 = vpack.c.bf16 %v8181_v21, %v8180_v61  ;;  %v4550_v45 = vpop.f32.mrb[127].mxu1 }
0x1c2f   :  { %v4562_v34 = vpack.c.bf16 %v4550_v45, %v4547_v4 }
0x1c31   :  { %8186 = vmatprep.mubr.msk.bf16.mxu0 %vm425_vm2, %v4562_v34 }
0x1c32   :  { %8187 = vmatmul.mubr.msk.bf16.vlgmr.msra.gmra.mrb[128].mxu0 %vm425_vm2, %v4563_v32 }
0x1c33   :  { %8199 = vmatpush3.bf16.msra.mxu0 %v10378_v0 }
0x1c34   :  { %8200 = vmatprep.subr.bf16.mxu0 %v10384_v7 }
0x1c37   :  { %8201 = vmatpush3.bf16.msra.mxu0 %v10384_v7 }
0x1c38   :  { %8214 = vmatprep.subr.bf16.mxu0 %v10391_v5 }
0x1c7b   :  { %v8196_v3 = vpop.f32.mrb[128].mxu1 }
0x1c7c   :  { %v4719_v53 = vpop.f32.mrb[129].mxu1 }
0x1c7d   :  { %v8197_v15 = vpop.f32.mrb[130].mxu1 }
0x1c7e   :  { %v4735_v50 = vpack.c.bf16 %v8197_v15, %v8196_v3  ;;  %v4722_v59 = vpop.f32.mrb[131].mxu1 }
0x1c7f   :  { %v4734_v6 = vpack.c.bf16 %v4722_v59, %v4719_v53 }
0x1c81   :  { %8202 = vmatprep.mubr.msk.bf16.mxu0 %vm425_vm2, %v4734_v6 }
0x1c82   :  { %8203 = vmatmul.mubr.msk.bf16.vlgmr.msra.gmra.mrb[132].mxu0 %vm425_vm2, %v4735_v50 }
0x1c83   :  { %8215 = vmatpush3.bf16.msra.mxu0 %v10391_v5 }
0x1c84   :  { %8216 = vmatprep.subr.bf16.mxu0 %v10400_v29 }
0x1c87   :  { %8217 = vmatpush3.bf16.msra.mxu0 %v10400_v29 }
0x1d05   :  { %v8188_v26 = vpop.f32.mrb[128].mxu0 }
0x1d06   :  { %v4604_v56 = vpop.f32.mrb[129].mxu0 }
0x1d07   :  { %4623 = vrot.lane.b32.xlu0 %v4604_v56, %s8940_s23  ;;  %v8189_v31 = vpop.f32.mrb[130].mxu0 }
0x1d08   :  { %v4607_v54 = vpop.f32.mrb[131].mxu0 }
0x1d09   :  { %4625 = vrot.lane.b32.xlu1 %v4607_v54, %s8940_s23 }
0x1d0b   :  { %4627 = vrot.lane.b32.xlu0 %v8188_v26, %s8940_s23 }
0x1d0d   :  { %4629 = vrot.lane.b32.xlu1 %v8189_v31, %s8940_s23 }
0x1d55   :  { %v8204_v24 = vpop.f32.mrb[132].mxu0 }
0x1d56   :  { %v4793_v12 = vadd.f32 %v8204_v24, %v10415_v39  ;;  %v4776_v16 = vpop.f32.mrb[133].mxu0 }
0x1d57   :  { %v4791_v37 = vadd.f32 %v4776_v16, %v10419_v63  ;;  %v8205_v22 = vpop.f32.mrb[134].mxu0 }
0x1d58   :  { %v7260_v17 = vmul.f32 -1.442695, %v4793_v12  ;;  %v4794_v23 = vadd.f32 %v8205_v22, %v10423_v14  ;;  %v4779_v11 = vpop.f32.mrb[135].mxu0 }
0x1d59   :  { %v7258_v27 = vmul.f32 -1.442695, %v4791_v37  ;;  %v4792_v9 = vadd.f32 %v4779_v11, %v10428_v25  ;;  %v4647_v37 = vsub.f32 1.0, %v10339_v2  ;;  %v4644_v11 = vmul.f32 %v10343_v33, %v10216_v13 }
0x1d5a   :  { %8698 = vpow2.f32 %v7260_v17  ;;  %v7261_v38 = vmul.f32 -1.442695, %v4794_v23  ;;  %v4648_v17 = vsub.f32 1.0, %v10343_v33  ;;  %v4646_v13 = vmul.f32 %v10341_v48, %v10227_v46  ;;  %v10499_v46 = vld [vmem:[%s11197_s0] sm:$0xff]  }
0x1d5b   :  { %8700 = vpow2.f32 %v7258_v27  ;;  %v7259_v60 = vmul.f32 -1.442695, %v4792_v9  ;;  %v4649_v9 = vsub.f32 1.0, %v10337_v55 }
0x1d5c   :  { %8702 = vpow2.f32 %v7261_v38 }
0x1d5d   :  { %8704 = vpow2.f32 %v7259_v60 }
0x1d64   :  { %v8699_v44 = vpop.eup %8698 }
0x1d65   :  { %v8701_v62 = vpop.eup %8700  ;;  %v4809_v36 = vadd.f32 1.0, %v8699_v44 }
0x1d66   :  { %v8703_v42 = vpop.eup %8702  ;;  %v4807_v61 = vadd.f32 1.0, %v8701_v62 }
0x1d67   :  { %v8705_v4 = vpop.eup %8704  ;;  %8706 = vrcp.f32 %v4809_v36  ;;  %v4810_v21 = vadd.f32 1.0, %v8703_v42  ;;  %v4650_v36 = vsub.f32 1.0, %v10341_v48 }
0x1d68   :  { %8708 = vrcp.f32 %v4807_v61  ;;  %v4808_v32 = vadd.f32 1.0, %v8705_v4 }
0x1d69   :  { %8710 = vrcp.f32 %v4810_v21 }
0x1d6a   :  { %8712 = vrcp.f32 %v4808_v32 }
0x1d71   :  { %v10433_v45 = vpop.eup %8706 }
0x1d72   :  { %v10435_v34 = vpop.eup %8708  ;;  %v4821_v15 = vmul.f32 %v10433_v45, %v10357_v35 }
0x1d73   :  { %v10437_v3 = vpop.eup %8710  ;;  %v4819_v59 = vmul.f32 %v10435_v34, %v10353_v47 }
0x1d74   :  { %v10439_v53 = vpop.eup %8712  ;;  %v4822_v50 = vmul.f32 %v10437_v3, %v10369_v57 }
0x1d75   :  { %v4820_v6 = vmul.f32 %v10439_v53, %v10359_v52 }
0x1d76   :  { %v4824_v26 = vpack.c.bf16 %v4822_v50, %v4821_v15 }
0x1d77   :  { %v4823_v56 = vpack.c.bf16 %v4820_v6, %v4819_v59 }
0x1d79   :  { %v4624_v31 = vpop.permute.xlu0 %4623  ;;  %8206 = vmatprep.subr.bf16.mxu1 %v4823_v56 }
0x1d7a   :  { %v4635_v54 = vadd.f32 %v4624_v31, %v10317_v1  ;;  %8207 = vmatpush3.bf16.msra.mxu1 %v4823_v56  ;;  %v10457_v1 = vld [vmem:[%s11197_s0 + $0x8] sm:$0xff]  }
0x1d7b   :  { %v4626_v24 = vpop.permute.xlu1 %4625  ;;  %8208 = vmatprep.subr.bf16.mxu1 %v4824_v26 }
0x1d7c   :  { %8714 = vtanh.f32 %v4635_v54  ;;  %v4636_v35 = vadd.f32 %v4626_v24, %v10323_v8 }
0x1d7d   :  { %v4628_v12 = vpop.permute.xlu0 %4627 }
0x1d7e   :  { %8716 = vtanh.f32 %v4636_v35  ;;  %v4637_v57 = vadd.f32 %v4628_v12, %v10309_v19  ;;  %8209 = vmatpush3.bf16.msra.mxu1 %v4824_v26 }
0x1d7f   :  { %v4630_v47 = vpop.permute.xlu1 %4629  ;;  %8222 = vmatprep.subr.bf16.mxu1 %v10192_v49 }
0x1d80   :  { %8718 = vtanh.f32 %v4637_v57  ;;  %v4638_v52 = vadd.f32 %v4630_v47, %v10320_v41 }
0x1d81   :  { %8211 = vmatmul.mubr.msk.bf16.vlgmr.msra.gmra.mrb[132].mxu1 %vm425_vm2, %v10457_v1 }
0x1d82   :  { %8720 = vtanh.f32 %v4638_v52  ;;  %8223 = vmatpush3.bf16.msra.mxu1 %v10192_v49 }
0x1d83   :  { %8224 = vmatprep.subr.bf16.mxu1 %v10203_v30 }
0x1d86   :  { %v8715_v19 = vpop.eup %8714  ;;  %8225 = vmatpush3.bf16.msra.mxu1 %v10203_v30  ;;  %v4643_v30 = vmul.f32 %v10339_v2, %v10214_v40  ;;  %v4645_v40 = vmul.f32 %v10337_v55, %v10225_v18 }
0x1d87   :  { %4655 = vrot.lane.b32.xlu0 %v8715_v19, %s8941_s24 }
0x1d88   :  { %v8717_v8 = vpop.eup %8716 }
0x1d89   :  { %4657 = vrot.lane.b32.xlu1 %v8717_v8, %s8941_s24 }
0x1d8a   :  { %v8719_v41 = vpop.eup %8718 }
0x1d8b   :  { %4659 = vrot.lane.b32.xlu0 %v8719_v41, %s8941_s24 }
0x1d8c   :  { %v8721_v16 = vpop.eup %8720 }
0x1d8d   :  { %4661 = vrot.lane.b32.xlu1 %v8721_v16, %s8941_s24 }
0x1df9   :  { %v4656_v22 = vpop.permute.xlu0 %4655 }
0x1dfa   :  { %v4667_v49 = vmul.f32 %v4656_v22, %v4647_v37  ;;  %v10518_v22 = vld [vmem:[%s11200_s3] sm:$0xff]  }
0x1dfb   :  { %v4658_v23 = vpop.permute.xlu1 %4657 }
0x1dfc   :  { %v4668_v27 = vmul.f32 %v4658_v23, %v4648_v17  ;;  %v10475_v60 = vadd.f32 %v4667_v49, %v4643_v30  ;;  %v10528_v17 = vld [vmem:[%s11200_s3 + $0x8] sm:$0xff]   ;;  %v10535_v23 = vld [vmem:[%s11201_s4] sm:$0xff]  }
0x1dfd   :  { %v4660_v38 = vpop.permute.xlu0 %4659 }
0x1dfe   :  { %v10477_v44 = vadd.f32 %v4668_v27, %v4644_v11  ;;  %v4669_v62 = vmul.f32 %v4660_v38, %v4649_v9 }
0x1dff   :  { %v4662_v42 = vpop.permute.xlu1 %4661 }
0x1e00   :  { %v5008_v61 = vpack.c.bf16 %v10477_v44, %v10475_v60  ;;  %v4670_v2 = vmul.f32 %v4662_v42, %v4650_v36  ;;  %v10486_v33 = vadd.f32 %v4669_v62, %v4645_v40 }
0x1e02   :  { %v10488_v4 = vadd.f32 %v4670_v2, %v4646_v13  ;;  %5012 = vrot.lane.b32.xlu0 %v5008_v61, %s8941_s24  ;;  %v4960_v13 = vsub.f32 1.0, %v10439_v53 }
0x1e04   :  { %v5009_v21 = vpack.c.bf16 %v10488_v4, %v10486_v33 }
0x1e06   :  { %5014 = vrot.lane.b32.xlu1 %v5009_v21, %s8941_s24  ;;  %v4955_v21 = vmul.f32 %v10435_v34, %v10298_v20  ;;  %v4957_v20 = vmul.f32 %v10433_v45, %v10311_v28 }
0x1e54   :  { %v8212_v32 = vpop.f32.mrb[132].mxu1 }
0x1e55   :  { %v4859_v15 = vpop.f32.mrb[133].mxu1 }
0x1e56   :  { %v8213_v50 = vpop.f32.mrb[134].mxu1 }
0x1e57   :  { %v4875_v59 = vpack.c.bf16 %v8213_v50, %v8212_v32  ;;  %v4862_v18 = vpop.f32.mrb[135].mxu1  ;;  %v4956_v32 = vmul.f32 %v10439_v53, %v10300_v58  ;;  %v4961_v50 = vsub.f32 1.0, %v10433_v45  ;;  %v4958_v58 = vmul.f32 %v10437_v3, %v10313_v51  ;;  %v10599_v45 = vld [vmem:[#allocation2 + $0xd0] sm:$0xff] }
0x1e58   :  { %v4874_v55 = vpack.c.bf16 %v4862_v18, %v4859_v15 }
0x1e5a   :  { %8218 = vmatprep.mubr.msk.bf16.mxu0 %vm425_vm2, %v4874_v55 }
0x1e5b   :  { %8219 = vmatmul.mubr.msk.bf16.vlgmr.msra.gmra.mrb[136].mxu0 %vm425_vm2, %v4875_v59 }
0x1e5c   :  { %8234 = vmatprep.mubr.msk.bf16.mxu0 %vm425_vm2, %v10499_v46 }
0x1e74   :  { %v5013_v48 = vpop.permute.xlu0 %5012 }
0x1e75   :  { %8226 = vmatprep.mubr.msk.bf16.mxu1 %vm425_vm2, %v5013_v48  ;;  %8238 = vmatprep.subr.bf16.mxu1 %v5013_v48 }
0x1e78   :  { %v5015_v6 = vpop.permute.xlu1 %5014 }
0x1e79   :  { %8227 = vmatmul.mubr.msk.bf16.vlgmr.msra.gmra.mrb[136].mxu1 %vm425_vm2, %v5015_v6 }
0x1e7a   :  { %8239 = vmatpush3.bf16.msra.mxu1 %v5013_v48  ;;  %8242 = vmatprep.mubr.msk.bf16.mxu1 %vm425_vm2, %v10499_v46 }
0x1e7b   :  { %8240 = vmatprep.subr.bf16.mxu1 %v5015_v6 }
0x1e7e   :  { %8241 = vmatpush3.bf16.msra.mxu1 %v5015_v6  ;;  %v4962_v6 = vsub.f32 1.0, %v10437_v3 }
0x1e81   :  { %8243 = vmatmul.mubr.msk.bf16.vlgmr.msra.gmra.mrb[140].mxu1 %vm425_vm2, %v10457_v1 }
0x1e82   :  { %8258 = vmatprep.mubr.msk.bf16.mxu1 %vm425_vm2, %v10499_v46 }
0x1f2e   :  { %v8220_v26 = vpop.f32.mrb[136].mxu0 }
0x1f2f   :  { %v4916_v56 = vpop.f32.mrb[137].mxu0 }
0x1f30   :  { %4935 = vrot.lane.b32.xlu0 %v4916_v56, %s8940_s23  ;;  %v8221_v31 = vpop.f32.mrb[138].mxu0 }
0x1f31   :  { %v4919_v54 = vpop.f32.mrb[139].mxu0 }
0x1f32   :  { %4937 = vrot.lane.b32.xlu1 %v4919_v54, %s8940_s23 }
0x1f34   :  { %4939 = vrot.lane.b32.xlu0 %v8220_v26, %s8940_s23 }
0x1f36   :  { %4941 = vrot.lane.b32.xlu1 %v8221_v31, %s8940_s23 }
0x1f4c   :  { %v8228_v24 = vpop.f32.mrb[136].mxu1 }
0x1f4d   :  { %v5056_v35 = vpop.f32.mrb[137].mxu1 }
0x1f4e   :  { %v8229_v12 = vpop.f32.mrb[138].mxu1 }
0x1f4f   :  { %v5072_v57 = vpack.c.bf16 %v8229_v12, %v8228_v24  ;;  %v5059_v47 = vpop.f32.mrb[139].mxu1 }
0x1f50   :  { %v5071_v52 = vpack.c.bf16 %v5059_v47, %v5056_v35 }
0x1f52   :  { %8230 = vmatprep.subr.bf16.mxu0 %v5071_v52 }
0x1f53   :  { %8231 = vmatpush3.bf16.msra.mxu0 %v5071_v52 }
0x1f54   :  { %8232 = vmatprep.subr.bf16.mxu0 %v5072_v57  ;;  %v8244_v19 = vpop.f32.mrb[140].mxu1 }
0x1f55   :  { %v5162_v8 = vpop.f32.mrb[141].mxu1 }
0x1f56   :  { %v8245_v41 = vpop.f32.mrb[142].mxu1 }
0x1f57   :  { %8233 = vmatpush3.bf16.msra.mxu0 %v5072_v57  ;;  %v5178_v16 = vpack.c.bf16 %v8245_v41, %v8244_v19  ;;  %v5165_v37 = vpop.f32.mrb[143].mxu1  ;;  %v10602_v57 = vld [vmem:[#allocation2 + $0xc0] sm:$0xff]  ;;  %v10607_v19 = vld [vmem:[#allocation2 + $0xd8] sm:$0xff] }
0x1f58   :  { %8246 = vmatprep.subr.bf16.mxu0 %v10518_v22  ;;  %v5177_v49 = vpack.c.bf16 %v5165_v37, %v5162_v8  ;;  %v10610_v37 = vld [vmem:[#allocation2 + $0xc8] sm:$0xff] }
0x1f5a   :  { %8235 = vmatmul.mubr.msk.bf16.vlgmr.msra.gmra.mrb[140].mxu0 %vm425_vm2, %v10457_v1 }
0x1f5b   :  { %8247 = vmatpush3.bf16.msra.mxu0 %v10518_v22  ;;  %8250 = vmatprep.mubr.msk.bf16.mxu0 %vm425_vm2, %v5177_v49 }
0x1f5c   :  { %8248 = vmatprep.subr.bf16.mxu0 %v10528_v17 }
0x1f5f   :  { %8249 = vmatpush3.bf16.msra.mxu0 %v10528_v17 }
0x1f60   :  { %8262 = vmatprep.subr.bf16.mxu0 %v10535_v23 }
0x1f62   :  { %8251 = vmatmul.mubr.msk.bf16.vlgmr.msra.gmra.mrb[144].mxu0 %vm425_vm2, %v5178_v16 }
0x1f63   :  { %8263 = vmatpush3.bf16.msra.mxu0 %v10535_v23 }
0x1f64   :  { %8264 = vmatprep.subr.bf16.mxu0 %v10262_v10 }
0x1f67   :  { %8265 = vmatpush3.bf16.msra.mxu0 %v10262_v10 }
0x1f68   :  { %8278 = vmatprep.subr.bf16.mxu0 %v10378_v0 }
0x1fa2   :  { %v4936_v30 = vpop.permute.xlu0 %4935 }
0x1fa3   :  { %v4947_v11 = vadd.f32 %v4936_v30, %v10419_v63 }
0x1fa4   :  { %v4938_v27 = vpop.permute.xlu1 %4937 }
0x1fa5   :  { %8722 = vtanh.f32 %v4947_v11  ;;  %v4948_v9 = vadd.f32 %v4938_v27, %v10428_v25 }
0x1fa6   :  { %v4940_v38 = vpop.permute.xlu0 %4939 }
0x1fa7   :  { %8724 = vtanh.f32 %v4948_v9  ;;  %v4949_v62 = vadd.f32 %v4940_v38, %v10415_v39  ;;  %v4959_v39 = vsub.f32 1.0, %v10435_v34 }
0x1fa8   :  { %v4942_v36 = vpop.permute.xlu1 %4941 }
0x1fa9   :  { %8726 = vtanh.f32 %v4949_v62  ;;  %v4950_v42 = vadd.f32 %v4942_v36, %v10423_v14 }
0x1fab   :  { %8728 = vtanh.f32 %v4950_v42 }
0x1faf   :  { %v8723_v61 = vpop.eup %8722 }
0x1fb0   :  { %4967 = vrot.lane.b32.xlu0 %v8723_v61, %s8941_s24 }
0x1fb1   :  { %v8725_v10 = vpop.eup %8724 }
0x1fb2   :  { %4969 = vrot.lane.b32.xlu1 %v8725_v10, %s8941_s24 }
0x1fb3   :  { %v8727_v63 = vpop.eup %8726 }
0x1fb4   :  { %4971 = vrot.lane.b32.xlu0 %v8727_v63, %s8941_s24 }
0x1fb5   :  { %v8729_v40 = vpop.eup %8728 }
0x1fb6   :  { %4973 = vrot.lane.b32.xlu1 %v8729_v40, %s8941_s24 }
0x1fb8   :  { %5266 = vrot.lane.b32.xlu0 %v10475_v60, %s8941_s24 }
0x1fba   :  { %5268 = vrot.lane.b32.xlu1 %v10477_v44, %s8941_s24 }
0x1fbc   :  { %5270 = vrot.lane.b32.xlu0 %v10486_v33, %s8941_s24 }
0x1fbe   :  { %5272 = vrot.lane.b32.xlu1 %v10488_v4, %s8941_s24 }
0x2022   :  { %v4968_v14 = vpop.permute.xlu0 %4967 }
0x2023   :  { %v4979_v25 = vmul.f32 %v4968_v14, %v4959_v39 }
0x2024   :  { %v4970_v2 = vpop.permute.xlu1 %4969 }
0x2025   :  { %v4980_v15 = vmul.f32 %v4970_v2, %v4960_v13  ;;  %v10566_v18 = vadd.f32 %v4979_v25, %v4955_v21 }
0x2026   :  { %v4972_v59 = vpop.permute.xlu0 %4971 }
0x2027   :  { %v10568_v55 = vadd.f32 %v4980_v15, %v4956_v32  ;;  %v4981_v48 = vmul.f32 %v4972_v59, %v4961_v50 }
0x2028   :  { %v4974_v26 = vpop.permute.xlu1 %4973 }
0x2029   :  { %v5446_v56 = vpack.c.bf16 %v10568_v55, %v10566_v18  ;;  %v4982_v34 = vmul.f32 %v4974_v26, %v4962_v6  ;;  %v10577_v53 = vadd.f32 %v4981_v48, %v4957_v20 }
0x202a   :  { %v5267_v39 = vpop.permute.xlu0 %5266 }
0x202b   :  { %v10579_v31 = vadd.f32 %v4982_v34, %v4958_v58  ;;  %5450 = vrot.lane.b32.xlu0 %v5446_v56, %s8941_s24 }
0x202c   :  { %v5269_v14 = vpop.permute.xlu1 %5268 }
0x202d   :  { %v5447_v54 = vpack.c.bf16 %v10579_v31, %v10577_v53  ;;  %v10584_v24 = vpop.f32.mrb[140].mxu0 }
0x202e   :  { %v10586_v35 = vpop.f32.mrb[141].mxu0  ;;  %v5271_v21 = vpop.permute.xlu0 %5270 }
0x202f   :  { %4991 = vrot.lane.b32.xlu0 %v10566_v18, %s8941_s24  ;;  %5452 = vrot.lane.b32.xlu1 %v5447_v54, %s8941_s24  ;;  %v10591_v28 = vpop.f32.mrb[142].mxu0 }
0x2030   :  { %v10593_v51 = vpop.f32.mrb[143].mxu0  ;;  %v5273_v32 = vpop.permute.xlu1 %5272 }
0x2033   :  { %4995 = vrot.lane.b32.xlu0 %v10577_v53, %s8941_s24  ;;  %4993 = vrot.lane.b32.xlu1 %v10568_v55, %s8941_s24 }
0x2035   :  { %v8252_v3 = vpop.f32.mrb[144].mxu0 }
0x2036   :  { %v5236_v12 = vadd.f32 %v8252_v3, %v10599_v45  ;;  %v5219_v47 = vpop.f32.mrb[145].mxu0 }
0x2037   :  { %v5234_v52 = vadd.f32 %v5219_v47, %v10602_v57  ;;  %4997 = vrot.lane.b32.xlu1 %v10579_v31, %s8941_s24  ;;  %v8253_v8 = vpop.f32.mrb[146].mxu0 }
0x2038   :  { %v7276_v41 = vmul.f32 -1.442695, %v5236_v12  ;;  %v5237_v16 = vadd.f32 %v8253_v8, %v10607_v19  ;;  %v5222_v49 = vpop.f32.mrb[147].mxu0 }
0x2039   :  { %v7274_v30 = vmul.f32 -1.442695, %v5234_v52  ;;  %v5235_v11 = vadd.f32 %v5222_v49, %v10610_v37 }
0x203a   :  { %8730 = vpow2.f32 %v7276_v41  ;;  %v7277_v27 = vmul.f32 -1.442695, %v5237_v16 }
0x203b   :  { %8732 = vpow2.f32 %v7274_v30  ;;  %v7275_v9 = vmul.f32 -1.442695, %v5235_v11 }
0x203c   :  { %8734 = vpow2.f32 %v7277_v27 }
0x203d   :  { %8736 = vpow2.f32 %v7275_v9 }
0x2044   :  { %v8731_v38 = vpop.eup %8730 }
0x2045   :  { %v8733_v62 = vpop.eup %8732  ;;  %v5252_v36 = vadd.f32 1.0, %v8731_v38 }
0x2046   :  { %v8735_v42 = vpop.eup %8734  ;;  %v5250_v61 = vadd.f32 1.0, %v8733_v62 }
0x2047   :  { %v8737_v10 = vpop.eup %8736  ;;  %8738 = vrcp.f32 %v5252_v36  ;;  %v5253_v63 = vadd.f32 1.0, %v8735_v42 }
0x2048   :  { %8740 = vrcp.f32 %v5250_v61  ;;  %v5251_v40 = vadd.f32 1.0, %v8737_v10  ;;  %v10666_v10 = vadd.f32 %v10411_v43, %v10584_v24 }
0x2049   :  { %8742 = vrcp.f32 %v5253_v63  ;;  %v10674_v63 = vadd.f32 %v10411_v43, %v10591_v28 }
0x204a   :  { %8744 = vrcp.f32 %v5251_v40 }
0x2051   :  { %v10613_v25 = vpop.eup %8738 }
0x2052   :  { %v10615_v13 = vpop.eup %8740  ;;  %v5280_v50 = vmul.f32 %v10613_v25, %v5271_v21 }
0x2053   :  { %v10617_v2 = vpop.eup %8742  ;;  %v5278_v48 = vmul.f32 %v10615_v13, %v5267_v39 }
0x2054   :  { %v10619_v15 = vpop.eup %8744  ;;  %v5281_v59 = vmul.f32 %v10617_v2, %v5273_v32 }
0x2055   :  { %v5279_v6 = vmul.f32 %v10619_v15, %v5269_v14  ;;  %v10679_v14 = vadd.f32 %v10411_v43, %v10593_v51 }
0x2056   :  { %v5283_v26 = vpack.c.bf16 %v5281_v59, %v5280_v50 }
0x2057   :  { %v5282_v56 = vpack.c.bf16 %v5279_v6, %v5278_v48 }
0x2059   :  { %8254 = vmatprep.subr.bf16.mxu1 %v5282_v56 }
0x205a   :  { %8255 = vmatpush3.bf16.msra.mxu1 %v5282_v56 }
0x205b   :  { %8256 = vmatprep.subr.bf16.mxu1 %v5283_v26 }
0x205e   :  { %8257 = vmatpush3.bf16.msra.mxu1 %v5283_v26 }
0x2061   :  { %8259 = vmatmul.mubr.msk.bf16.vlgmr.msra.gmra.mrb[144].mxu1 %vm425_vm2, %v10457_v1 }
0x2062   :  { %8274 = vmatprep.mubr.msk.bf16.mxu1 %vm425_vm2, %v10499_v46 }
0x209d   :  { %v5451_v20 = vpop.permute.xlu0 %5450 }
0x209e   :  { %8270 = vmatprep.subr.bf16.mxu1 %v5451_v20 }
0x209f   :  { %8271 = vmatpush3.bf16.msra.mxu1 %v5451_v20 }
0x20a1   :  { %v10629_v58 = vpop.permute.xlu0 %4991  ;;  %v5453_v34 = vpop.permute.xlu1 %5452 }
0x20a2   :  { %5004 = vst.msk [vmem:[#allocation5 + $0x80] sm:$0xff] %vm425_vm2, %v10629_v58  ;;  %8272 = vmatprep.subr.bf16.mxu1 %v5453_v34 }
0x20a3   :  { %8273 = vmatpush3.bf16.msra.mxu1 %v5453_v34 }
0x20a5   :  { %v10633_v54 = vpop.permute.xlu0 %4995  ;;  %v10635_v3 = vpop.permute.xlu1 %4993 }
0x20a6   :  { %5006 = vst.msk [vmem:[#allocation5 + $0x90] sm:$0xff] %vm425_vm2, %v10633_v54  ;;  %5005 = vst.msk [vmem:[#allocation5 + $0x88] sm:$0xff] %vm425_vm2, %v10635_v3  ;;  %8275 = vmatmul.mubr.msk.bf16.vlgmr.msra.gmra.mrb[148].mxu1 %vm425_vm2, %v10457_v1 }
0x20a7   :  { %8290 = vmatprep.mubr.msk.bf16.mxu1 %vm425_vm2, %v10499_v46 }
0x20a9   :  { %v10645_v12 = vpop.permute.xlu1 %4997 }
0x20aa   :  { %5007 = vst.msk [vmem:[#allocation5 + $0x98] sm:$0xff] %vm425_vm2, %v10645_v12 }
0x2134   :  { %v8260_v47 = vpop.f32.mrb[144].mxu1 }
0x2135   :  { %v5318_v52 = vpop.f32.mrb[145].mxu1 }
0x2136   :  { %v8261_v8 = vpop.f32.mrb[146].mxu1 }
0x2137   :  { %v5334_v41 = vpack.c.bf16 %v8261_v8, %v8260_v47  ;;  %v5321_v16 = vpop.f32.mrb[147].mxu1 }
0x2138   :  { %v5333_v49 = vpack.c.bf16 %v5321_v16, %v5318_v52 }
0x213a   :  { %8266 = vmatprep.mubr.msk.bf16.mxu0 %vm425_vm2, %v5333_v49 }
0x213b   :  { %8267 = vmatmul.mubr.msk.bf16.vlgmr.msra.gmra.mrb[148].mxu0 %vm425_vm2, %v5334_v41 }
0x213c   :  { %8279 = vmatpush3.bf16.msra.mxu0 %v10378_v0 }
0x213d   :  { %8280 = vmatprep.subr.bf16.mxu0 %v10384_v7 }
0x2140   :  { %8281 = vmatpush3.bf16.msra.mxu0 %v10384_v7 }
0x2141   :  { %8294 = vmatprep.subr.bf16.mxu0 %v10391_v5 }
0x2179   :  { %v8276_v30 = vpop.f32.mrb[148].mxu1 }
0x217a   :  { %v5490_v11 = vpop.f32.mrb[149].mxu1 }
0x217b   :  { %v8277_v27 = vpop.f32.mrb[150].mxu1 }
0x217c   :  { %v5506_v9 = vpack.c.bf16 %v8277_v27, %v8276_v30  ;;  %v5493_v38 = vpop.f32.mrb[151].mxu1 }
0x217d   :  { %v5505_v62 = vpack.c.bf16 %v5493_v38, %v5490_v11 }
0x217f   :  { %8282 = vmatprep.mubr.msk.bf16.mxu0 %vm425_vm2, %v5505_v62 }
0x2180   :  { %8283 = vmatmul.mubr.msk.bf16.vlgmr.msra.gmra.mrb[152].mxu0 %vm425_vm2, %v5506_v9 }
0x2181   :  { %8295 = vmatpush3.bf16.msra.mxu0 %v10391_v5  ;;  %v10670_v5 = vadd.f32 %v10411_v43, %v10586_v35 }
0x2182   :  { %8296 = vmatprep.subr.bf16.mxu0 %v10400_v29 }
0x2185   :  { %8297 = vmatpush3.bf16.msra.mxu0 %v10400_v29 }
0x220e   :  { %v8268_v36 = vpop.f32.mrb[148].mxu0 }
0x220f   :  { %v5375_v7 = vpop.f32.mrb[149].mxu0 }
0x2210   :  { %5394 = vrot.lane.b32.xlu0 %v5375_v7, %s8940_s23  ;;  %v8269_v42 = vpop.f32.mrb[150].mxu0 }
0x2211   :  { %v5378_v61 = vpop.f32.mrb[151].mxu0 }
0x2212   :  { %5396 = vrot.lane.b32.xlu1 %v5378_v61, %s8940_s23 }
0x2214   :  { %5398 = vrot.lane.b32.xlu0 %v8268_v36, %s8940_s23  ;;  %v10703_v36 = vld [vmem:[%s11203_s6] sm:$0xff]  }
0x2216   :  { %5400 = vrot.lane.b32.xlu1 %v8269_v42, %s8940_s23 }
0x2253   :  { %v8284_v29 = vpop.f32.mrb[152].mxu0 }
0x2254   :  { %v5564_v40 = vadd.f32 %v8284_v29, %v10666_v10  ;;  %v5547_v39 = vpop.f32.mrb[153].mxu0 }
0x2255   :  { %v5562_v21 = vadd.f32 %v5547_v39, %v10670_v5  ;;  %v8285_v24 = vpop.f32.mrb[154].mxu0 }
0x2256   :  { %v7288_v32 = vmul.f32 -1.442695, %v5564_v40  ;;  %v5565_v50 = vadd.f32 %v8285_v24, %v10674_v63  ;;  %v5550_v35 = vpop.f32.mrb[155].mxu0 }
0x2257   :  { %v7286_v59 = vmul.f32 -1.442695, %v5562_v21  ;;  %v5563_v48 = vadd.f32 %v5550_v35, %v10679_v14  ;;  %v5414_v35 = vmul.f32 %v10615_v13, %v10475_v60  ;;  %v5416_v60 = vmul.f32 %v10613_v25, %v10486_v33 }
0x2258   :  { %8746 = vpow2.f32 %v7288_v32  ;;  %v7289_v28 = vmul.f32 -1.442695, %v5565_v50  ;;  %v5419_v50 = vsub.f32 1.0, %v10619_v15 }
0x2259   :  { %8748 = vpow2.f32 %v7286_v59  ;;  %v7287_v6 = vmul.f32 -1.442695, %v5563_v48  ;;  %v5415_v59 = vmul.f32 %v10619_v15, %v10477_v44  ;;  %v5417_v44 = vmul.f32 %v10617_v2, %v10488_v4 }
0x225a   :  { %8750 = vpow2.f32 %v7289_v28  ;;  %v5420_v28 = vsub.f32 1.0, %v10613_v25 }
0x225b   :  { %8752 = vpow2.f32 %v7287_v6 }
0x2262   :  { %v8747_v26 = vpop.eup %8746 }
0x2263   :  { %v8749_v56 = vpop.eup %8748  ;;  %v5580_v43 = vadd.f32 1.0, %v8747_v26 }
0x2264   :  { %v8751_v51 = vpop.eup %8750  ;;  %v5578_v20 = vadd.f32 1.0, %v8749_v56 }
0x2265   :  { %v8753_v34 = vpop.eup %8752  ;;  %8754 = vrcp.f32 %v5580_v43  ;;  %v5581_v47 = vadd.f32 1.0, %v8751_v51  ;;  %v5421_v51 = vsub.f32 1.0, %v10617_v2 }
0x2266   :  { %8756 = vrcp.f32 %v5578_v20  ;;  %v5579_v52 = vadd.f32 1.0, %v8753_v34 }
0x2267   :  { %8758 = vrcp.f32 %v5581_v47 }
0x2268   :  { %8760 = vrcp.f32 %v5579_v52 }
0x226f   :  { %v10684_v8 = vpop.eup %8754 }
0x2270   :  { %v10686_v41 = vpop.eup %8756  ;;  %v5592_v30 = vmul.f32 %v10684_v8, %v10633_v54 }
0x2271   :  { %v10688_v16 = vpop.eup %8758  ;;  %v5590_v27 = vmul.f32 %v10686_v41, %v10629_v58  ;;  %v10712_v58 = vld [vmem:[%s11203_s6 + $0x8] sm:$0xff]  }
0x2272   :  { %v10690_v49 = vpop.eup %8760  ;;  %v5593_v11 = vmul.f32 %v10688_v16, %v10645_v12 }
0x2273   :  { %v5591_v9 = vmul.f32 %v10690_v49, %v10635_v3 }
0x2274   :  { %v5595_v38 = vpack.c.bf16 %v5593_v11, %v5592_v30 }
0x2275   :  { %v5594_v62 = vpack.c.bf16 %v5591_v9, %v5590_v27 }
0x2277   :  { %8286 = vmatprep.subr.bf16.mxu1 %v5594_v62 }
0x2278   :  { %8287 = vmatpush3.bf16.msra.mxu1 %v5594_v62 }
0x2279   :  { %8288 = vmatprep.subr.bf16.mxu1 %v5595_v38 }
0x227c   :  { %8289 = vmatpush3.bf16.msra.mxu1 %v5595_v38 }
0x227d   :  { %8302 = vmatprep.subr.bf16.mxu1 %v10703_v36 }
0x227f   :  { %8291 = vmatmul.mubr.msk.bf16.vlgmr.msra.gmra.mrb[152].mxu1 %vm425_vm2, %v10457_v1 }
0x2280   :  { %8303 = vmatpush3.bf16.msra.mxu1 %v10703_v36 }
0x2281   :  { %8304 = vmatprep.subr.bf16.mxu1 %v10712_v58 }
0x2282   :  { %v5395_v54 = vpop.permute.xlu0 %5394 }
0x2283   :  { %v5406_v3 = vadd.f32 %v5395_v54, %v10602_v57 }
0x2284   :  { %v5397_v12 = vpop.permute.xlu1 %5396  ;;  %8305 = vmatpush3.bf16.msra.mxu1 %v10712_v58 }
0x2285   :  { %8762 = vtanh.f32 %v5406_v3  ;;  %v5407_v7 = vadd.f32 %v5397_v12, %v10610_v37  ;;  %v5418_v37 = vsub.f32 1.0, %v10615_v13 }
0x2286   :  { %v5399_v42 = vpop.permute.xlu0 %5398 }
0x2287   :  { %8764 = vtanh.f32 %v5407_v7  ;;  %v5408_v61 = vadd.f32 %v5399_v42, %v10599_v45 }
0x2288   :  { %v5401_v29 = vpop.permute.xlu1 %5400 }
0x2289   :  { %8766 = vtanh.f32 %v5408_v61  ;;  %v5409_v40 = vadd.f32 %v5401_v29, %v10607_v19 }
0x228b   :  { %8768 = vtanh.f32 %v5409_v40 }
0x228f   :  { %v8763_v39 = vpop.eup %8762 }
0x2290   :  { %5426 = vrot.lane.b32.xlu0 %v8763_v39, %s8941_s24 }
0x2291   :  { %v8765_v21 = vpop.eup %8764 }
0x2292   :  { %5428 = vrot.lane.b32.xlu1 %v8765_v21, %s8941_s24 }
0x2293   :  { %v8767_v57 = vpop.eup %8766 }
0x2294   :  { %5430 = vrot.lane.b32.xlu0 %v8767_v57, %s8941_s24 }
0x2295   :  { %v8769_v24 = vpop.eup %8768 }
0x2296   :  { %5432 = vrot.lane.b32.xlu1 %v8769_v24, %s8941_s24 }
0x2302   :  { %v5427_v45 = vpop.permute.xlu0 %5426 }
0x2303   :  { %v5438_v32 = vmul.f32 %v5427_v45, %v5418_v37 }
0x2304   :  { %v5429_v19 = vpop.permute.xlu1 %5428 }
0x2305   :  { %v5439_v48 = vmul.f32 %v5429_v19, %v5419_v50  ;;  %v10731_v26 = vadd.f32 %v5438_v32, %v5414_v35  ;;  %v8883_v32 = vld [vmem:[%s11201_s4 + $0x8] sm:$0xff]  }
0x2306   :  { %v5431_v6 = vpop.permute.xlu0 %5430 }
0x2307   :  { %v10733_v56 = vadd.f32 %v5439_v48, %v5415_v59  ;;  %v5440_v43 = vmul.f32 %v5431_v6, %v5420_v28 }
0x2308   :  { %v5433_v20 = vpop.permute.xlu1 %5432 }
0x2309   :  { %v5779_v34 = vpack.c.bf16 %v10733_v56, %v10731_v26  ;;  %v5441_v13 = vmul.f32 %v5433_v20, %v5421_v51  ;;  %v10742_v15 = vadd.f32 %v5440_v43, %v5416_v60  ;;  %v5731_v43 = vsub.f32 1.0, %v10690_v49 }
0x230a   :  { %v5726_v20 = vmul.f32 %v10686_v41, %v10566_v18  ;;  %v5728_v18 = vmul.f32 %v10684_v8, %v10577_v53 }
0x230b   :  { %v10744_v47 = vadd.f32 %v5441_v13, %v5417_v44  ;;  %5783 = vrot.lane.b32.xlu0 %v5779_v34, %s8941_s24  ;;  %v5727_v34 = vmul.f32 %v10690_v49, %v10568_v55  ;;  %v5732_v44 = vsub.f32 1.0, %v10684_v8  ;;  %v5729_v55 = vmul.f32 %v10688_v16, %v10579_v31 }
0x230d   :  { %v5780_v52 = vpack.c.bf16 %v10744_v47, %v10742_v15 }
0x230f   :  { %5785 = vrot.lane.b32.xlu1 %v5780_v52, %s8941_s24 }
0x2352   :  { %v8292_v30 = vpop.f32.mrb[152].mxu1 }
0x2353   :  { %v5630_v11 = vpop.f32.mrb[153].mxu1 }
0x2354   :  { %v8293_v27 = vpop.f32.mrb[154].mxu1 }
0x2355   :  { %v5646_v9 = vpack.c.bf16 %v8293_v27, %v8292_v30  ;;  %v5633_v33 = vpop.f32.mrb[155].mxu1  ;;  %v5733_v27 = vsub.f32 1.0, %v10688_v16 }
0x2356   :  { %v5645_v25 = vpack.c.bf16 %v5633_v33, %v5630_v11 }
0x2358   :  { %8298 = vmatprep.mubr.msk.bf16.mxu0 %vm425_vm2, %v5645_v25 }
0x2359   :  { %8299 = vmatmul.mubr.msk.bf16.vlgmr.msra.gmra.mrb[156].mxu0 %vm425_vm2, %v5646_v9 }
0x235a   :  { %8314 = vmatprep.mubr.msk.bf16.mxu0 %vm425_vm2, %v10499_v46 }
0x237d   :  { %v5784_v4 = vpop.permute.xlu0 %5783 }
0x237e   :  { %8306 = vmatprep.mubr.msk.bf16.mxu1 %vm425_vm2, %v5784_v4  ;;  %8318 = vmatprep.subr.bf16.mxu1 %v5784_v4 }
0x2381   :  { %v5786_v2 = vpop.permute.xlu1 %5785 }
0x2382   :  { %8307 = vmatmul.mubr.msk.bf16.vlgmr.msra.gmra.mrb[156].mxu1 %vm425_vm2, %v5786_v2 }
0x2383   :  { %8319 = vmatpush3.bf16.msra.mxu1 %v5784_v4  ;;  %8322 = vmatprep.mubr.msk.bf16.mxu1 %vm425_vm2, %v10499_v46 }
0x2384   :  { %8320 = vmatprep.subr.bf16.mxu1 %v5786_v2 }
0x2387   :  { %8321 = vmatpush3.bf16.msra.mxu1 %v5786_v2  ;;  %v10838_v2 = vld [vmem:[#allocation2 + $0xf0] sm:$0xff] }
0x238a   :  { %8323 = vmatmul.mubr.msk.bf16.vlgmr.msra.gmra.mrb[160].mxu1 %vm425_vm2, %v10457_v1 }
0x238b   :  { %8338 = vmatprep.mubr.msk.bf16.mxu1 %vm425_vm2, %v10499_v46 }
0x242c   :  { %v8300_v38 = vpop.f32.mrb[156].mxu0 }
0x242d   :  { %v5687_v62 = vpop.f32.mrb[157].mxu0 }
0x242e   :  { %5706 = vrot.lane.b32.xlu0 %v5687_v62, %s8940_s23  ;;  %v8301_v54 = vpop.f32.mrb[158].mxu0 }
0x242f   :  { %v5690_v3 = vpop.f32.mrb[159].mxu0 }
0x2430   :  { %5708 = vrot.lane.b32.xlu1 %v5690_v3, %s8940_s23 }
0x2432   :  { %5710 = vrot.lane.b32.xlu0 %v8300_v38, %s8940_s23 }
0x2434   :  { %5712 = vrot.lane.b32.xlu1 %v8301_v54, %s8940_s23  ;;  %v10841_v54 = vld [vmem:[#allocation2 + $0xe0] sm:$0xff] }
0x2455   :  { %v8308_v12 = vpop.f32.mrb[156].mxu1 }
0x2456   :  { %v5827_v7 = vpop.f32.mrb[157].mxu1 }
0x2457   :  { %v8309_v42 = vpop.f32.mrb[158].mxu1 }
0x2458   :  { %v5843_v61 = vpack.c.bf16 %v8309_v42, %v8308_v12  ;;  %v5830_v29 = vpop.f32.mrb[159].mxu1 }
0x2459   :  { %v5842_v40 = vpack.c.bf16 %v5830_v29, %v5827_v7  ;;  %v10844_v7 = vld [vmem:[#allocation2 + $0xf8] sm:$0xff] }
0x245b   :  { %8310 = vmatprep.subr.bf16.mxu0 %v5842_v40 }
0x245c   :  { %8311 = vmatpush3.bf16.msra.mxu0 %v5842_v40  ;;  %v10847_v40 = vld [vmem:[#allocation2 + $0xe8] sm:$0xff] }
0x245d   :  { %8312 = vmatprep.subr.bf16.mxu0 %v5843_v61  ;;  %v8324_v39 = vpop.f32.mrb[160].mxu1 }
0x245e   :  { %v5933_v21 = vpop.f32.mrb[161].mxu1 }
0x245f   :  { %v8325_v57 = vpop.f32.mrb[162].mxu1 }
0x2460   :  { %8313 = vmatpush3.bf16.msra.mxu0 %v5843_v61  ;;  %v5949_v24 = vpack.c.bf16 %v8325_v57, %v8324_v39  ;;  %v5936_v37 = vpop.f32.mrb[163].mxu1 }
0x2461   :  { %8326 = vmatprep.subr.bf16.mxu0 %v10518_v22  ;;  %v5948_v45 = vpack.c.bf16 %v5936_v37, %v5933_v21 }
0x2463   :  { %8315 = vmatmul.mubr.msk.bf16.vlgmr.msra.gmra.mrb[160].mxu0 %vm425_vm2, %v10457_v1 }
0x2464   :  { %8327 = vmatpush3.bf16.msra.mxu0 %v10518_v22  ;;  %8330 = vmatprep.mubr.msk.bf16.mxu0 %vm425_vm2, %v5948_v45 }
0x2465   :  { %8328 = vmatprep.subr.bf16.mxu0 %v10528_v17 }
0x2468   :  { %8329 = vmatpush3.bf16.msra.mxu0 %v10528_v17 }
0x2469   :  { %8342 = vmatprep.subr.bf16.mxu0 %v10535_v23 }
0x246b   :  { %8331 = vmatmul.mubr.msk.bf16.vlgmr.msra.gmra.mrb[164].mxu0 %vm425_vm2, %v5949_v24 }
0x246c   :  { %8343 = vmatpush3.bf16.msra.mxu0 %v10535_v23 }
0x246d   :  { %8344 = vmatprep.subr.bf16.mxu0 %v8883_v32 }
0x2470   :  { %8345 = vmatpush3.bf16.msra.mxu0 %v8883_v32 }
0x2471   :  { %8358 = vmatprep.subr.bf16.mxu0 %v10378_v0 }
0x24a0   :  { %v5707_v22 = vpop.permute.xlu0 %5706 }
0x24a1   :  { %v5718_v50 = vadd.f32 %v5707_v22, %v10670_v5 }
0x24a2   :  { %v5709_v19 = vpop.permute.xlu1 %5708 }
0x24a3   :  { %8770 = vtanh.f32 %v5718_v50  ;;  %v5719_v17 = vadd.f32 %v5709_v19, %v10679_v14 }
0x24a4   :  { %v5711_v35 = vpop.permute.xlu0 %5710 }
0x24a5   :  { %8772 = vtanh.f32 %v5719_v17  ;;  %v5720_v59 = vadd.f32 %v5711_v35, %v10666_v10  ;;  %v5730_v10 = vsub.f32 1.0, %v10686_v41 }
0x24a6   :  { %v5713_v23 = vpop.permute.xlu1 %5712 }
0x24a7   :  { %8774 = vtanh.f32 %v5720_v59  ;;  %v5721_v48 = vadd.f32 %v5713_v23, %v10674_v63 }
0x24a9   :  { %8776 = vtanh.f32 %v5721_v48 }
0x24ad   :  { %v8771_v28 = vpop.eup %8770 }
0x24ae   :  { %5738 = vrot.lane.b32.xlu0 %v8771_v28, %s8941_s24 }
0x24af   :  { %v8773_v0 = vpop.eup %8772 }
0x24b0   :  { %5740 = vrot.lane.b32.xlu1 %v8773_v0, %s8941_s24 }
0x24b1   :  { %v8775_v5 = vpop.eup %8774 }
0x24b2   :  { %5742 = vrot.lane.b32.xlu0 %v8775_v5, %s8941_s24 }
0x24b3   :  { %v8777_v6 = vpop.eup %8776 }
0x24b4   :  { %5744 = vrot.lane.b32.xlu1 %v8777_v6, %s8941_s24 }
0x24b6   :  { %6037 = vrot.lane.b32.xlu0 %v10731_v26, %s8941_s24 }
0x24b8   :  { %6039 = vrot.lane.b32.xlu1 %v10733_v56, %s8941_s24 }
0x24ba   :  { %6041 = vrot.lane.b32.xlu0 %v10742_v15, %s8941_s24 }
0x24bc   :  { %6043 = vrot.lane.b32.xlu1 %v10744_v47, %s8941_s24 }
0x2520   :  { %v5739_v63 = vpop.permute.xlu0 %5738 }
0x2521   :  { %v5750_v14 = vmul.f32 %v5739_v63, %v5730_v10 }
0x2522   :  { %v5741_v51 = vpop.permute.xlu1 %5740 }
0x2523   :  { %v5751_v60 = vmul.f32 %v5741_v51, %v5731_v43  ;;  %v10803_v52 = vadd.f32 %v5750_v14, %v5726_v20 }
0x2524   :  { %v5743_v13 = vpop.permute.xlu0 %5742 }
0x2525   :  { %v10805_v30 = vadd.f32 %v5751_v60, %v5727_v34  ;;  %v5752_v11 = vmul.f32 %v5743_v13, %v5732_v44 }
0x2526   :  { %v5745_v9 = vpop.permute.xlu1 %5744 }
0x2527   :  { %v6217_v33 = vpack.c.bf16 %v10805_v30, %v10803_v52  ;;  %v5753_v41 = vmul.f32 %v5745_v9, %v5733_v27  ;;  %v10814_v49 = vadd.f32 %v5752_v11, %v5728_v18 }
0x2528   :  { %v6038_v23 = vpop.permute.xlu0 %6037 }
0x2529   :  { %v10816_v25 = vadd.f32 %v5753_v41, %v5729_v55  ;;  %6221 = vrot.lane.b32.xlu0 %v6217_v33, %s8941_s24 }
0x252a   :  { %v6040_v48 = vpop.permute.xlu1 %6039 }
0x252b   :  { %v6218_v4 = vpack.c.bf16 %v10816_v25, %v10814_v49 }
0x252c   :  { %v6042_v6 = vpop.permute.xlu0 %6041 }
0x252d   :  { %5762 = vrot.lane.b32.xlu0 %v10803_v52, %s8941_s24  ;;  %6223 = vrot.lane.b32.xlu1 %v6218_v4, %s8941_s24 }
0x252e   :  { %v6044_v10 = vpop.permute.xlu1 %6043 }
0x2531   :  { %5766 = vrot.lane.b32.xlu0 %v10814_v49, %s8941_s24  ;;  %5764 = vrot.lane.b32.xlu1 %v10805_v30, %s8941_s24 }
0x2535   :  { %5768 = vrot.lane.b32.xlu1 %v10816_v25, %s8941_s24 }
0x2536   :  { %v10830_v53 = vpop.f32.mrb[160].mxu0 }
0x2537   :  { %v10832_v31 = vpop.f32.mrb[161].mxu0 }
0x2538   :  { %v10834_v8 = vpop.f32.mrb[162].mxu0 }
0x2539   :  { %v10836_v16 = vpop.f32.mrb[163].mxu0 }
0x253e   :  { %v8332_v38 = vpop.f32.mrb[164].mxu0 }
0x253f   :  { %v6007_v62 = vadd.f32 %v8332_v38, %v10838_v2  ;;  %v5990_v3 = vpop.f32.mrb[165].mxu0 }
0x2540   :  { %v6005_v12 = vadd.f32 %v5990_v3, %v10841_v54  ;;  %v8333_v42 = vpop.f32.mrb[166].mxu0  ;;  %v10896_v3 = vld [vmem:[%s11204_s7] sm:$0xff]  }
0x2541   :  { %v7304_v61 = vmul.f32 -1.442695, %v6007_v62  ;;  %v6008_v29 = vadd.f32 %v8333_v42, %v10844_v7  ;;  %v5993_v39 = vpop.f32.mrb[167].mxu0 }
0x2542   :  { %v7302_v21 = vmul.f32 -1.442695, %v6005_v12  ;;  %v6006_v57 = vadd.f32 %v5993_v39, %v10847_v40  ;;  %v10909_v12 = vld [vmem:[%s11205_s8] sm:$0xff]  }
0x2543   :  { %8778 = vpow2.f32 %v7304_v61  ;;  %v7305_v24 = vmul.f32 -1.442695, %v6008_v29 }
0x2544   :  { %8780 = vpow2.f32 %v7302_v21  ;;  %v7303_v37 = vmul.f32 -1.442695, %v6006_v57 }
0x2545   :  { %8782 = vpow2.f32 %v7305_v24  ;;  %v10918_v24 = vld [vmem:[%s11205_s8 + $0x8] sm:$0xff]  }
0x2546   :  { %8784 = vpow2.f32 %v7303_v37 }
0x254d   :  { %v8779_v45 = vpop.eup %8778 }
0x254e   :  { %v8781_v32 = vpop.eup %8780  ;;  %v6023_v22 = vadd.f32 1.0, %v8779_v45 }
0x254f   :  { %v8783_v50 = vpop.eup %8782  ;;  %v6021_v19 = vadd.f32 1.0, %v8781_v32 }
0x2550   :  { %v8785_v17 = vpop.eup %8784  ;;  %8786 = vrcp.f32 %v6023_v22  ;;  %v6024_v35 = vadd.f32 1.0, %v8783_v50  ;;  %v10929_v50 = vld [vmem:[%s11206_s9] ss:$0 sm:$0xff] }
0x2551   :  { %8788 = vrcp.f32 %v6021_v19  ;;  %v6022_v59 = vadd.f32 1.0, %v8785_v17  ;;  %v10933_v19 = vadd.f32 %v10929_v50, %v10830_v53  ;;  %v10937_v17 = vadd.f32 %v10929_v50, %v10832_v31 }
0x2552   :  { %8790 = vrcp.f32 %v6024_v35 }
0x2553   :  { %8792 = vrcp.f32 %v6022_v59  ;;  %v10941_v59 = vadd.f32 %v10929_v50, %v10834_v8 }
0x255a   :  { %v10850_v28 = vpop.eup %8786 }
0x255b   :  { %v10852_v0 = vpop.eup %8788  ;;  %v6051_v14 = vmul.f32 %v10850_v28, %v6042_v6  ;;  %v10946_v6 = vadd.f32 %v10929_v50, %v10836_v16 }
0x255c   :  { %v10854_v5 = vpop.eup %8790  ;;  %v6049_v51 = vmul.f32 %v10852_v0, %v6038_v23 }
0x255d   :  { %v10856_v63 = vpop.eup %8792  ;;  %v6052_v43 = vmul.f32 %v10854_v5, %v6044_v10 }
0x255e   :  { %v6050_v20 = vmul.f32 %v10856_v63, %v6040_v48 }
0x255f   :  { %v6054_v34 = vpack.c.bf16 %v6052_v43, %v6051_v14 }
0x2560   :  { %v6053_v60 = vpack.c.bf16 %v6050_v20, %v6049_v51 }
0x2562   :  { %8334 = vmatprep.subr.bf16.mxu1 %v6053_v60 }
0x2563   :  { %8335 = vmatpush3.bf16.msra.mxu1 %v6053_v60 }
0x2564   :  { %8336 = vmatprep.subr.bf16.mxu1 %v6054_v34 }
0x2567   :  { %8337 = vmatpush3.bf16.msra.mxu1 %v6054_v34 }
0x256a   :  { %8339 = vmatmul.mubr.msk.bf16.vlgmr.msra.gmra.mrb[164].mxu1 %vm425_vm2, %v10457_v1  ;;  %v10881_v1 = vld [vmem:[%s11197_s0 + $0x8] sm:$0xff]  }
0x256b   :  { %8354 = vmatprep.mubr.msk.bf16.mxu1 %vm425_vm2, %v10499_v46 }
0x259b   :  { %v6222_v44 = vpop.permute.xlu0 %6221 }
0x259c   :  { %8350 = vmatprep.subr.bf16.mxu1 %v6222_v44 }
0x259d   :  { %8351 = vmatpush3.bf16.msra.mxu1 %v6222_v44 }
0x259f   :  { %v10866_v13 = vpop.permute.xlu0 %5762  ;;  %v6224_v11 = vpop.permute.xlu1 %6223 }
0x25a0   :  { %5775 = vst.msk [vmem:[#allocation5 + $0xa0] sm:$0xff] %vm425_vm2, %v10866_v13  ;;  %8352 = vmatprep.subr.bf16.mxu1 %v6224_v11 }
0x25a1   :  { %8353 = vmatpush3.bf16.msra.mxu1 %v6224_v11 }
0x25a3   :  { %v10870_v27 = vpop.permute.xlu0 %5766  ;;  %v10872_v9 = vpop.permute.xlu1 %5764 }
0x25a4   :  { %5777 = vst.msk [vmem:[#allocation5 + $0xb0] sm:$0xff] %vm425_vm2, %v10870_v27  ;;  %5776 = vst.msk [vmem:[#allocation5 + $0xa8] sm:$0xff] %vm425_vm2, %v10872_v9  ;;  %8355 = vmatmul.mubr.msk.bf16.vlgmr.msra.gmra.mrb[168].mxu1 %vm425_vm2, %v10881_v1 }
0x25a5   :  { %8370 = vmatprep.mubr.msk.bf16.mxu1 %vm425_vm2, %v10499_v46  ;;  %v10902_v46 = vld [vmem:[%s11204_s7 + $0x8] sm:$0xff]  }
0x25a7   :  { %v10887_v33 = vpop.permute.xlu1 %5768 }
0x25a8   :  { %5778 = vst.msk [vmem:[#allocation5 + $0xb8] sm:$0xff] %vm425_vm2, %v10887_v33 }
0x263d   :  { %v8340_v18 = vpop.f32.mrb[164].mxu1 }
0x263e   :  { %v6089_v55 = vpop.f32.mrb[165].mxu1 }
0x263f   :  { %v8341_v41 = vpop.f32.mrb[166].mxu1 }
0x2640   :  { %v6105_v4 = vpack.c.bf16 %v8341_v41, %v8340_v18  ;;  %v6092_v38 = vpop.f32.mrb[167].mxu1 }
0x2641   :  { %v6104_v62 = vpack.c.bf16 %v6092_v38, %v6089_v55 }
0x2643   :  { %8346 = vmatprep.mubr.msk.bf16.mxu0 %vm425_vm2, %v6104_v62 }
0x2644   :  { %8347 = vmatmul.mubr.msk.bf16.vlgmr.msra.gmra.mrb[168].mxu0 %vm425_vm2, %v6105_v4 }
0x2645   :  { %8359 = vmatpush3.bf16.msra.mxu0 %v10896_v3 }
0x2646   :  { %8360 = vmatprep.subr.bf16.mxu0 %v10902_v46 }
0x2649   :  { %8361 = vmatpush3.bf16.msra.mxu0 %v10902_v46 }
0x264a   :  { %8374 = vmatprep.subr.bf16.mxu0 %v10909_v12 }
0x2677   :  { %v8356_v42 = vpop.f32.mrb[168].mxu1 }
0x2678   :  { %v6261_v61 = vpop.f32.mrb[169].mxu1 }
0x2679   :  { %v8357_v29 = vpop.f32.mrb[170].mxu1 }
0x267a   :  { %v6277_v39 = vpack.c.bf16 %v8357_v29, %v8356_v42  ;;  %v6264_v21 = vpop.f32.mrb[171].mxu1 }
0x267b   :  { %v6276_v57 = vpack.c.bf16 %v6264_v21, %v6261_v61 }
0x267d   :  { %8362 = vmatprep.mubr.msk.bf16.mxu0 %vm425_vm2, %v6276_v57 }
0x267e   :  { %8363 = vmatmul.mubr.msk.bf16.vlgmr.msra.gmra.mrb[172].mxu0 %vm425_vm2, %v6277_v39 }
0x267f   :  { %8375 = vmatpush3.bf16.msra.mxu0 %v10909_v12 }
0x2680   :  { %8376 = vmatprep.subr.bf16.mxu0 %v10918_v24 }
0x2683   :  { %8377 = vmatpush3.bf16.msra.mxu0 %v10918_v24 }
0x2717   :  { %v8348_v37 = vpop.f32.mrb[168].mxu0 }
0x2718   :  { %v6146_v45 = vpop.f32.mrb[169].mxu0 }
0x2719   :  { %6165 = vrot.lane.b32.xlu0 %v6146_v45, %s8940_s23  ;;  %v8349_v32 = vpop.f32.mrb[170].mxu0 }
0x271a   :  { %v6149_v22 = vpop.f32.mrb[171].mxu0 }
0x271b   :  { %6167 = vrot.lane.b32.xlu1 %v6149_v22, %s8940_s23 }
0x271d   :  { %6169 = vrot.lane.b32.xlu0 %v8348_v37, %s8940_s23 }
0x271f   :  { %6171 = vrot.lane.b32.xlu1 %v8349_v32, %s8940_s23 }
0x2751   :  { %v8364_v35 = vpop.f32.mrb[172].mxu0 }
0x2752   :  { %v6335_v23 = vadd.f32 %v8364_v35, %v10933_v19  ;;  %v6318_v48 = vpop.f32.mrb[173].mxu0  ;;  %v10978_v35 = vld [vmem:[%s11197_s0] sm:$0xff]   ;;  %s8942_s0 = smov [#allocation5]  }
0x2753   :  { %v6333_v10 = vadd.f32 %v6318_v48, %v10937_v17  ;;  %v8365_v53 = vpop.f32.mrb[174].mxu0 }
0x2754   :  { %v7316_v14 = vmul.f32 -1.442695, %v6335_v23  ;;  %v6336_v43 = vadd.f32 %v8365_v53, %v10941_v59  ;;  %v6321_v31 = vpop.f32.mrb[175].mxu0 }
0x2755   :  { %v7314_v51 = vmul.f32 -1.442695, %v6333_v10  ;;  %v6334_v20 = vadd.f32 %v6321_v31, %v10946_v6 }
0x2756   :  { %8794 = vpow2.f32 %v7316_v14  ;;  %v7317_v8 = vmul.f32 -1.442695, %v6336_v43 }
0x2757   :  { %8796 = vpow2.f32 %v7314_v51  ;;  %v7315_v34 = vmul.f32 -1.442695, %v6334_v20 }
0x2758   :  { %8798 = vpow2.f32 %v7317_v8 }
0x2759   :  { %8800 = vpow2.f32 %v7315_v34 }
0x2760   :  { %v8795_v60 = vpop.eup %8794 }
0x2761   :  { %v8797_v44 = vpop.eup %8796  ;;  %v6351_v16 = vadd.f32 1.0, %v8795_v60 }
0x2762   :  { %v8799_v11 = vpop.eup %8798  ;;  %v6349_v18 = vadd.f32 1.0, %v8797_v44 }
0x2763   :  { %v8801_v55 = vpop.eup %8800  ;;  %8802 = vrcp.f32 %v6351_v16  ;;  %v6352_v41 = vadd.f32 1.0, %v8799_v11 }
0x2764   :  { %8804 = vrcp.f32 %v6349_v18  ;;  %v6350_v4 = vadd.f32 1.0, %v8801_v55 }
0x2765   :  { %8806 = vrcp.f32 %v6352_v41 }
0x2766   :  { %8808 = vrcp.f32 %v6350_v4 }
0x276d   :  { %v10951_v38 = vpop.eup %8802 }
0x276e   :  { %v10953_v62 = vpop.eup %8804  ;;  %v6363_v29 = vmul.f32 %v10951_v38, %v10870_v27 }
0x276f   :  { %v10955_v42 = vpop.eup %8806  ;;  %v6361_v21 = vmul.f32 %v10953_v62, %v10866_v13 }
0x2770   :  { %v10957_v61 = vpop.eup %8808  ;;  %v6364_v39 = vmul.f32 %v10955_v42, %v10887_v33 }
0x2771   :  { %v6362_v57 = vmul.f32 %v10957_v61, %v10872_v9 }
0x2772   :  { %v6366_v37 = vpack.c.bf16 %v6364_v39, %v6363_v29  ;;  %v6190_v29 = vsub.f32 1.0, %v10856_v63 }
0x2773   :  { %v6365_v45 = vpack.c.bf16 %v6362_v57, %v6361_v21  ;;  %v6189_v21 = vsub.f32 1.0, %v10852_v0 }
0x2775   :  { %8366 = vmatprep.subr.bf16.mxu1 %v6365_v45 }
0x2776   :  { %8367 = vmatpush3.bf16.msra.mxu1 %v6365_v45 }
0x2777   :  { %8368 = vmatprep.subr.bf16.mxu1 %v6366_v37 }
0x277a   :  { %8369 = vmatpush3.bf16.msra.mxu1 %v6366_v37 }
0x277b   :  { %8382 = vmatprep.subr.bf16.mxu1 %v10703_v36 }
0x277d   :  { %8371 = vmatmul.mubr.msk.bf16.vlgmr.msra.gmra.mrb[172].mxu1 %vm425_vm2, %v10881_v1 }
0x277e   :  { %8383 = vmatpush3.bf16.msra.mxu1 %v10703_v36 }
0x277f   :  { %8384 = vmatprep.subr.bf16.mxu1 %v10712_v58 }
0x2782   :  { %8385 = vmatpush3.bf16.msra.mxu1 %v10712_v58 }
0x278b   :  { %v6166_v36 = vpop.permute.xlu0 %6165 }
0x278c   :  { %v6177_v23 = vadd.f32 %v6166_v36, %v10841_v54  ;;  %v6188_v36 = vmul.f32 %v10854_v5, %v10744_v47 }
0x278d   :  { %v6168_v58 = vpop.permute.xlu1 %6167 }
0x278e   :  { %v6178_v10 = vadd.f32 %v6168_v58, %v10847_v40  ;;  %8810 = vtanh.f32 %v6177_v23 }
0x278f   :  { %v6170_v48 = vpop.permute.xlu0 %6169 }
0x2790   :  { %v6179_v14 = vadd.f32 %v6170_v48, %v10838_v2  ;;  %8812 = vtanh.f32 %v6178_v10  ;;  %v6502_v10 = vsub.f32 1.0, %v10957_v61 }
0x2791   :  { %v6172_v53 = vpop.permute.xlu1 %6171 }
0x2792   :  { %v6180_v31 = vadd.f32 %v6172_v53, %v10844_v7  ;;  %8814 = vtanh.f32 %v6179_v14  ;;  %v6497_v14 = vmul.f32 %v10953_v62, %v10803_v52  ;;  %v6499_v52 = vmul.f32 %v10951_v38, %v10814_v49 }
0x2794   :  { %8816 = vtanh.f32 %v6180_v31 }
0x2798   :  { %v8811_v54 = vpop.eup %8810 }
0x279a   :  { %v8813_v2 = vpop.eup %8812 }
0x279c   :  { %v8815_v7 = vpop.eup %8814 }
0x279e   :  { %v8817_v40 = vpop.eup %8816 }
0x2850   :  { %v8372_v13 = vpop.f32.mrb[172].mxu1 }
0x2851   :  { %v6401_v27 = vpop.f32.mrb[173].mxu1 }
0x2852   :  { %v8373_v9 = vpop.f32.mrb[174].mxu1 }
0x2853   :  { %v6417_v33 = vpack.c.bf16 %v8373_v9, %v8372_v13  ;;  %v6404_v32 = vpop.f32.mrb[175].mxu1  ;;  %v6191_v13 = vsub.f32 1.0, %v10850_v28 }
0x2854   :  { %v6416_v22 = vpack.c.bf16 %v6404_v32, %v6401_v27 }
0x2856   :  { %8378 = vmatprep.mubr.msk.bf16.mxu0 %vm425_vm2, %v6416_v22 }
0x2857   :  { %8379 = vmatmul.mubr.msk.bf16.vlgmr.msra.gmra.mrb[176].mxu0 %vm425_vm2, %v6417_v33  ;;  %v6185_v33 = vmul.f32 %v10852_v0, %v10731_v26 }
0x2858   :  { %8394 = vmatprep.mubr.msk.bf16.mxu0 %vm425_vm2, %v10978_v35 }
0x292a   :  { %v8380_v43 = vpop.f32.mrb[176].mxu0 }
0x292b   :  { %v6458_v51 = vpop.f32.mrb[177].mxu0 }
0x292c   :  { %6477 = vrot.lane.b32.xlu0 %v6458_v51, %s8940_s23  ;;  %v8381_v20 = vpop.f32.mrb[178].mxu0  ;;  %v6503_v51 = vsub.f32 1.0, %v10951_v38 }
0x292d   :  { %v6461_v8 = vpop.f32.mrb[179].mxu0 }
0x292e   :  { %6479 = vrot.lane.b32.xlu1 %v6461_v8, %s8940_s23 }
0x2930   :  { %6481 = vrot.lane.b32.xlu0 %v8380_v43, %s8940_s23  ;;  %v6498_v43 = vmul.f32 %v10957_v61, %v10805_v30  ;;  %v6500_v30 = vmul.f32 %v10955_v42, %v10816_v25 }
0x2932   :  { %6483 = vrot.lane.b32.xlu1 %v8381_v20, %s8940_s23 }
0x2934   :  { %6197 = vrot.lane.b32.xlu0 %v8811_v54, %s8941_s24 }
0x2936   :  { %6199 = vrot.lane.b32.xlu1 %v8813_v2, %s8941_s24 }
0x2938   :  { %6201 = vrot.lane.b32.xlu0 %v8815_v7, %s8941_s24  ;;  %v6504_v7 = vsub.f32 1.0, %v10955_v42 }
0x293a   :  { %6203 = vrot.lane.b32.xlu1 %v8817_v40, %s8941_s24 }
0x299e   :  { %v6478_v34 = vpop.permute.xlu0 %6477 }
0x299f   :  { %v6489_v60 = vadd.f32 %v6478_v34, %v10937_v17 }
0x29a0   :  { %v6480_v44 = vpop.permute.xlu1 %6479 }
0x29a1   :  { %8818 = vtanh.f32 %v6489_v60  ;;  %v6490_v16 = vadd.f32 %v6480_v44, %v10946_v6  ;;  %v6192_v6 = vsub.f32 1.0, %v10854_v5 }
0x29a2   :  { %v6482_v11 = vpop.permute.xlu0 %6481 }
0x29a3   :  { %8820 = vtanh.f32 %v6490_v16  ;;  %v6491_v18 = vadd.f32 %v6482_v11, %v10933_v19  ;;  %v6186_v19 = vmul.f32 %v10856_v63, %v10733_v56  ;;  %v6187_v63 = vmul.f32 %v10850_v28, %v10742_v15 }
0x29a4   :  { %v6484_v55 = vpop.permute.xlu1 %6483  ;;  %v6501_v15 = vsub.f32 1.0, %v10953_v62 }
0x29a5   :  { %8822 = vtanh.f32 %v6491_v18  ;;  %v6492_v41 = vadd.f32 %v6484_v55, %v10941_v59 }
0x29a6   :  { %v6198_v4 = vpop.permute.xlu0 %6197 }
0x29a7   :  { %8824 = vtanh.f32 %v6492_v41  ;;  %v6209_v45 = vmul.f32 %v6198_v4, %v6189_v21 }
0x29a8   :  { %v6200_v39 = vpop.permute.xlu1 %6199 }
0x29a9   :  { %v6210_v17 = vmul.f32 %v6200_v39, %v6190_v29  ;;  %v11012_v56 = vadd.f32 %v6209_v45, %v6185_v33 }
0x29aa   :  { %v6202_v37 = vpop.permute.xlu0 %6201 }
0x29ab   :  { %v8819_v57 = vpop.eup %8818  ;;  %v11007_v32 = vadd.f32 %v6210_v17, %v6186_v19  ;;  %v6211_v22 = vmul.f32 %v6202_v37, %v6191_v13 }
0x29ac   :  { %6509 = vrot.lane.b32.xlu0 %v8819_v57, %s8941_s24  ;;  %v6204_v59 = vpop.permute.xlu1 %6203 }
0x29ad   :  { %v8821_v27 = vpop.eup %8820  ;;  %v6212_v9 = vmul.f32 %v6204_v59, %v6192_v6  ;;  %v6550_v26 = vpack.c.bf16 %v11007_v32, %v11012_v56  ;;  %v11021_v0 = vadd.f32 %v6211_v22, %v6187_v63 }
0x29ae   :  { %6511 = vrot.lane.b32.xlu1 %v8821_v27, %s8941_s24 }
0x29af   :  { %v8823_v58 = vpop.eup %8822  ;;  %v11016_v23 = vadd.f32 %v6212_v9, %v6188_v36 }
0x29b0   :  { %6513 = vrot.lane.b32.xlu0 %v8823_v58, %s8941_s24 }
0x29b1   :  { %v8825_v48 = vpop.eup %8824  ;;  %v6551_v47 = vpack.c.bf16 %v11016_v23, %v11021_v0 }
0x29b2   :  { %6515 = vrot.lane.b32.xlu1 %v8825_v48, %s8941_s24 }
0x29b4   :  { %6554 = vrot.lane.b32.xlu0 %v6550_v26, %s8941_s24 }
0x29b6   :  { %6556 = vrot.lane.b32.xlu1 %v6551_v47, %s8941_s24 }
0x2a1e   :  { %v6510_v28 = vpop.permute.xlu0 %6509 }
0x2a1f   :  { %v6521_v5 = vmul.f32 %v6510_v28, %v6501_v15 }
0x2a20   :  { %v6512_v53 = vpop.permute.xlu1 %6511 }
0x2a21   :  { %v6522_v31 = vmul.f32 %v6512_v53, %v6502_v10  ;;  %v11035_v8 = vadd.f32 %v6521_v5, %v6497_v14 }
0x2a22   :  { %v6514_v20 = vpop.permute.xlu0 %6513 }
0x2a23   :  { %v11037_v54 = vadd.f32 %v6522_v31, %v6498_v43  ;;  %v6523_v2 = vmul.f32 %v6514_v20, %v6503_v51 }
0x2a24   :  { %v6516_v40 = vpop.permute.xlu1 %6515 }
0x2a25   :  { %v6664_v34 = vpack.c.bf16 %v11037_v54, %v11035_v8  ;;  %v6524_v62 = vmul.f32 %v6516_v40, %v6504_v7  ;;  %v11046_v60 = vadd.f32 %v6523_v2, %v6499_v52 }
0x2a26   :  { %v6555_v61 = vpop.permute.xlu0 %6554 }
0x2a27   :  { %v11048_v44 = vadd.f32 %v6524_v62, %v6500_v30  ;;  %8386 = vmatprep.mubr.msk.bf16.mxu1 %vm425_vm2, %v6555_v61  ;;  %6668 = vrot.lane.b32.xlu0 %v6664_v34, %s8941_s24 }
0x2a28   :  { %v6557_v16 = vpop.permute.xlu1 %6556 }
0x2a29   :  { %v6665_v11 = vpack.c.bf16 %v11048_v44, %v11046_v60  ;;  %8387 = vmatmul.mubr.msk.bf16.vlgmr.msra.gmra.mrb[176].mxu1 %vm425_vm2, %v6557_v16 }
0x2a2a   :  { %8402 = vmatprep.mubr.msk.bf16.mxu1 %vm425_vm2, %v10978_v35 }
0x2a2b   :  { %6533 = vrot.lane.b32.xlu0 %v11035_v8, %s8941_s24  ;;  %6670 = vrot.lane.b32.xlu1 %v6665_v11, %s8941_s24 }
0x2a2f   :  { %6537 = vrot.lane.b32.xlu0 %v11046_v60, %s8941_s24  ;;  %6535 = vrot.lane.b32.xlu1 %v11037_v54, %s8941_s24 }
0x2a33   :  { %6539 = vrot.lane.b32.xlu1 %v11048_v44, %s8941_s24 }
0x2a99   :  { %v6669_v49 = vpop.permute.xlu0 %6668 }
0x2a9a   :  { %8398 = vmatprep.subr.bf16.mxu1 %v6669_v49 }
0x2a9b   :  { %8399 = vmatpush3.bf16.msra.mxu1 %v6669_v49 }
0x2a9d   :  { %v11066_v25 = vpop.permute.xlu0 %6533  ;;  %v6671_v38 = vpop.permute.xlu1 %6670 }
0x2a9e   :  { %6546 = vst.msk [vmem:[#allocation5 + $0xc0] sm:$0xff] %vm425_vm2, %v11066_v25  ;;  %8400 = vmatprep.subr.bf16.mxu1 %v6671_v38 }
0x2a9f   :  { %8401 = vmatpush3.bf16.msra.mxu1 %v6671_v38 }
0x2aa1   :  { %v11070_v42 = vpop.permute.xlu0 %6537  ;;  %v11072_v18 = vpop.permute.xlu1 %6535 }
0x2aa2   :  { %6548 = vst.msk [vmem:[#allocation5 + $0xd0] sm:$0xff] %vm425_vm2, %v11070_v42  ;;  %6547 = vst.msk [vmem:[#allocation5 + $0xc8] sm:$0xff] %vm425_vm2, %v11072_v18  ;;  %8403 = vmatmul.mubr.msk.bf16.vlgmr.msra.gmra.mrb[180].mxu1 %vm425_vm2, %v10881_v1 }
0x2aa3   :  { %8418 = vmatprep.mubr.msk.bf16.mxu1 %vm425_vm2, %v10978_v35 }
0x2aa5   :  { %v11082_v55 = vpop.permute.xlu1 %6539 }
0x2aa6   :  { %6549 = vst.msk [vmem:[#allocation5 + $0xd8] sm:$0xff] %vm425_vm2, %v11082_v55 }
0x2afc   :  { %v8388_v41 = vpop.f32.mrb[176].mxu1 }
0x2afd   :  { %v6598_v4 = vpop.f32.mrb[177].mxu1 }
0x2afe   :  { %v8389_v29 = vpop.f32.mrb[178].mxu1 }
0x2aff   :  { %v6614_v39 = vpack.c.bf16 %v8389_v29, %v8388_v41  ;;  %v6601_v21 = vpop.f32.mrb[179].mxu1 }
0x2b00   :  { %v6613_v17 = vpack.c.bf16 %v6601_v21, %v6598_v4 }
0x2b02   :  { %8390 = vmatprep.subr.bf16.mxu0 %v6613_v17 }
0x2b03   :  { %8391 = vmatpush3.bf16.msra.mxu0 %v6613_v17 }
0x2b04   :  { %8392 = vmatprep.subr.bf16.mxu0 %v6614_v39 }
0x2b07   :  { %8393 = vmatpush3.bf16.msra.mxu0 %v6614_v39 }
0x2b08   :  { %8406 = vmatprep.subr.bf16.mxu0 %v10896_v3 }
0x2b0a   :  { %8395 = vmatmul.mubr.msk.bf16.vlgmr.msra.gmra.mrb[180].mxu0 %vm425_vm2, %v10881_v1 }
0x2b0b   :  { %8407 = vmatpush3.bf16.msra.mxu0 %v10896_v3 }
0x2b0c   :  { %8408 = vmatprep.subr.bf16.mxu0 %v10902_v46 }
0x2b0f   :  { %8409 = vmatpush3.bf16.msra.mxu0 %v10902_v46 }
0x2b10   :  { %8422 = vmatprep.subr.bf16.mxu0 %v10909_v12 }
0x2b75   :  { %v8404_v35 = vpop.f32.mrb[180].mxu1 }
0x2b76   :  { %v6708_v57 = vpop.f32.mrb[181].mxu1 }
0x2b77   :  { %v8405_v37 = vpop.f32.mrb[182].mxu1 }
0x2b78   :  { %v6724_v6 = vpack.c.bf16 %v8405_v37, %v8404_v35  ;;  %v6711_v45 = vpop.f32.mrb[183].mxu1 }
0x2b79   :  { %v6723_v19 = vpack.c.bf16 %v6711_v45, %v6708_v57 }
0x2b7b   :  { %8410 = vmatprep.mubr.msk.bf16.mxu0 %vm425_vm2, %v6723_v19 }
0x2b7c   :  { %8411 = vmatmul.mubr.msk.bf16.vlgmr.msra.gmra.mrb[184].mxu0 %vm425_vm2, %v6724_v6 }
0x2b7d   :  { %8423 = vmatpush3.bf16.msra.mxu0 %v10909_v12 }
0x2b7e   :  { %8424 = vmatprep.subr.bf16.mxu0 %v10918_v24 }
0x2b81   :  { %8425 = vmatpush3.bf16.msra.mxu0 %v10918_v24 }
0x2bdd   :  { %v8396_v3 = vpop.f32.mrb[180].mxu0 }
0x2bde   :  { %v6649_v46 = vpop.f32.mrb[181].mxu0  ;;  %v11099_v27 = vadd.f32 %v10929_v50, %v8396_v3 }
0x2bdf   :  { %v8397_v13 = vpop.f32.mrb[182].mxu0  ;;  %v11102_v9 = vadd.f32 %v10929_v50, %v6649_v46 }
0x2be0   :  { %v6652_v59 = vpop.f32.mrb[183].mxu0  ;;  %v11105_v22 = vadd.f32 %v10929_v50, %v8397_v13 }
0x2be1   :  { %v6653_v58 = vadd.f32 %v10929_v50, %v6652_v59 }
0x2c4f   :  { %v8412_v33 = vpop.f32.mrb[184].mxu0 }
0x2c50   :  { %v6782_v12 = vadd.f32 %v8412_v33, %v11099_v27  ;;  %v6765_v36 = vpop.f32.mrb[185].mxu0 }
0x2c51   :  { %v6780_v24 = vadd.f32 %v6765_v36, %v11102_v9  ;;  %v8413_v63 = vpop.f32.mrb[186].mxu0 }
0x2c52   :  { %v7332_v48 = vmul.f32 -1.442695, %v6782_v12  ;;  %v6783_v26 = vadd.f32 %v8413_v63, %v11105_v22  ;;  %v6768_v47 = vpop.f32.mrb[187].mxu0 }
0x2c53   :  { %v7330_v15 = vmul.f32 -1.442695, %v6780_v24  ;;  %v6781_v28 = vadd.f32 %v6768_v47, %v6653_v58 }
0x2c54   :  { %8826 = vpow2.f32 %v7332_v48  ;;  %v7333_v5 = vmul.f32 -1.442695, %v6783_v26 }
0x2c55   :  { %8828 = vpow2.f32 %v7330_v15  ;;  %v7331_v10 = vmul.f32 -1.442695, %v6781_v28 }
0x2c56   :  { %8830 = vpow2.f32 %v7333_v5 }
0x2c57   :  { %8832 = vpow2.f32 %v7331_v10 }
0x2c5e   :  { %v8827_v53 = vpop.eup %8826 }
0x2c5f   :  { %v8829_v14 = vpop.eup %8828  ;;  %v6798_v43 = vadd.f32 1.0, %v8827_v53 }
0x2c60   :  { %v8831_v31 = vpop.eup %8830  ;;  %v6796_v50 = vadd.f32 1.0, %v8829_v14 }
0x2c61   :  { %v8833_v51 = vpop.eup %8832  ;;  %8834 = vrcp.f32 %v6798_v43  ;;  %v6799_v20 = vadd.f32 1.0, %v8831_v31 }
0x2c62   :  { %8836 = vrcp.f32 %v6796_v50  ;;  %v6797_v2 = vadd.f32 1.0, %v8833_v51 }
0x2c63   :  { %8838 = vrcp.f32 %v6799_v20 }
0x2c64   :  { %8840 = vrcp.f32 %v6797_v2 }
0x2c6b   :  { %v8835_v7 = vpop.eup %8834 }
0x2c6c   :  { %v11111_v40 = vpop.eup %8836  ;;  %v6810_v30 = vmul.f32 %v8835_v7, %v11070_v42  ;;  %v6950_v33 = vsub.f32 1.0, %v8835_v7  ;;  %v6946_v36 = vmul.f32 %v8835_v7, %v11046_v60 }
0x2c6d   :  { %v11113_v34 = vpop.eup %8838  ;;  %v6808_v61 = vmul.f32 %v11111_v40, %v11066_v25  ;;  %v6948_v12 = vsub.f32 1.0, %v11111_v40  ;;  %v6944_v28 = vmul.f32 %v11111_v40, %v11035_v8 }
0x2c6e   :  { %v11115_v52 = vpop.eup %8840  ;;  %v6811_v62 = vmul.f32 %v11113_v34, %v11082_v55  ;;  %v6951_v24 = vsub.f32 1.0, %v11113_v34  ;;  %v6947_v63 = vmul.f32 %v11113_v34, %v11048_v44 }
0x2c6f   :  { %v6809_v16 = vmul.f32 %v11115_v52, %v11072_v18  ;;  %v6945_v44 = vmul.f32 %v11115_v52, %v11037_v54 }
0x2c70   :  { %v6813_v11 = vpack.c.bf16 %v6811_v62, %v6810_v30 }
0x2c71   :  { %v6812_v49 = vpack.c.bf16 %v6809_v16, %v6808_v61 }
0x2c73   :  { %8414 = vmatprep.subr.bf16.mxu1 %v6812_v49 }
0x2c74   :  { %8415 = vmatpush3.bf16.msra.mxu1 %v6812_v49 }
0x2c75   :  { %8416 = vmatprep.subr.bf16.mxu1 %v6813_v11 }
0x2c78   :  { %8417 = vmatpush3.bf16.msra.mxu1 %v6813_v11 }
0x2c7b   :  { %8419 = vmatmul.mubr.msk.bf16.vlgmr.msra.gmra.mrb[184].mxu1 %vm425_vm2, %v10881_v1 }
0x2d4e   :  { %v8420_v38 = vpop.f32.mrb[184].mxu1 }
0x2d4f   :  { %v6848_v42 = vpop.f32.mrb[185].mxu1 }
0x2d50   :  { %v8421_v41 = vpop.f32.mrb[186].mxu1 }
0x2d51   :  { %v6864_v4 = vpack.c.bf16 %v8421_v41, %v8420_v38  ;;  %v6851_v55 = vpop.f32.mrb[187].mxu1 }
0x2d52   :  { %v6863_v29 = vpack.c.bf16 %v6851_v55, %v6848_v42 }
0x2d54   :  { %8426 = vmatprep.mubr.msk.bf16.mxu0 %vm425_vm2, %v6863_v29 }
0x2d55   :  { %8427 = vmatmul.mubr.msk.bf16.vlgmr.msra.gmra.mrb[188].mxu0 %vm425_vm2, %v6864_v4 }
0x2e28   :  { %v8428_v25 = vpop.f32.mrb[188].mxu0 }
0x2e29   :  { %v6905_v18 = vpop.f32.mrb[189].mxu0 }
0x2e2a   :  { %6924 = vrot.lane.b32.xlu0 %v6905_v18, %s8940_s23  ;;  %v8429_v39 = vpop.f32.mrb[190].mxu0 }
0x2e2b   :  { %v6908_v21 = vpop.f32.mrb[191].mxu0 }
0x2e2c   :  { %6926 = vrot.lane.b32.xlu1 %v6908_v21, %s8940_s23 }
0x2e2e   :  { %6928 = vrot.lane.b32.xlu0 %v8428_v25, %s8940_s23 }
0x2e30   :  { %6930 = vrot.lane.b32.xlu1 %v8429_v39, %s8940_s23  ;;  %s7039_s23 = sshll.u32 %s8942_s0, 4  ;;  %s7040_s23 = int_to_ptr.vmem [resolvable:$true] %s7039_s23 }
0x2e31   :  { %s8891_s15 = scalar_lea.vmem %s7040_s23, 4096  ;;  %p8896_p1 = scmp.lt.s32.totalorder %s7040_s23, %s7040_s23 }
0x2e32   :  { %p8892_p0 = scmp.ne.s32.totalorder %s7040_s23, %s8891_s15  ;;  %p8897_p2 = scmp.lt.s32.totalorder %s8891_s15, %s8891_s15 }
0x2e34   :  { %p8898_p3 = por %p8897_p2, %p8896_p1 }
0x2e36   :  { %p8899_p4 = pnand %p8898_p3, %p8892_p0 }
0x2e9c   :  { %v6925_v1 = vpop.permute.xlu0 %6924 }
0x2e9d   :  { %v6936_v17 = vadd.f32 %v6925_v1, %v11102_v9 }
0x2e9e   :  { %v6927_v35 = vpop.permute.xlu1 %6926 }
0x2e9f   :  { %8842 = vtanh.f32 %v6936_v17  ;;  %v6937_v57 = vadd.f32 %v6927_v35, %v6653_v58 }
0x2ea0   :  { %v6929_v37 = vpop.permute.xlu0 %6928 }
0x2ea1   :  { %8844 = vtanh.f32 %v6937_v57  ;;  %v6938_v6 = vadd.f32 %v6929_v37, %v11099_v27 }
0x2ea2   :  { %v6931_v45 = vpop.permute.xlu1 %6930 }
0x2ea3   :  { %8846 = vtanh.f32 %v6938_v6  ;;  %v6939_v19 = vadd.f32 %v6931_v45, %v11105_v22 }
0x2ea5   :  { %8848 = vtanh.f32 %v6939_v19 }
0x2ea9   :  { %v8843_v3 = vpop.eup %8842 }
0x2eaa   :  { %6956 = vrot.lane.b32.xlu0 %v8843_v3, %s8941_s24 }
0x2eab   :  { %v8845_v46 = vpop.eup %8844 }
0x2eac   :  { %6958 = vrot.lane.b32.xlu1 %v8845_v46, %s8941_s24 }
0x2ead   :  { %v8847_v13 = vpop.eup %8846 }
0x2eae   :  { %6960 = vrot.lane.b32.xlu0 %v8847_v13, %s8941_s24 }
0x2eaf   :  { %v8849_v59 = vpop.eup %8848 }
0x2eb0   :  { %6962 = vrot.lane.b32.xlu1 %v8849_v59, %s8941_s24 }
0x2eb2   :  { %7001 = vrot.lane.b32.xlu0 %v11012_v56, %s8941_s24  ;;  %v6949_v56 = vsub.f32 1.0, %v11115_v52 }
0x2eb4   :  { %7003 = vrot.lane.b32.xlu1 %v11007_v32, %s8941_s24 }
0x2f1c   :  { %v6957_v27 = vpop.permute.xlu0 %6956 }
0x2f1d   :  { %v6968_v26 = vmul.f32 %v6957_v27, %v6948_v12 }
0x2f1e   :  { %v6959_v9 = vpop.permute.xlu1 %6958 }
0x2f1f   :  { %v6969_v5 = vmul.f32 %v6959_v9, %v6949_v56  ;;  %v6972_v53 = vadd.f32 %v6968_v26, %v6944_v28 }
0x2f20   :  { %v6961_v22 = vpop.permute.xlu0 %6960 }
0x2f21   :  { %v6970_v58 = vmul.f32 %v6961_v22, %v6950_v33  ;;  %v6973_v14 = vadd.f32 %v6969_v5, %v6945_v44 }
0x2f22   :  { %v6963_v48 = vpop.permute.xlu1 %6962 }
0x2f23   :  { %v6974_v47 = vadd.f32 %v6970_v58, %v6946_v36  ;;  %v6971_v32 = vmul.f32 %v6963_v48, %v6951_v24 }
0x2f24   :  { %v7002_v15 = vpop.permute.xlu0 %7001 }
0x2f25   :  { %v6975_v10 = vadd.f32 %v6971_v32, %v6947_v63  ;;  %7013 = vst.msk [vmem:[#allocation3] sm:$0xff] %vm425_vm2, %v7002_v15  ;;  %6984 = vrot.lane.b32.xlu0 %v6974_v47, %s8941_s24 }
0x2f26   :  { %v7004_v60 = vpop.permute.xlu1 %7003 }
0x2f27   :  { %7014 = vst.msk [vmem:[#allocation3 + $0x8] sm:$0xff] %vm425_vm2, %v7004_v60  ;;  %6986 = vrot.lane.b32.xlu1 %v6975_v10, %s8941_s24 }
0x2f29   :  { %6980 = vrot.lane.b32.xlu0 %v6972_v53, %s8941_s24 }
0x2f2b   :  { %6982 = vrot.lane.b32.xlu1 %v6973_v14, %s8941_s24 }
0x2f2d   :  { %7005 = vrot.lane.b32.xlu0 %v11021_v0, %s8941_s24 }
0x2f2f   :  { %7007 = vrot.lane.b32.xlu1 %v11016_v23, %s8941_s24  ;;  %s8943_s24 = smov [#allocation3]  }
0x2f30   :  { %s7027_s1 = sshll.u32 %s8943_s24, 4  ;;  %s7028_s1 = int_to_ptr.vmem [resolvable:$true] %s7027_s1 }
0x2f97   :  { %v6985_v8 = vpop.permute.xlu0 %6984 }
0x2f98   :  { %6995 = vst.msk [vmem:[#allocation5 + $0xf0] sm:$0xff] %vm425_vm2, %v6985_v8  ;;  %7020 = vst.msk [vmem:[#allocation3 + $0x30] sm:$0xff] %vm425_vm2, %v6985_v8 }
0x2f99   :  { %v6987_v54 = vpop.permute.xlu1 %6986 }
0x2f9a   :  { %6996 = vst.msk [vmem:[#allocation5 + $0xf8] sm:$0xff] %vm425_vm2, %v6987_v54  ;;  %7021 = vst.msk [vmem:[#allocation3 + $0x38] sm:$0xff] %vm425_vm2, %v6987_v54 }
0x2f9b   :  { %v6981_v43 = vpop.permute.xlu0 %6980 }
0x2f9c   :  { %6993 = vst.msk [vmem:[#allocation5 + $0xe0] sm:$0xff] %vm425_vm2, %v6981_v43  ;;  %7018 = vst.msk [vmem:[#allocation3 + $0x20] sm:$0xff] %vm425_vm2, %v6981_v43 }
0x2f9d   :  { %v6983_v0 = vpop.permute.xlu1 %6982 }
0x2f9e   :  { %6994 = vst.msk [vmem:[#allocation5 + $0xe8] sm:$0xff] %vm425_vm2, %v6983_v0  ;;  %7019 = vst.msk [vmem:[#allocation3 + $0x28] sm:$0xff] %vm425_vm2, %v6983_v0 }
0x2f9f   :  { %v7006_v23 = vpop.permute.xlu0 %7005 }
0x2fa0   :  { %8902 = shalt.err (!%p8899_p4)
}
0x2fa1   :  { %s8903_s18 = scalar_lea.hbm %s11208_s11, 4096 }
0x2fa2   :  { %p8904_p5 = scmp.ne.s32.totalorder %s11208_s11, %s8903_s18  ;;  %p8907_p6 = scmp.lt.u32.totalorder %s8903_s18, %s11208_s11 }
0x2fa4   :  { %p8909_p7 = pnand %p8907_p6, %p8904_p5 }
0x2fa6   :  { %8912 = shalt.err (!%p8909_p7)
}
0x2fa7   :  { %s8944_s5 = smov 128   ;;  %s8945_s6 = smov 8   ;;  %7015 = vst.msk [vmem:[#allocation3 + $0x10] sm:$0xff] %vm425_vm2, %v7006_v23  ;;  %v7008_v31 = vpop.permute.xlu1 %7007 }
0x2fa8   :  { %7045 = dma.vmem_to_hbm [thread:$0]  %s7040_s23, 4096, %s11208_s11, [#allocation6], %s8944_s5, %s8944_s5, %s8945_s6   ;;  %7016 = vst.msk [vmem:[#allocation3 + $0x18] sm:$0xff] %vm425_vm2, %v7008_v31 }
0x2fa9   :  { %s8913_s2 = scalar_lea.vmem %s7028_s1, 1024  ;;  %p8918_p9 = scmp.lt.s32.totalorder %s7028_s1, %s7028_s1 }
0x2faa   :  { %p8914_p8 = scmp.ne.s32.totalorder %s7028_s1, %s8913_s2  ;;  %p8919_p10 = scmp.lt.s32.totalorder %s8913_s2, %s8913_s2 }
0x2fac   :  { %p8920_p11 = por %p8919_p10, %p8918_p9 }
0x2fae   :  { %p8921_p12 = pnand %p8920_p11, %p8914_p8 }
0x2fb0   :  { %8924 = shalt.err (!%p8921_p12)
}
0x2fb1   :  { %s8925_s27 = scalar_lea.hbm %s11207_s10, 1024 }
0x2fb2   :  { %p8926_p13 = scmp.ne.s32.totalorder %s11207_s10, %s8925_s27  ;;  %p8929_p0 = scmp.lt.u32.totalorder %s8925_s27, %s11207_s10 }
0x2fb4   :  { %p8931_p1 = pnand %p8929_p0, %p8926_p13 }
0x2fb6   :  { %8934 = shalt.err (!%p8931_p1)
}
0x2fb7   :  { %7033 = dma.vmem_to_hbm [thread:$0]  %s7028_s1, 1024, %s11207_s10, [#allocation4], %s8944_s5, %s8944_s5, %s8945_s6  }
0x2fb8   :  { %8935 = dma.done.wait [#allocation4], 1024  }
0x2fb9   :  { %8936 = vsyncadd [#allocation4], 4294966272 }
0x2fba   :  { %8937 = dma.done.wait [#allocation6], 4096  }
0x2fbb   :  { %8938 = vsyncadd [#allocation6], 4294963200 }
0x2fbc   :  { %7052 = vsyncpa [#allocation4], 1 }
0x2fbd   :  { %7053 = vsyncpa [#allocation6], 1 }

</bundles_post_ra>
